<compile_context>
chip_gen: v5e
topology: v5e:2x2
jax: 0.10.0
libtpu: 0.0.40
codegen_flags: <defaults>
</compile_context>

<pallas_src>
import jax
import jax.numpy as jnp
from jax.experimental import pallas as pl
from jax.experimental.pallas import tpu as pltpu


# -----------------------------------------------------------------------------
# Fused VAE forward kernel (one batch tile per grid step)
# -----------------------------------------------------------------------------
def _vae_forward_kernel(
    task_ref,     # SMEM (1,) int32 scalar-prefetch (consumed by the index_maps)
    x_ref,        # (TILE_B, D_in)        f32   (cast to bf16 in-kernel)
    eps_ref,      # (TILE_B, D_lat)       f32
    w1_ref,       # (D_in, D_hid)         bf16  encoder fc1   (task-selected)
    b1_ref,       # (1, D_hid)            f32
    wmr_ref,      # (D_hid, 2*D_lat)      bf16  fused mu||rho head
    bmr_ref,      # (1, 2*D_lat)          f32
    wd_ref,       # (D_lat, D_hid)        bf16  decoder shared layer
    bd_ref,       # (1, D_hid)            f32
    wh_ref,       # (D_hid, D_in)         bf16  decoder task head
    bh_ref,       # (1, D_in)             f32
    logits_ref,   # (TILE_B, D_in)        f32   out
    murho_ref,    # (TILE_B, 2*D_lat)     f32   out (mu || rho, lane-dense)
):
    del task_ref  # only used by the index_maps
    f32 = jnp.float32
    bf16 = jnp.bfloat16
    d_lat = eps_ref.shape[1]

    # ---- encoder fc1 + ReLU (f32 -> bf16 cast rides an otherwise idle VPU slot)
    x = x_ref[...].astype(bf16)
    h = jnp.dot(x, w1_ref[...], preferred_element_type=f32) + b1_ref[...]
    h = jnp.maximum(h, 0.0).astype(bf16)

    # ---- fused mu/rho head: one 128-lane-wide matmul ----
    murho = jnp.dot(h, wmr_ref[...], preferred_element_type=f32) + bmr_ref[...]
    mu = murho[:, :d_lat]
    rho = murho[:, d_lat:]

    # ---- reparameterization: z = mu + eps * exp(0.5 * rho)  (f32 on purpose) --
    z = mu + eps_ref[...] * jnp.exp(0.5 * rho)

    # ---- decoder: shared layer + ReLU, then task head (logits, no sigmoid) ----
    hd = jnp.dot(z.astype(bf16), wd_ref[...], preferred_element_type=f32) + bd_ref[...]
    hd = jnp.maximum(hd, 0.0).astype(bf16)
    logits = jnp.dot(hd, wh_ref[...], preferred_element_type=f32) + bh_ref[...]

    logits_ref[...] = logits.astype(logits_ref.dtype)
    murho_ref[...] = murho.astype(murho_ref.dtype)


# -----------------------------------------------------------------------------
# Batch-tiling plan: few fat tiles, core-aware, sublane/MXU aligned via padding
# -----------------------------------------------------------------------------
_SUBLANE = 8
_MXU_ROWS = 128


def _ceil_to(x, m):
    return -(-x // m) * m


def _tensorcores_per_device():
    """TensorCores addressable by one pallas_call via megacore sharding."""
    try:
        kind = jax.devices()[0].device_kind.lower()
    except Exception:
        kind = ""
    # v7x (and v4/v5p megacore) expose 2 TensorCores per JAX device; the
    # single-core inference chips (v5e, v6e) expose 1.  Conservative default: 1.
    for tag in ("7", "v4", "v5p"):
        if tag in kind:
            return 2
    return 1


def _plan_batch_tiling(batch):
    """Returns (tile_b, padded_batch, n_tiles)."""
    n_cores = _tensorcores_per_device()
    # >=2 tiles only pays off when there are 2 TensorCores to shard across;
    # on single-core chips a single full-batch tile removes per-step overhead.
    n_tiles = 2 if (n_cores >= 2 and batch >= 2 * _SUBLANE) else 1
    per_tile = -(-batch // n_tiles)
    # Full 128-row MXU tiles when the batch is big enough, sublane-aligned else.
    align = _MXU_ROWS if per_tile >= _MXU_ROWS else _SUBLANE
    tile_b = _ceil_to(per_tile, align)
    return tile_b, tile_b * n_tiles, n_tiles


# -----------------------------------------------------------------------------
# Wrapper: stacked per-task params go straight into pallas_call; task_idx is a
# scalar-prefetch operand used by the index_maps (single compile for all tasks).
# Returns the fused (logits, mu||rho) slab — no extra split copies at the jit
# boundary; consumers slice mu/rho where they need them.
# -----------------------------------------------------------------------------
@jax.jit
def lp_dgm_vae_forward_fused(x, eps, packed, task_idx):
    """x: (B, D_in) f32, eps: (B, D_lat) f32, task_idx: (1,) int32.
    Returns (logits (B, D_in) f32, murho (B, 2*D_lat) f32)."""
    B, D_in = x.shape
    D_lat = eps.shape[1]
    D_hid = packed["enc_w1"].shape[2]

    tile_b, padded_b, n_tiles = _plan_batch_tiling(B)
    if padded_b != B:
        pad = padded_b - B
        x = jnp.pad(x, ((0, pad), (0, 0)))
        eps = jnp.pad(eps, ((0, pad), (0, 0)))

    in_specs = [
        pl.BlockSpec((tile_b, D_in), lambda i, t: (i, 0)),                  # x
        pl.BlockSpec((tile_b, D_lat), lambda i, t: (i, 0)),                 # eps
        pl.BlockSpec((None, D_in, D_hid), lambda i, t: (t[0], 0, 0)),       # enc_w1
        pl.BlockSpec((None, 1, D_hid), lambda i, t: (t[0], 0, 0)),          # enc_b1
        pl.BlockSpec((None, D_hid, 2 * D_lat), lambda i, t: (t[0], 0, 0)),  # enc_wmurho
        pl.BlockSpec((None, 1, 2 * D_lat), lambda i, t: (t[0], 0, 0)),      # enc_bmurho
        pl.BlockSpec((D_lat, D_hid), lambda i, t: (0, 0)),                  # dec_w_shared
        pl.BlockSpec((1, D_hid), lambda i, t: (0, 0)),                      # dec_b_shared
        pl.BlockSpec((None, D_hid, D_in), lambda i, t: (t[0], 0, 0)),       # dec_w_head
        pl.BlockSpec((None, 1, D_in), lambda i, t: (t[0], 0, 0)),           # dec_b_head
    ]
    out_specs = [
        pl.BlockSpec((tile_b, D_in), lambda i, t: (i, 0)),                  # logits
        pl.BlockSpec((tile_b, 2 * D_lat), lambda i, t: (i, 0)),             # mu || rho
    ]
    out_shapes = (
        jax.ShapeDtypeStruct((padded_b, D_in), jnp.float32),
        jax.ShapeDtypeStruct((padded_b, 2 * D_lat), jnp.float32),
    )

    logits, murho = pl.pallas_call(
        _vae_forward_kernel,
        out_shape=out_shapes,
        grid_spec=pltpu.PrefetchScalarGridSpec(
            num_scalar_prefetch=1,
            grid=(n_tiles,),
            in_specs=in_specs,
            out_specs=out_specs,
        ),
        compiler_params=pltpu.CompilerParams(
            dimension_semantics=("parallel",),
        ),
    )(
        task_idx,
        x,          # f32; cast to bf16 inside the kernel
        eps,
        packed["enc_w1"],
        packed["enc_b1"],
        packed["enc_wmurho"],
        packed["enc_bmurho"],
        packed["dec_w_shared"],
        packed["dec_b_shared"],
        packed["dec_w_head"],
        packed["dec_b_head"],
    )

    if padded_b != B:
        logits = logits[:B]
        murho = murho[:B]
    return logits, murho


def lp_dgm_vae_forward(x, eps, packed, task_idx):
    """Convenience (logits, mu, rho) API matching LP_DGM_VAE.forward(x, task_idx).
    Perf-critical consumers (e.g. the ELBO loss) should use the fused slab."""
    logits, murho = lp_dgm_vae_forward_fused(x, eps, packed, task_idx)
    d_lat = eps.shape[1]
    return logits, murho[:, :d_lat], murho[:, d_lat:]


# -----------------------------------------------------------------------------
# Parameter construction (module-shaped, f32) + one-time packing for the kernel
# -----------------------------------------------------------------------------
def init_params(key, input_size, hidden_size, latent_size, num_tasks):
    ks = jax.random.split(key, 10)

    def u(k, shape, fan_in):
        bound = 1.0 / jnp.sqrt(fan_in)
        return jax.random.uniform(k, shape, jnp.float32, -bound, bound)

    return {
        # per-task encoders (stacked along leading task axis)
        "enc_w1":   u(ks[0], (num_tasks, input_size, hidden_size), input_size),
        "enc_b1":   u(ks[1], (num_tasks, 1, hidden_size), input_size),
        "enc_wmu":  u(ks[2], (num_tasks, hidden_size, latent_size), hidden_size),
        "enc_bmu":  u(ks[3], (num_tasks, 1, latent_size), hidden_size),
        "enc_wrho": u(ks[4], (num_tasks, hidden_size, latent_size), hidden_size),
        "enc_brho": u(ks[5], (num_tasks, 1, latent_size), hidden_size),
        # shared decoder layer
        "dec_w_shared": u(ks[6], (latent_size, hidden_size), latent_size),
        "dec_b_shared": u(ks[7], (1, hidden_size), latent_size),
        # per-task decoder heads
        "dec_w_head": u(ks[8], (num_tasks, hidden_size, input_size), hidden_size),
        "dec_b_head": u(ks[9], (num_tasks, 1, input_size), hidden_size),
    }


def pack_params(raw):
    """One-time packing: fuse mu||rho head, cast weights to bf16, keep biases f32."""
    bf16 = jnp.bfloat16
    return {
        "enc_w1": raw["enc_w1"].astype(bf16),
        "enc_b1": raw["enc_b1"],
        "enc_wmurho": jnp.concatenate([raw["enc_wmu"], raw["enc_wrho"]], axis=-1).astype(bf16),
        "enc_bmurho": jnp.concatenate([raw["enc_bmu"], raw["enc_brho"]], axis=-1),
        "dec_w_shared": raw["dec_w_shared"].astype(bf16),
        "dec_b_shared": raw["dec_b_shared"],
        "dec_w_head": raw["dec_w_head"].astype(bf16),
        "dec_b_head": raw["dec_b_head"],
    }


# -----------------------------------------------------------------------------
# Pure-JAX reference (same bf16 casting sequence as the kernel)
# -----------------------------------------------------------------------------
def reference_forward(x, eps, packed, task_idx):
    f32, bf16 = jnp.float32, jnp.bfloat16
    d_lat = eps.shape[1]
    w1, b1 = packed["enc_w1"][task_idx], packed["enc_b1"][task_idx]
    wmr, bmr = packed["enc_wmurho"][task_idx], packed["enc_bmurho"][task_idx]
    wd, bd = packed["dec_w_shared"], packed["dec_b_shared"]
    wh, bh = packed["dec_w_head"][task_idx], packed["dec_b_head"][task_idx]

    h = jnp.maximum(jnp.dot(x.astype(bf16), w1, preferred_element_type=f32) + b1, 0.0)
    murho = jnp.dot(h.astype(bf16), wmr, preferred_element_type=f32) + bmr
    mu, rho = murho[:, :d_lat], murho[:, d_lat:]
    z = mu + eps * jnp.exp(0.5 * rho)
    hd = jnp.maximum(jnp.dot(z.astype(bf16), wd, preferred_element_type=f32) + bd, 0.0)
    logits = jnp.dot(hd.astype(bf16), wh, preferred_element_type=f32) + bh
    return logits, mu, rho


# -----------------------------------------------------------------------------
# Main
# -----------------------------------------------------------------------------
if __name__ == "__main__":
    B = 256              # 2x128-row tiles on v7x (both TCs) / 1x256-row tile on v5e/v6e
    INPUT_SIZE = 256     # e.g. 4 x 8 x 8 image, flattened
    HIDDEN_SIZE = 256
    LATENT_SIZE = 64     # 2*LATENT_SIZE = 128 -> lane-dense fused mu/rho slab
    NUM_TASKS = 3
    TASK_IDX = 1

    root = jax.random.PRNGKey(0)
    k_params, k_x, k_eps = jax.random.split(root, 3)

    raw_params = init_params(k_params, INPUT_SIZE, HIDDEN_SIZE, LATENT_SIZE, NUM_TASKS)
    packed = pack_params(raw_params)

    # x plays the role of the (flattened) image batch; values in [0, 1].
    x = jax.random.uniform(k_x, (B, INPUT_SIZE), jnp.float32)
    # eps is the torch.randn_like(mu) reparameterization noise, made explicit so
    # the kernel is bit-verifiable against the pure-JAX reference.
    eps = jax.random.normal(k_eps, (B, LATENT_SIZE), jnp.float32)
    task = jnp.array([TASK_IDX], jnp.int32)

    logits, murho = lp_dgm_vae_forward_fused(x, eps, packed, task)
    jax.block_until_ready((logits, murho))

    mu = murho[:, :LATENT_SIZE]
    rho = murho[:, LATENT_SIZE:]
    ref_logits, ref_mu, ref_rho = reference_forward(x, eps, packed, TASK_IDX)

    assert logits.shape == (B, INPUT_SIZE)
    assert mu.shape == (B, LATENT_SIZE)
    assert rho.shape == (B, LATENT_SIZE)
    assert jnp.allclose(mu, ref_mu, atol=5e-3, rtol=5e-3)
    assert jnp.allclose(rho, ref_rho, atol=5e-3, rtol=5e-3)
    assert jnp.allclose(logits, ref_logits, atol=5e-3, rtol=5e-3)

    # Also exercise the (logits, mu, rho) convenience API (forward() semantics).
    l2, m2, r2 = lp_dgm_vae_forward(x, eps, packed, task)
    jax.block_until_ready((l2, m2, r2))
    assert jnp.allclose(l2, ref_logits, atol=5e-3, rtol=5e-3)

    print("KERNEL_OK")
</pallas_src>

<mosaic_0001>
module attributes {stable_mosaic.version = 11 : i64} {
  func.func @_vae_forward_kernel(%arg0: i32, %arg1: memref<1xi32, #tpu.memory_space<smem>>, %arg2: memref<256x256xf32, #tpu.memory_space<vmem>>, %arg3: memref<256x64xf32, #tpu.memory_space<vmem>>, %arg4: memref<1x256x256xbf16, #tpu.memory_space<vmem>>, %arg5: memref<1x1x256xf32, #tpu.memory_space<vmem>>, %arg6: memref<1x256x128xbf16, #tpu.memory_space<vmem>>, %arg7: memref<1x1x128xf32, #tpu.memory_space<vmem>>, %arg8: memref<64x256xbf16, #tpu.memory_space<vmem>>, %arg9: memref<1x256xf32, #tpu.memory_space<vmem>>, %arg10: memref<1x256x256xbf16, #tpu.memory_space<vmem>>, %arg11: memref<1x1x256xf32, #tpu.memory_space<vmem>>, %arg12: memref<256x256xf32, #tpu.memory_space<vmem>>, %arg13: memref<256x128xf32, #tpu.memory_space<vmem>>) attributes {dimension_semantics = [#tpu.dimension_semantics<parallel>], iteration_bounds = array<i64: 1>, scalar_prefetch = 1 : i64, scratch_operands = 0 : i64, tpu.core_type = #tpu.core_type<tc>, window_params = [{transform_indices = @transform_0, window_bounds = array<i64: 256, 256>}, {transform_indices = @transform_1, window_bounds = array<i64: 256, 64>}, {transform_indices = @transform_2, window_bounds = array<i64: 1, 256, 256>}, {transform_indices = @transform_3, window_bounds = array<i64: 1, 1, 256>}, {transform_indices = @transform_4, window_bounds = array<i64: 1, 256, 128>}, {transform_indices = @transform_5, window_bounds = array<i64: 1, 1, 128>}, {pipeline_mode = #tpu.pipeline_mode<synchronous>, transform_indices = @transform_6, window_bounds = array<i64: 64, 256>}, {pipeline_mode = #tpu.pipeline_mode<synchronous>, transform_indices = @transform_7, window_bounds = array<i64: 1, 256>}, {transform_indices = @transform_8, window_bounds = array<i64: 1, 256, 256>}, {transform_indices = @transform_9, window_bounds = array<i64: 1, 1, 256>}, {transform_indices = @transform_10, window_bounds = array<i64: 256, 256>}, {transform_indices = @transform_11, window_bounds = array<i64: 256, 128>}]} {
    %c0 = arith.constant 0 : index
    %c0_0 = arith.constant 0 : index
    %0 = vector.load %arg2[%c0, %c0_0] : memref<256x256xf32, #tpu.memory_space<vmem>>, vector<256x256xf32>
    %1 = arith.truncf %0 : vector<256x256xf32> to vector<256x256xbf16>
    %c0_1 = arith.constant 0 : index
    %c0_2 = arith.constant 0 : index
    %c0_3 = arith.constant 0 : index
    %2 = vector.load %arg4[%c0_1, %c0_2, %c0_3] : memref<1x256x256xbf16, #tpu.memory_space<vmem>>, vector<1x256x256xbf16>
    %3 = vector.shape_cast %2 : vector<1x256x256xbf16> to vector<256x256xbf16>
    %cst = arith.constant dense<0.000000e+00> : vector<256x256xf32>
    %4 = tpu.matmul %1, %3, %cst {dimension_numbers = #tpu.dot_dimension_numbers<[1], [0], [0], [1], [0, 0, 1, 1], [], []>} : vector<256x256xbf16>, vector<256x256xbf16>, vector<256x256xf32> -> vector<256x256xf32>
    %c0_4 = arith.constant 0 : index
    %c0_5 = arith.constant 0 : index
    %c0_6 = arith.constant 0 : index
    %5 = vector.load %arg5[%c0_4, %c0_5, %c0_6] : memref<1x1x256xf32, #tpu.memory_space<vmem>>, vector<1x1x256xf32>
    %6 = vector.shape_cast %5 : vector<1x1x256xf32> to vector<1x256xf32>
    %7 = vector.broadcast %6 : vector<1x256xf32> to vector<256x256xf32>
    %8 = arith.addf %4, %7 : vector<256x256xf32>
    %cst_7 = arith.constant 0.000000e+00 : f32
    %9 = vector.broadcast %cst_7 : f32 to vector<256x256xf32>
    %10 = arith.maximumf %8, %9 : vector<256x256xf32>
    %11 = arith.truncf %10 : vector<256x256xf32> to vector<256x256xbf16>
    %c0_8 = arith.constant 0 : index
    %c0_9 = arith.constant 0 : index
    %c0_10 = arith.constant 0 : index
    %12 = vector.load %arg6[%c0_8, %c0_9, %c0_10] : memref<1x256x128xbf16, #tpu.memory_space<vmem>>, vector<1x256x128xbf16>
    %13 = vector.shape_cast %12 : vector<1x256x128xbf16> to vector<256x128xbf16>
    %cst_11 = arith.constant dense<0.000000e+00> : vector<256x128xf32>
    %14 = tpu.matmul %11, %13, %cst_11 {dimension_numbers = #tpu.dot_dimension_numbers<[1], [0], [0], [1], [0, 0, 1, 1], [], []>} : vector<256x256xbf16>, vector<256x128xbf16>, vector<256x128xf32> -> vector<256x128xf32>
    %c0_12 = arith.constant 0 : index
    %c0_13 = arith.constant 0 : index
    %c0_14 = arith.constant 0 : index
    %15 = vector.load %arg7[%c0_12, %c0_13, %c0_14] : memref<1x1x128xf32, #tpu.memory_space<vmem>>, vector<1x1x128xf32>
    %16 = vector.shape_cast %15 : vector<1x1x128xf32> to vector<1x128xf32>
    %17 = vector.broadcast %16 : vector<1x128xf32> to vector<256x128xf32>
    %18 = arith.addf %14, %17 : vector<256x128xf32>
    %19 = vector.extract_strided_slice %18 {offsets = [0, 0], sizes = [256, 64], strides = [1, 1]} : vector<256x128xf32> to vector<256x64xf32>
    %20 = vector.extract_strided_slice %18 {offsets = [0, 64], sizes = [256, 64], strides = [1, 1]} : vector<256x128xf32> to vector<256x64xf32>
    %c0_15 = arith.constant 0 : index
    %c0_16 = arith.constant 0 : index
    %21 = vector.load %arg3[%c0_15, %c0_16] : memref<256x64xf32, #tpu.memory_space<vmem>>, vector<256x64xf32>
    %cst_17 = arith.constant 5.000000e-01 : f32
    %22 = vector.broadcast %cst_17 : f32 to vector<256x64xf32>
    %23 = arith.mulf %22, %20 : vector<256x64xf32>
    %24 = math.exp %23 : vector<256x64xf32>
    %25 = arith.mulf %21, %24 : vector<256x64xf32>
    %26 = arith.addf %19, %25 : vector<256x64xf32>
    %27 = arith.truncf %26 : vector<256x64xf32> to vector<256x64xbf16>
    %c0_18 = arith.constant 0 : index
    %c0_19 = arith.constant 0 : index
    %28 = vector.load %arg8[%c0_18, %c0_19] : memref<64x256xbf16, #tpu.memory_space<vmem>>, vector<64x256xbf16>
    %cst_20 = arith.constant dense<0.000000e+00> : vector<256x256xf32>
    %29 = tpu.matmul %27, %28, %cst_20 {dimension_numbers = #tpu.dot_dimension_numbers<[1], [0], [0], [1], [0, 0, 1, 1], [], []>} : vector<256x64xbf16>, vector<64x256xbf16>, vector<256x256xf32> -> vector<256x256xf32>
    %c0_21 = arith.constant 0 : index
    %c0_22 = arith.constant 0 : index
    %30 = vector.load %arg9[%c0_21, %c0_22] : memref<1x256xf32, #tpu.memory_space<vmem>>, vector<1x256xf32>
    %31 = vector.broadcast %30 : vector<1x256xf32> to vector<256x256xf32>
    %32 = arith.addf %29, %31 : vector<256x256xf32>
    %cst_23 = arith.constant 0.000000e+00 : f32
    %33 = vector.broadcast %cst_23 : f32 to vector<256x256xf32>
    %34 = arith.maximumf %32, %33 : vector<256x256xf32>
    %35 = arith.truncf %34 : vector<256x256xf32> to vector<256x256xbf16>
    %c0_24 = arith.constant 0 : index
    %c0_25 = arith.constant 0 : index
    %c0_26 = arith.constant 0 : index
    %36 = vector.load %arg10[%c0_24, %c0_25, %c0_26] : memref<1x256x256xbf16, #tpu.memory_space<vmem>>, vector<1x256x256xbf16>
    %37 = vector.shape_cast %36 : vector<1x256x256xbf16> to vector<256x256xbf16>
    %cst_27 = arith.constant dense<0.000000e+00> : vector<256x256xf32>
    %38 = tpu.matmul %35, %37, %cst_27 {dimension_numbers = #tpu.dot_dimension_numbers<[1], [0], [0], [1], [0, 0, 1, 1], [], []>} : vector<256x256xbf16>, vector<256x256xbf16>, vector<256x256xf32> -> vector<256x256xf32>
    %c0_28 = arith.constant 0 : index
    %c0_29 = arith.constant 0 : index
    %c0_30 = arith.constant 0 : index
    %39 = vector.load %arg11[%c0_28, %c0_29, %c0_30] : memref<1x1x256xf32, #tpu.memory_space<vmem>>, vector<1x1x256xf32>
    %40 = vector.shape_cast %39 : vector<1x1x256xf32> to vector<1x256xf32>
    %41 = vector.broadcast %40 : vector<1x256xf32> to vector<256x256xf32>
    %42 = arith.addf %38, %41 : vector<256x256xf32>
    %c0_31 = arith.constant 0 : index
    %c0_32 = arith.constant 0 : index
    %43 = vector.load %arg12[%c0_31, %c0_32] : memref<256x256xf32, #tpu.memory_space<vmem>>, vector<256x256xf32>
    tpu.vector_store %arg12[%c0_31, %c0_32], %42 {strides = array<i32>} : memref<256x256xf32, #tpu.memory_space<vmem>>, vector<256x256xf32>,
    %c0_33 = arith.constant 0 : index
    %c0_34 = arith.constant 0 : index
    %44 = vector.load %arg13[%c0_33, %c0_34] : memref<256x128xf32, #tpu.memory_space<vmem>>, vector<256x128xf32>
    tpu.vector_store %arg13[%c0_33, %c0_34], %18 {strides = array<i32>} : memref<256x128xf32, #tpu.memory_space<vmem>>, vector<256x128xf32>,
    return
  }
  func.func @transform_0(%arg0: i32, %arg1: memref<1xi32, #tpu.memory_space<smem>>) -> (i32, i32) {
    %c0_i32 = arith.constant 0 : i32
    %c0_i32_0 = arith.constant 0 : i32
    return %arg0, %c0_i32 : i32, i32
  }
  func.func @transform_1(%arg0: i32, %arg1: memref<1xi32, #tpu.memory_space<smem>>) -> (i32, i32) {
    %c0_i32 = arith.constant 0 : i32
    %c0_i32_0 = arith.constant 0 : i32
    return %arg0, %c0_i32 : i32, i32
  }
  func.func @transform_2(%arg0: i32, %arg1: memref<1xi32, #tpu.memory_space<smem>>) -> (i32, i32, i32) {
    %c0 = arith.constant 0 : index
    %0 = memref.load %arg1[%c0] : memref<1xi32, #tpu.memory_space<smem>>
    %c0_i32 = arith.constant 0 : i32
    %c0_i32_0 = arith.constant 0 : i32
    %c0_i32_1 = arith.constant 0 : i32
    return %0, %c0_i32, %c0_i32_0 : i32, i32, i32
  }
  func.func @transform_3(%arg0: i32, %arg1: memref<1xi32, #tpu.memory_space<smem>>) -> (i32, i32, i32) {
    %c0 = arith.constant 0 : index
    %0 = memref.load %arg1[%c0] : memref<1xi32, #tpu.memory_space<smem>>
    %c0_i32 = arith.constant 0 : i32
    %c0_i32_0 = arith.constant 0 : i32
    %c0_i32_1 = arith.constant 0 : i32
    return %0, %c0_i32, %c0_i32_0 : i32, i32, i32
  }
  func.func @transform_4(%arg0: i32, %arg1: memref<1xi32, #tpu.memory_space<smem>>) -> (i32, i32, i32) {
    %c0 = arith.constant 0 : index
    %0 = memref.load %arg1[%c0] : memref<1xi32, #tpu.memory_space<smem>>
    %c0_i32 = arith.constant 0 : i32
    %c0_i32_0 = arith.constant 0 : i32
    %c0_i32_1 = arith.constant 0 : i32
    return %0, %c0_i32, %c0_i32_0 : i32, i32, i32
  }
  func.func @transform_5(%arg0: i32, %arg1: memref<1xi32, #tpu.memory_space<smem>>) -> (i32, i32, i32) {
    %c0 = arith.constant 0 : index
    %0 = memref.load %arg1[%c0] : memref<1xi32, #tpu.memory_space<smem>>
    %c0_i32 = arith.constant 0 : i32
    %c0_i32_0 = arith.constant 0 : i32
    %c0_i32_1 = arith.constant 0 : i32
    return %0, %c0_i32, %c0_i32_0 : i32, i32, i32
  }
  func.func @transform_6(%arg0: i32, %arg1: memref<1xi32, #tpu.memory_space<smem>>) -> (i32, i32) {
    %c0_i32 = arith.constant 0 : i32
    %c0_i32_0 = arith.constant 0 : i32
    %c0_i32_1 = arith.constant 0 : i32
    return %c0_i32, %c0_i32_0 : i32, i32
  }
  func.func @transform_7(%arg0: i32, %arg1: memref<1xi32, #tpu.memory_space<smem>>) -> (i32, i32) {
    %c0_i32 = arith.constant 0 : i32
    %c0_i32_0 = arith.constant 0 : i32
    %c0_i32_1 = arith.constant 0 : i32
    return %c0_i32, %c0_i32_0 : i32, i32
  }
  func.func @transform_8(%arg0: i32, %arg1: memref<1xi32, #tpu.memory_space<smem>>) -> (i32, i32, i32) {
    %c0 = arith.constant 0 : index
    %0 = memref.load %arg1[%c0] : memref<1xi32, #tpu.memory_space<smem>>
    %c0_i32 = arith.constant 0 : i32
    %c0_i32_0 = arith.constant 0 : i32
    %c0_i32_1 = arith.constant 0 : i32
    return %0, %c0_i32, %c0_i32_0 : i32, i32, i32
  }
  func.func @transform_9(%arg0: i32, %arg1: memref<1xi32, #tpu.memory_space<smem>>) -> (i32, i32, i32) {
    %c0 = arith.constant 0 : index
    %0 = memref.load %arg1[%c0] : memref<1xi32, #tpu.memory_space<smem>>
    %c0_i32 = arith.constant 0 : i32
    %c0_i32_0 = arith.constant 0 : i32
    %c0_i32_1 = arith.constant 0 : i32
    return %0, %c0_i32, %c0_i32_0 : i32, i32, i32
  }
  func.func @transform_10(%arg0: i32, %arg1: memref<1xi32, #tpu.memory_space<smem>>) -> (i32, i32) {
    %c0_i32 = arith.constant 0 : i32
    %c0_i32_0 = arith.constant 0 : i32
    return %arg0, %c0_i32 : i32, i32
  }
  func.func @transform_11(%arg0: i32, %arg1: memref<1xi32, #tpu.memory_space<smem>>) -> (i32, i32) {
    %c0_i32 = arith.constant 0 : i32
    %c0_i32_0 = arith.constant 0 : i32
    return %arg0, %c0_i32 : i32, i32
  }
}

</mosaic_0001>

<bundles_post_ra>
// kernel: lp_dgm_vae_forward_fused.1
= control target key start
LH: loop header
LB: loop body
LE: loop exit
PB: predicated region body
PF: predicated region fallthrough
CT: control target
= control target key end

     0   :  { %19 = vsyncpa [#allocation5], 0  ;;  %s4562_s0 = inlined_call_operand.<no memory space> [shape: s32[1], index: 0, kind: input, shape index: {}]   ;;  %s4563_s1 = inlined_call_operand.hbm [shape: f32[256,256], index: 1, kind: input, shape index: {}]   ;;  %s4564_s2 = inlined_call_operand.vmem [shape: f32[256,64], index: 2, kind: input, shape index: {}]   ;;  %s4565_s3 = inlined_call_operand.hbm [shape: bf16[3,256,256], index: 3, kind: input, shape index: {}]   ;;  %s4566_s4 = inlined_call_operand.vmem [shape: f32[3,1,256], index: 4, kind: input, shape index: {}]   ;;  %s4567_s5 = inlined_call_operand.vmem [shape: bf16[3,256,128], index: 5, kind: input, shape index: {}]   ;;  %s4568_s6 = inlined_call_operand.vmem [shape: f32[3,1,128], index: 6, kind: input, shape index: {}]   ;;  %s4569_s7 = inlined_call_operand.hbm [shape: bf16[64,256], index: 7, kind: input, shape index: {}]   ;;  %s4570_s8 = inlined_call_operand.hbm [shape: f32[1,256], index: 8, kind: input, shape index: {}]   ;;  %s4571_s9 = inlined_call_operand.hbm [shape: bf16[3,256,256], index: 9, kind: input, shape index: {}]   ;;  %s4572_s10 = inlined_call_operand.hbm [shape: f32[3,1,256], index: 10, kind: input, shape index: {}]   ;;  %s4573_s11 = inlined_call_operand.hbm [shape: f32[256,256], index: 11, kind: output, shape index: {0}]   ;;  %s4574_s12 = inlined_call_operand.hbm [shape: f32[256,128], index: 12, kind: output, shape index: {1}]  }
   0x1   :  { %20 = vsyncpa [#allocation8], 0 }
   0x2   :  { %21 = vsyncpa [#allocation11], 0 }
   0x3   :  { %22 = vsyncpa [#allocation14], 0 }
   0x4   :  { %23 = vsyncpa [#allocation6], 0  ;;  %s3069_s23 = sshll.u32 %s4562_s0, 8 }
   0x5   :  { %24 = vsyncpa [#allocation17], 0  ;;  %s47_s26 = scalar_lea.hbm %s4565_s3, %s3069_s23  ;;  %s3443_s27 = smov [#allocation7]  }
   0x6   :  { %s50_s28 = sshll.u32 %s3443_s27, 4  ;;  %s48_s29 = sshll.u32 %s47_s26, 4  ;;  %s51_s28 = int_to_ptr.vmem [resolvable:$true] %s50_s28  ;;  %s49_s29 = int_to_ptr.hbm [resolvable:$true] %s48_s29 }
   0x7   :  { %s3530_s14 = scalar_lea.hbm %s4571_s9, %s3069_s23  ;;  %s3239_s15 = sshra.s32 %s49_s29, 4  ;;  %s3240_s15 = int_to_ptr.hbm [resolvable:$true] %s3239_s15 }
   0x8   :  { %s3241_s16 = scalar_lea.hbm %s3240_s15, 256  ;;  %s3243_s19 = scalar_lea.hbm %s4565_s3, 768 }
   0x9   :  { %p3242_p0 = scmp.ne.s32.totalorder %s3240_s15, %s3241_s16  ;;  %p3244_p1 = scmp.lt.s32.totalorder %s3240_s15, %s4565_s3 }
   0xa   :  { %p3245_p2 = scmp.lt.s32.totalorder %s3243_s19, %s3241_s16 }
   0xc   :  { %p3246_p3 = por %p3245_p2, %p3244_p1 }
   0xe   :  { %p3247_p4 = pnand %p3246_p3, %p3242_p0 }
  0x10   :  { %3250 = shalt.err (!%p3247_p4)
}
  0x11   :  { %s3444_s22 = smov 128   ;;  %s3445_s24 = smov 8  }
  0x12   :  { %56 = dma.hbm_to_vmem [thread:$0]  %s49_s29, 4096, %s51_s28, [#allocation8], %s3444_s22, %s3444_s22, %s3445_s24  }
  0x13   :  { %s99_s26 = sshll.u32 %s4570_s8, 4  ;;  %s3446_s27 = smov [#allocation10]   ;;  %s100_s26 = int_to_ptr.hbm [resolvable:$true] %s99_s26 }
  0x14   :  { %s101_s30 = sshll.u32 %s3446_s27, 4  ;;  %s29_s15 = sshll.u32 %s4563_s1, 4  ;;  %s102_s30 = int_to_ptr.vmem [resolvable:$true] %s101_s30  ;;  %s30_s15 = int_to_ptr.hbm [resolvable:$true] %s29_s15 }
  0x15   :  { %104 = dma.hbm_to_vmem [thread:$0]  %s100_s26, 32, %s102_s30, [#allocation11]  }
  0x16   :  { %s3447_s16 = smov [#allocation4]   ;;  %s3448_s18 = smov 256  }
  0x17   :  { %s31_s17 = sshll.u32 %s3447_s16, 4  ;;  %s3449_s28 = smov 16   ;;  %s32_s17 = int_to_ptr.vmem [resolvable:$true] %s31_s17 }
  0x18   :  { %37 = dma.hbm_to_vmem [thread:$0]  %s30_s15, 8192, %s32_s17, [#allocation5], %s3448_s18, %s3448_s18, %s3449_s28  }
  0x19   :  { %s85_s19 = sshll.u32 %s4569_s7, 4  ;;  %s3450_s20 = smov [#allocation9]   ;;  %s86_s19 = int_to_ptr.hbm [resolvable:$true] %s85_s19 }
  0x1a   :  { %s87_s21 = sshll.u32 %s3450_s20, 4  ;;  %s113_s1 = sshll.u32 %s3530_s14, 4  ;;  %s88_s21 = int_to_ptr.vmem [resolvable:$true] %s87_s21  ;;  %s114_s1 = int_to_ptr.hbm [resolvable:$true] %s113_s1 }
  0x1b   :  { %93 = dma.hbm_to_vmem [thread:$0]  %s86_s19, 1024, %s88_s21, [#allocation8], %s3444_s22, %s3444_s22, %s3445_s24  }
  0x1c   :  { %s3451_s23 = smov [#allocation12]   ;;  %s2681_s30 = sshll.u32 %s4562_s0, 1 }
  0x1d   :  { %s115_s25 = sshll.u32 %s3451_s23, 4  ;;  %s128_s7 = scalar_lea.hbm %s4572_s10, %s2681_s30  ;;  %s116_s25 = int_to_ptr.vmem [resolvable:$true] %s115_s25 }
  0x1e   :  { %s3335_s15 = sshra.s32 %s114_s1, 4  ;;  %s3339_s8 = scalar_lea.hbm %s4571_s9, 768  ;;  %s3336_s15 = int_to_ptr.hbm [resolvable:$true] %s3335_s15 }
  0x1f   :  { %s3337_s16 = scalar_lea.hbm %s3336_s15, 256  ;;  %p3340_p6 = scmp.lt.s32.totalorder %s3336_s15, %s4571_s9 }
  0x20   :  { %p3338_p5 = scmp.ne.s32.totalorder %s3336_s15, %s3337_s16  ;;  %p3341_p7 = scmp.lt.s32.totalorder %s3339_s8, %s3337_s16 }
  0x22   :  { %p3342_p8 = por %p3341_p7, %p3340_p6 }
  0x24   :  { %p3343_p9 = pnand %p3342_p8, %p3338_p5 }
  0x26   :  { %3346 = shalt.err (!%p3343_p9)
}
  0x27   :  { %121 = dma.hbm_to_vmem [thread:$0]  %s114_s1, 4096, %s116_s25, [#allocation11], %s3444_s22, %s3444_s22, %s3445_s24  }
  0x28   :  { %s130_s20 = sshll.u32 %s128_s7, 4  ;;  %s3452_s21 = smov [#allocation13]   ;;  %s131_s20 = int_to_ptr.hbm [resolvable:$true] %s130_s20 }
  0x29   :  { %s132_s23 = sshll.u32 %s3452_s21, 4  ;;  %s3359_s26 = sshra.s32 %s131_s20, 4  ;;  %s133_s23 = int_to_ptr.vmem [resolvable:$true] %s132_s23  ;;  %s3360_s26 = int_to_ptr.hbm [resolvable:$true] %s3359_s26 }
  0x2a   :  { %s3361_s27 = scalar_lea.hbm %s3360_s26, 2  ;;  %s3363_s9 = scalar_lea.hbm %s4572_s10, 6 }
  0x2b   :  { %p3362_p10 = scmp.ne.s32.totalorder %s3360_s26, %s3361_s27  ;;  %p3364_p11 = scmp.lt.s32.totalorder %s3360_s26, %s4572_s10 }
  0x2c   :  { %p3365_p12 = scmp.lt.s32.totalorder %s3363_s9, %s3361_s27 }
  0x2e   :  { %p3366_p13 = por %p3365_p12, %p3364_p11 }
  0x30   :  { %p3367_p0 = pnand %p3366_p13, %p3362_p10 }
  0x32   :  { %3370 = shalt.err (!%p3367_p0)
}
  0x33   :  { %135 = dma.hbm_to_vmem [thread:$0]  %s131_s20, 32, %s133_s23, [#allocation14]  }
  0x34   :  { %3431 = dma.done.wait [#allocation5], 8192  }
  0x35   :  { %3432 = vsyncadd [#allocation5], 4294959104 }
  0x36   :  { %3433 = dma.done.wait [#allocation8], 5120  }
  0x37   :  { %3434 = vsyncadd [#allocation8], 4294962176 }
  0x38   :  { %3435 = dma.done.wait [#allocation11], 4128  }
  0x39   :  { %3436 = vsyncadd [#allocation11], 4294963168 }
  0x3a   :  { %3437 = dma.done.wait [#allocation14], 32  }
  0x3b   :  { %3438 = vsyncadd [#allocation14], 4294967264  ;;  %v2743_v0 = vld [vmem:[#allocation7 + $0x70] sm:$0xf]  ;;  %v3087_v1 = vld [vmem:[#allocation7 + $0x74] sm:$0xf0] }
  0x3c   :  { %v2807_v2 = vld [vmem:[#allocation7 + $0xf0] sm:$0xf]  ;;  %v2744_v3 = vor.u32 %v3087_v1, %v2743_v0  ;;  %v3103_v4 = vld [vmem:[#allocation7 + $0xf4] sm:$0xf0]  ;;  %v2735_v5 = vld [vmem:[#allocation7 + $0x60] sm:$0xf] }
  0x3d   :  { %v3085_v6 = vld [vmem:[#allocation7 + $0x64] sm:$0xf0]  ;;  %v2808_v7 = vor.u32 %v3103_v4, %v2807_v2  ;;  %v2799_v8 = vld [vmem:[#allocation7 + $0xe0] sm:$0xf]  ;;  %v2727_v12 = vld [vmem:[#allocation7 + $0x50] sm:$0xf] }
  0x3e   :  { %v3101_v9 = vld [vmem:[#allocation7 + $0xe4] sm:$0xf0]  ;;  %491 = vmatpush.bf16.msra.mxu0 %v2744_v3  ;;  %v2736_v10 = vor.u32 %v3085_v6, %v2735_v5  ;;  %v3083_v13 = vld [vmem:[#allocation7 + $0x54] sm:$0xf0]  ;;  %v2791_v14 = vld [vmem:[#allocation7 + $0xd0] sm:$0xf] }
  0x3f   :  { %580 = vmatpush.bf16.msra.mxu1 %v2808_v7  ;;  %v2800_v11 = vor.u32 %v3101_v9, %v2799_v8  ;;  %v3099_v15 = vld [vmem:[#allocation7 + $0xd4] sm:$0xf0]  ;;  %p177_p1 = scmp.lt.s32.totalorder %s4562_s0, 2  ;;  %v2728_v16 = vor.u32 %v3083_v13, %v2727_v12  ;;  %v2719_v18 = vld [vmem:[#allocation7 + $0x40] sm:$0xf]  ;;  %v199_v48 = vld [vmem:[#allocation4 + $0x10] sm:$0xff] }
  0x40   :  { %v2792_v17 = vor.u32 %v3099_v15, %v2791_v14  ;;  %v3081_v19 = vld [vmem:[#allocation7 + $0x44] sm:$0xf0]  ;;  %v2783_v20 = vld [vmem:[#allocation7 + $0xc0] sm:$0xf]  ;;  %v2711_v24 = vld [vmem:[#allocation7 + $0x30] sm:$0xf] }
  0x41   :  { %v3097_v21 = vld [vmem:[#allocation7 + $0xc4] sm:$0xf0]  ;;  %s4576_s0 = smov (!%p177_p1, %s4562_s0), 2  ;;  %v2720_v22 = vor.u32 %v3081_v19, %v2719_v18  ;;  %v3079_v25 = vld [vmem:[#allocation7 + $0x34] sm:$0xf0]  ;;  %v197_v47 = vld [vmem:[#allocation4] sm:$0xff] }
  0x42   :  { %492 = vmatpush.bf16.msra.mxu0 %v2736_v10  ;;  %s3590_s17 = scalar_lea.vmem %s4568_s6, %s4576_s0  ;;  %v2784_v23 = vor.u32 %v3097_v21, %v2783_v20  ;;  %v2775_v26 = vld [vmem:[#allocation7 + $0xb0] sm:$0xf]  ;;  %v3095_v27 = vld [vmem:[#allocation7 + $0xb4] sm:$0xf0]  ;;  %v2712_v28 = vor.u32 %v3079_v25, %v2711_v24  ;;  %v2703_v30 = vld [vmem:[#allocation7 + $0x20] sm:$0xf]  ;;  %v3600_v54 = vpack.c.bf16 %v199_v48, %v197_v47 }
  0x43   :  { %581 = vmatpush.bf16.msra.mxu1 %v2800_v11  ;;  %v2776_v29 = vor.u32 %v3095_v27, %v2775_v26  ;;  %v3077_v31 = vld [vmem:[#allocation7 + $0x24] sm:$0xf0]  ;;  %v2767_v32 = vld [vmem:[#allocation7 + $0xa0] sm:$0xf]  ;;  %v2695_v36 = vld [vmem:[#allocation7 + $0x10] sm:$0xf] }
  0x44   :  { %v3093_v33 = vld [vmem:[#allocation7 + $0xa4] sm:$0xf0]  ;;  %v2704_v34 = vor.u32 %v3077_v31, %v2703_v30  ;;  %v3075_v37 = vld [vmem:[#allocation7 + $0x14] sm:$0xf0]  ;;  %v2759_v38 = vld [vmem:[#allocation7 + $0x90] sm:$0xf] }
  0x45   :  { %v2768_v35 = vor.u32 %v3093_v33, %v2767_v32  ;;  %v3091_v39 = vld [vmem:[#allocation7 + $0x94] sm:$0xf0]  ;;  %s3071_s6 = sshll.u32 %s4576_s0, 7  ;;  %v2696_v40 = vor.u32 %v3075_v37, %v2695_v36  ;;  %v2687_v42 = vld [vmem:[#allocation7] sm:$0xf]  ;;  %v198_v50 = vld [vmem:[#allocation4 + $0x8] sm:$0xff] }
  0x46   :  { %493 = vmatpush.bf16.msra.mxu0 %v2728_v16  ;;  %v2760_v41 = vor.u32 %v3091_v39, %v2759_v38  ;;  %v3073_v43 = vld [vmem:[#allocation7 + $0x4] sm:$0xf0]  ;;  %v2751_v44 = vld [vmem:[#allocation7 + $0x80] sm:$0xf]  ;;  %s3596_s19 = scalar_lea.vmem %s4567_s5, %s3071_s6  ;;  %v200_v51 = vld [vmem:[#allocation4 + $0x18] sm:$0xff]  ;;  %s2682_s5 = sshll.u32 %s4576_s0, 1 }
  0x47   :  { %582 = vmatpush.bf16.msra.mxu1 %v2792_v17  ;;  %v3089_v45 = vld [vmem:[#allocation7 + $0x84] sm:$0xf0]  ;;  %v2688_v46 = vor.u32 %v3073_v43, %v2687_v42  ;;  %v3111_v52 = vld [vmem:[%s3596_s19 + $0x38] sm:$0xff]  ;;  %v3602_v55 = vpack.c.bf16 %v200_v51, %v198_v50  ;;  %v3110_v56 = vld [vmem:[%s3596_s19 + $0x30] sm:$0xff]  ;;  %s180_s23 = scalar_lea.vmem %s4566_s4, %s2682_s5  ;;  %s3453_s0 = smov 64   ;;  %vm1643_vm0 = vcmask 523264  }
  0x48   :  { %v2752_v49 = vor.u32 %v3089_v45, %v2751_v44  ;;  %v3119_v53 = vld [vmem:[%s3596_s19 + $0x78] sm:$0xff]  ;;  %v3118_v57 = vld [vmem:[%s3596_s19 + $0x70] sm:$0xff]  ;;  %v201_v58 = vld [vmem:[#allocation4 + $0x20] sm:$0xff]  ;;  %s2635_s20 = sshll.u32 %s4574_s12, 4  ;;  %s3455_s12 = smov [#allocation15]   ;;  %s2636_s20 = int_to_ptr.hbm [resolvable:$true] %s2635_s20 }
  0x49   :  { %v203_v59 = vld [vmem:[#allocation4 + $0x30] sm:$0xff]  ;;  %v202_v60 = vld [vmem:[#allocation4 + $0x28] sm:$0xff]  ;;  %v204_v61 = vld [vmem:[#allocation4 + $0x38] sm:$0xff] }
  0x4a   :  { %494 = vmatpush.bf16.msra.mxu0 %v2720_v22  ;;  %v3608_v62 = vpack.c.bf16 %v203_v59, %v201_v58  ;;  %v3610_v63 = vpack.c.bf16 %v204_v61, %v202_v60  ;;  %v205_v0 = vld [vmem:[#allocation4 + $0x40] sm:$0xff]  ;;  %v207_v1 = vld [vmem:[#allocation4 + $0x50] sm:$0xff]  ;;  %v206_v2 = vld [vmem:[#allocation4 + $0x48] sm:$0xff] }
  0x4b   :  { %583 = vmatpush.bf16.msra.mxu1 %v2784_v23  ;;  %v208_v3 = vld [vmem:[#allocation4 + $0x58] sm:$0xff]  ;;  %v3614_v4 = vpack.c.bf16 %v207_v1, %v205_v0  ;;  %v3109_v6 = vld [vmem:[%s3596_s19 + $0x28] sm:$0xff]  ;;  %v3086_v8 = vld [vmem:[#allocation7 + $0x74] sm:$0xf] }
  0x4c   :  { %v3616_v5 = vpack.c.bf16 %v208_v3, %v206_v2  ;;  %v3117_v7 = vld [vmem:[%s3596_s19 + $0x68] sm:$0xff]  ;;  %v2745_v9 = vld [vmem:[#allocation7 + $0x78] sm:$0xf0]  ;;  %v3102_v10 = vld [vmem:[#allocation7 + $0xf4] sm:$0xf] }
  0x4d   :  { %v2809_v11 = vld [vmem:[#allocation7 + $0xf8] sm:$0xf0]  ;;  %v2748_v12 = vor.u32 %v3086_v8, %v2745_v9  ;;  %v3084_v14 = vld [vmem:[#allocation7 + $0x64] sm:$0xf]  ;;  %v2737_v15 = vld [vmem:[#allocation7 + $0x68] sm:$0xf0] }
  0x4e   :  { %495 = vmatpush.bf16.msra.mxu0 %v2712_v28  ;;  %v2812_v13 = vor.u32 %v3102_v10, %v2809_v11  ;;  %v3100_v16 = vld [vmem:[#allocation7 + $0xe4] sm:$0xf]  ;;  %v2801_v17 = vld [vmem:[#allocation7 + $0xe8] sm:$0xf0]  ;;  %v2740_v18 = vor.u32 %v3084_v14, %v2737_v15  ;;  %v3082_v20 = vld [vmem:[#allocation7 + $0x54] sm:$0xf] }
  0x4f   :  { %584 = vmatpush.bf16.msra.mxu1 %v2776_v29  ;;  %669 = vmatpush.bf16.msra.mxu2 %v2748_v12  ;;  %v2804_v19 = vor.u32 %v3100_v16, %v2801_v17  ;;  %v2729_v21 = vld [vmem:[#allocation7 + $0x58] sm:$0xf0]  ;;  %v209_v22 = vld [vmem:[#allocation4 + $0x60] sm:$0xff]  ;;  %v211_v23 = vld [vmem:[#allocation4 + $0x70] sm:$0xff] }
  0x50   :  { %758 = vmatpush.bf16.msra.mxu3 %v2812_v13  ;;  %v2732_v24 = vor.u32 %v3082_v20, %v2729_v21  ;;  %v210_v25 = vld [vmem:[#allocation4 + $0x68] sm:$0xff]  ;;  %v212_v26 = vld [vmem:[#allocation4 + $0x78] sm:$0xff]  ;;  %v3622_v27 = vpack.c.bf16 %v211_v23, %v209_v22  ;;  %v3098_v29 = vld [vmem:[#allocation7 + $0xd4] sm:$0xf] }
  0x51   :  { %v3624_v28 = vpack.c.bf16 %v212_v26, %v210_v25  ;;  %v2793_v30 = vld [vmem:[#allocation7 + $0xd8] sm:$0xf0]  ;;  %v3080_v32 = vld [vmem:[#allocation7 + $0x44] sm:$0xf]  ;;  %v2721_v33 = vld [vmem:[#allocation7 + $0x48] sm:$0xf0] }
  0x52   :  { %496 = vmatpush.bf16.msra.mxu0 %v2704_v34  ;;  %v2796_v31 = vor.u32 %v3098_v29, %v2793_v30  ;;  %v3096_v34 = vld [vmem:[#allocation7 + $0xc4] sm:$0xf]  ;;  %v2785_v36 = vld [vmem:[#allocation7 + $0xc8] sm:$0xf0]  ;;  %v3078_v37 = vld [vmem:[#allocation7 + $0x34] sm:$0xf] }
  0x53   :  { %585 = vmatpush.bf16.msra.mxu1 %v2768_v35  ;;  %670 = vmatpush.bf16.msra.mxu2 %v2740_v18  ;;  %v2724_v35 = vor.u32 %v3080_v32, %v2721_v33  ;;  %v2713_v38 = vld [vmem:[#allocation7 + $0x38] sm:$0xf0]  ;;  %v2788_v39 = vor.u32 %v3096_v34, %v2785_v36  ;;  %v3076_v43 = vld [vmem:[#allocation7 + $0x24] sm:$0xf]  ;;  %v2705_v44 = vld [vmem:[#allocation7 + $0x28] sm:$0xf0] }
  0x54   :  { %759 = vmatpush.bf16.msra.mxu3 %v2804_v19  ;;  %v2716_v42 = vor.u32 %v3078_v37, %v2713_v38  ;;  %v2769_v47 = vld [vmem:[#allocation7 + $0xa8] sm:$0xf0]  ;;  %v213_v48 = vld [vmem:[#allocation4 + $0x80] sm:$0xff]  ;;  %v215_v50 = vld [vmem:[#allocation4 + $0x90] sm:$0xff] }
  0x55   :  { %v3074_v51 = vld [vmem:[#allocation7 + $0x14] sm:$0xf]  ;;  %v3628_v58 = vpack.c.bf16 %v215_v50, %v213_v48  ;;  %v2761_v0 = vld [vmem:[#allocation7 + $0x98] sm:$0xf0]  ;;  %v3108_v2 = vld [vmem:[%s3596_s19 + $0x20] sm:$0xff] }
  0x56   :  { %497 = vmatpush.bf16.msra.mxu0 %v2696_v40  ;;  %v3094_v40 = vld [vmem:[#allocation7 + $0xb4] sm:$0xf]  ;;  %v3116_v3 = vld [vmem:[%s3596_s19 + $0x60] sm:$0xff]  ;;  %v2753_v9 = vld [vmem:[#allocation7 + $0x88] sm:$0xf0] }
  0x57   :  { %586 = vmatpush.bf16.msra.mxu1 %v2760_v41  ;;  %671 = vmatpush.bf16.msra.mxu2 %v2732_v24  ;;  %v2777_v41 = vld [vmem:[#allocation7 + $0xb8] sm:$0xf0]  ;;  %v3090_v61 = vld [vmem:[#allocation7 + $0x94] sm:$0xf]  ;;  %v3088_v8 = vld [vmem:[#allocation7 + $0x84] sm:$0xf] }
  0x58   :  { %760 = vmatpush.bf16.msra.mxu3 %v2796_v31  ;;  %v2780_v45 = vor.u32 %v3094_v40, %v2777_v41  ;;  %v2764_v1 = vor.u32 %v3090_v61, %v2761_v0  ;;  %v2756_v11 = vor.u32 %v3088_v8, %v2753_v9  ;;  %v217_v12 = vld [vmem:[#allocation4 + $0xa0] sm:$0xff]  ;;  %v219_v13 = vld [vmem:[#allocation4 + $0xb0] sm:$0xff]  ;;  %v218_v14 = vld [vmem:[#allocation4 + $0xa8] sm:$0xff] }
  0x59   :  { %v220_v15 = vld [vmem:[#allocation4 + $0xb8] sm:$0xff]  ;;  %v3638_v16 = vpack.c.bf16 %v219_v13, %v217_v12  ;;  %v221_v18 = vld [vmem:[#allocation4 + $0xc0] sm:$0xff]  ;;  %v222_v19 = vld [vmem:[#allocation4 + $0xc8] sm:$0xff] }
  0x5a   :  { %498 = vmatpush.bf16.msra.mxu0 %v2688_v46  ;;  %v3092_v46 = vld [vmem:[#allocation7 + $0xa4] sm:$0xf]  ;;  %v3640_v17 = vpack.c.bf16 %v220_v15, %v218_v14  ;;  %v3107_v22 = vld [vmem:[%s3596_s19 + $0x18] sm:$0xff]  ;;  %v227_v24 = vld [vmem:[#allocation4 + $0xf0] sm:$0xff] }
  0x5b   :  { %587 = vmatpush.bf16.msra.mxu1 %v2752_v49  ;;  %672 = vmatpush.bf16.msra.mxu2 %v2724_v35  ;;  %v2708_v49 = vor.u32 %v3076_v43, %v2705_v44  ;;  %v3115_v23 = vld [vmem:[%s3596_s19 + $0x58] sm:$0xff]  ;;  %v231_v30 = vld [vmem:[#allocation4 + $0x110] sm:$0xff]  ;;  %v230_v32 = vld [vmem:[#allocation4 + $0x108] sm:$0xff] }
  0x5c   :  { %761 = vmatpush.bf16.msra.mxu3 %v2788_v39  ;;  %v228_v25 = vld [vmem:[#allocation4 + $0xf8] sm:$0xff]  ;;  %v233_v44 = vld [vmem:[#allocation4 + $0x120] sm:$0xff]  ;;  %v234_v48 = vld [vmem:[#allocation4 + $0x128] sm:$0xff] }
  0x5d   :  { %499 = vmatmul.bf16.vlgmr.msra.gmra.mxu0 %v3600_v54  ;;  %v232_v33 = vld [vmem:[#allocation4 + $0x118] sm:$0xff] }
  0x5e   :  { %1075 = vmatpush.bf16.msrb.mxu0 %v3111_v52  ;;  %588 = vmatmul.bf16.vlgmr.msra.gmra.mxu1 %v3602_v55  ;;  %v2697_v52 = vld [vmem:[#allocation7 + $0x18] sm:$0xf0]  ;;  %v3675_v36 = vpack.c.bf16 %v232_v33, %v230_v32 }
  0x5f   :  { %1164 = vmatpush.bf16.msrb.mxu1 %v3119_v53  ;;  %673 = vmatpush.bf16.msra.mxu2 %v2716_v42  ;;  %v214_v53 = vld [vmem:[#allocation4 + $0x88] sm:$0xff]  ;;  %v2700_v59 = vor.u32 %v3074_v51, %v2697_v52  ;;  %v240_v8 = vld [vmem:[#allocation4 + $0x158] sm:$0xff] }
  0x60   :  { %762 = vmatpush.bf16.msra.mxu3 %v2780_v45  ;;  %v235_v45 = vld [vmem:[#allocation4 + $0x130] sm:$0xff] }
  0x61   :  { %v3687_v51 = vpack.c.bf16 %v235_v45, %v233_v44  ;;  %v248_v44 = vld [vmem:[#allocation4 + $0x198] sm:$0xff] }
  0x62   :  { %1076 = vmatpush.bf16.msrb.mxu0 %v3110_v56  ;;  %v216_v56 = vld [vmem:[#allocation4 + $0x98] sm:$0xff] }
  0x63   :  { %1165 = vmatpush.bf16.msrb.mxu1 %v3118_v57  ;;  %v2772_v57 = vor.u32 %v3092_v46, %v2769_v47  ;;  %674 = vmatpush.bf16.msra.mxu2 %v2708_v49  ;;  %v3630_v60 = vpack.c.bf16 %v216_v56, %v214_v53  ;;  %v236_v49 = vld [vmem:[#allocation4 + $0x138] sm:$0xff] }
  0x64   :  { %v3689_v53 = vpack.c.bf16 %v236_v49, %v234_v48 }
  0x65   :  { %763 = vmatpush.bf16.msra.mxu3 %v2772_v57 }
  0x66   :  { %1077 = vmatpush.bf16.msrb.mxu0 %v3109_v6  ;;  %v3072_v6 = vld [vmem:[#allocation7 + $0x4] sm:$0xf] }
  0x67   :  { %1166 = vmatpush.bf16.msrb.mxu1 %v3117_v7  ;;  %675 = vmatpush.bf16.msra.mxu2 %v2700_v59  ;;  %v2689_v7 = vld [vmem:[#allocation7 + $0x8] sm:$0xf0] }
  0x68   :  { %v2692_v10 = vor.u32 %v3072_v6, %v2689_v7  ;;  %v238_v7 = vld [vmem:[#allocation4 + $0x148] sm:$0xff] }
  0x69   :  { %764 = vmatpush.bf16.msra.mxu3 %v2764_v1  ;;  %v237_v1 = vld [vmem:[#allocation4 + $0x140] sm:$0xff]  ;;  %v3701_v12 = vpack.c.bf16 %v240_v8, %v238_v7 }
  0x6a   :  { %1078 = vmatpush.bf16.msrb.mxu0 %v3108_v2  ;;  %v239_v2 = vld [vmem:[#allocation4 + $0x150] sm:$0xff] }
  0x6b   :  { %1167 = vmatpush.bf16.msrb.mxu1 %v3116_v3  ;;  %676 = vmatpush.bf16.msra.mxu2 %v2692_v10  ;;  %v3697_v9 = vpack.c.bf16 %v239_v2, %v237_v1 }
  0x6d   :  { %504 = vmatmul.bf16.gmra.mxu0 %v3608_v62  ;;  %765 = vmatpush.bf16.msra.mxu3 %v2756_v11 }
  0x6e   :  { %593 = vmatmul.bf16.gmra.mxu1 %v3610_v63  ;;  %677 = vmatmul.bf16.vlgmr.msra.gmra.mxu2 %v3600_v54  ;;  %v223_v54 = vld [vmem:[#allocation4 + $0xd0] sm:$0xff] }
  0x6f   :  { %v3646_v20 = vpack.c.bf16 %v223_v54, %v221_v18  ;;  %1079 = vmatpush.bf16.msrb.mxu0 %v3107_v22  ;;  %1168 = vmatpush.bf16.msrb.mxu1 %v3115_v23  ;;  %v241_v22 = vld [vmem:[#allocation4 + $0x160] sm:$0xff]  ;;  %v243_v23 = vld [vmem:[#allocation4 + $0x170] sm:$0xff] }
  0x70   :  { %766 = vmatmul.bf16.vlgmr.msra.gmra.mxu3 %v3602_v55  ;;  %v224_v55 = vld [vmem:[#allocation4 + $0xd8] sm:$0xff] }
  0x71   :  { %v3648_v21 = vpack.c.bf16 %v224_v55, %v222_v19 }
  0x7d   :  { %509 = vmatmul.bf16.gmra.mxu0 %v3614_v4 }
  0x7e   :  { %598 = vmatmul.bf16.gmra.mxu1 %v3616_v5  ;;  %682 = vmatmul.bf16.gmra.mxu2 %v3608_v62  ;;  %v225_v62 = vld [vmem:[#allocation4 + $0xe0] sm:$0xff] }
  0x7f   :  { %v3656_v26 = vpack.c.bf16 %v227_v24, %v225_v62 }
  0x80   :  { %771 = vmatmul.bf16.gmra.mxu3 %v3610_v63  ;;  %v226_v63 = vld [vmem:[#allocation4 + $0xe8] sm:$0xff] }
  0x81   :  { %v3658_v29 = vpack.c.bf16 %v228_v25, %v226_v63  ;;  %v242_v63 = vld [vmem:[#allocation4 + $0x168] sm:$0xff]  ;;  %v244_v25 = vld [vmem:[#allocation4 + $0x178] sm:$0xff] }
  0x82   :  { %v3715_v33 = vpack.c.bf16 %v244_v25, %v242_v63  ;;  %v254_v25 = vld [vmem:[#allocation4 + $0x1c8] sm:$0xff] }
  0x8d   :  { %514 = vmatmul.bf16.gmra.mxu0 %v3622_v27 }
  0x8e   :  { %603 = vmatmul.bf16.gmra.mxu1 %v3624_v28  ;;  %687 = vmatmul.bf16.gmra.mxu2 %v3614_v4  ;;  %v3666_v4 = vld [vmem:[%s180_s23] sm:$0x3]  ;;  %s2622_s23 = sshll.u32 %s4573_s11, 4  ;;  %s2623_s23 = int_to_ptr.hbm [resolvable:$true] %s2622_s23 }
  0x8f   :  { %v3671_v31 = vperm.slane %v3666_v4, 0 }
  0x90   :  { %776 = vmatmul.bf16.gmra.mxu3 %v3616_v5  ;;  %v229_v5 = vld [vmem:[#allocation4 + $0x100] sm:$0xff] }
  0x91   :  { %v3673_v34 = vpack.c.bf16 %v231_v30, %v229_v5  ;;  %v3711_v5 = vpack.c.bf16 %v243_v23, %v241_v22  ;;  %v253_v23 = vld [vmem:[#allocation4 + $0x1c0] sm:$0xff] }
  0x9d   :  { %519 = vmatmul.bf16.gmra.mxu0 %v3628_v58 }
  0x9e   :  { %608 = vmatmul.bf16.gmra.mxu1 %v3630_v60  ;;  %692 = vmatmul.bf16.gmra.mxu2 %v3622_v27  ;;  %v3106_v27 = vld [vmem:[%s3596_s19 + $0x10] sm:$0xff] }
  0x9f   :  { %1080 = vmatpush.bf16.msrb.mxu0 %v3106_v27 }
  0xa0   :  { %781 = vmatmul.bf16.gmra.mxu3 %v3624_v28  ;;  %v3114_v28 = vld [vmem:[%s3596_s19 + $0x50] sm:$0xff] }
  0xa1   :  { %1169 = vmatpush.bf16.msrb.mxu1 %v3114_v28  ;;  %v245_v28 = vld [vmem:[#allocation4 + $0x180] sm:$0xff] }
  0xad   :  { %524 = vmatmul.bf16.gmra.mxu0 %v3638_v16 }
  0xae   :  { %613 = vmatmul.bf16.gmra.mxu1 %v3640_v17  ;;  %697 = vmatmul.bf16.gmra.mxu2 %v3628_v58 }
  0xb0   :  { %786 = vmatmul.bf16.gmra.mxu3 %v3630_v60 }
  0xbd   :  { %529 = vmatmul.bf16.gmra.mxu0 %v3646_v20 }
  0xbe   :  { %618 = vmatmul.bf16.gmra.mxu1 %v3648_v21  ;;  %702 = vmatmul.bf16.gmra.mxu2 %v3638_v16  ;;  %v3105_v16 = vld [vmem:[%s3596_s19 + $0x8] sm:$0xff] }
  0xbf   :  { %1081 = vmatpush.bf16.msrb.mxu0 %v3105_v16 }
  0xc0   :  { %791 = vmatmul.bf16.gmra.mxu3 %v3640_v17  ;;  %v3113_v17 = vld [vmem:[%s3596_s19 + $0x48] sm:$0xff] }
  0xc1   :  { %1170 = vmatpush.bf16.msrb.mxu1 %v3113_v17 }
  0xcd   :  { %534 = vmatmul.bf16.gmra.mxu0 %v3656_v26 }
  0xce   :  { %623 = vmatmul.bf16.gmra.mxu1 %v3658_v29  ;;  %707 = vmatmul.bf16.gmra.mxu2 %v3646_v20 }
  0xd0   :  { %796 = vmatmul.bf16.gmra.mxu3 %v3648_v21 }
  0xda   :  { %v500_v35 = vpop.f32.mrf.mxu0 }
  0xdb   :  { %v501_v37 = vadd.f32 %v500_v35, %v3671_v31  ;;  %v589_v38 = vpop.f32.mrf.mxu1 }
  0xdd   :  { %v590_v39 = vadd.f32 %v589_v38, %v501_v37  ;;  %539 = vmatmul.bf16.gmra.mxu0 %v3673_v34 }
  0xde   :  { %628 = vmatmul.bf16.gmra.mxu1 %v3675_v36  ;;  %712 = vmatmul.bf16.gmra.mxu2 %v3656_v26 }
  0xdf   :  { %v847_v46 = vmax.f32 %v590_v39, 0.0 }
  0xe0   :  { %801 = vmatmul.bf16.gmra.mxu3 %v3658_v29  ;;  %v3104_v29 = vld [vmem:[%s3596_s19] sm:$0xff] }
  0xe1   :  { %1082 = vmatpush.bf16.msrb.mxu0 %v3104_v29  ;;  %v258_v29 = vld [vmem:[#allocation4 + $0x1e8] sm:$0xff] }
  0xe2   :  { %v502_v40 = vpop.f32.mrf.mxu0 }
  0xe3   :  { %v503_v41 = vadd.f32 %v502_v40, %v3671_v31  ;;  %v591_v42 = vpop.f32.mrf.mxu1  ;;  %v247_v40 = vld [vmem:[#allocation4 + $0x190] sm:$0xff] }
  0xe4   :  { %v3723_v45 = vpack.c.bf16 %v247_v40, %v245_v28 }
  0xe5   :  { %v592_v43 = vadd.f32 %v591_v42, %v503_v41 }
  0xe7   :  { %v849_v47 = vmax.f32 %v592_v43, 0.0  ;;  %v246_v43 = vld [vmem:[#allocation4 + $0x188] sm:$0xff] }
  0xe8   :  { %v3727_v48 = vpack.c.bf16 %v248_v44, %v246_v43 }
  0xe9   :  { %v3685_v50 = vpack.c.bf16 %v849_v47, %v847_v46 }
  0xea   :  { %v505_v52 = vpop.f32.mrf.mxu0 }
  0xeb   :  { %v506_v56 = vadd.f32 %v505_v52, %v3671_v31  ;;  %v594_v57 = vpop.f32.mrf.mxu1 }
  0xed   :  { %v595_v59 = vadd.f32 %v594_v57, %v506_v56  ;;  %544 = vmatmul.bf16.gmra.mxu0 %v3687_v51  ;;  %v3112_v56 = vld [vmem:[%s3596_s19 + $0x40] sm:$0xff] }
  0xee   :  { %633 = vmatmul.bf16.gmra.mxu1 %v3689_v53  ;;  %717 = vmatmul.bf16.gmra.mxu2 %v3673_v34 }
  0xef   :  { %v851_v3 = vmax.f32 %v595_v59, 0.0  ;;  %1171 = vmatpush.bf16.msrb.mxu1 %v3112_v56  ;;  %v260_v56 = vld [vmem:[#allocation4 + $0x1f8] sm:$0xff] }
  0xf0   :  { %806 = vmatmul.bf16.gmra.mxu3 %v3675_v36 }
  0xf1   :  { %v3737_v7 = vpop.f32.mrf.mxu2 }
  0xf2   :  { %v507_v58 = vpop.f32.mrf.mxu0 }
  0xf3   :  { %v508_v60 = vadd.f32 %v507_v58, %v3671_v31  ;;  %v596_v61 = vpop.f32.mrf.mxu1 }
  0xf5   :  { %v597_v0 = vadd.f32 %v596_v61, %v508_v60  ;;  %v249_v61 = vld [vmem:[#allocation4 + $0x1a0] sm:$0xff] }
  0xf7   :  { %v853_v6 = vmax.f32 %v597_v0, 0.0  ;;  %v251_v0 = vld [vmem:[#allocation4 + $0x1b0] sm:$0xff] }
  0xf8   :  { %v3739_v8 = vpack.c.bf16 %v251_v0, %v249_v61  ;;  %v3781_v0 = vpack.c.bf16 %v260_v56, %v258_v29 }
  0xf9   :  { %v3699_v10 = vpack.c.bf16 %v853_v6, %v851_v3  ;;  %v250_v3 = vld [vmem:[#allocation4 + $0x1a8] sm:$0xff]  ;;  %v252_v6 = vld [vmem:[#allocation4 + $0x1b8] sm:$0xff]  ;;  %v680_v36 = vpop.f32.mrf.mxu2 }
  0xfa   :  { %v510_v11 = vpop.f32.mrf.mxu0 }
  0xfb   :  { %v511_v13 = vadd.f32 %v510_v11, %v3671_v31  ;;  %v599_v14 = vpop.f32.mrf.mxu1  ;;  %v3741_v11 = vpop.f32.mrf.mxu3 }
  0xfd   :  { %v600_v15 = vadd.f32 %v599_v14, %v511_v13  ;;  %549 = vmatmul.bf16.gmra.mxu0 %v3697_v9 }
  0xfe   :  { %638 = vmatmul.bf16.gmra.mxu1 %v3701_v12  ;;  %722 = vmatmul.bf16.gmra.mxu2 %v3687_v51 }
  0xff   :  { %v855_v62 = vmax.f32 %v600_v15, 0.0  ;;  %v3745_v15 = vpack.c.bf16 %v252_v6, %v250_v3  ;;  %v2903_v3 = vld [vmem:[#allocation9 + $0x30] sm:$0xf]  ;;  %v3127_v6 = vld [vmem:[#allocation9 + $0x34] sm:$0xf0] }
 0x100   :  { %811 = vmatmul.bf16.gmra.mxu3 %v3689_v53 }
 0x102   :  { %v512_v18 = vpop.f32.mrf.mxu0 }
 0x103   :  { %v513_v54 = vadd.f32 %v512_v18, %v3671_v31  ;;  %v601_v19 = vpop.f32.mrf.mxu1  ;;  %v3750_v18 = vpop.f32.mrf.mxu3 }
 0x105   :  { %v602_v55 = vadd.f32 %v601_v19, %v513_v54 }
 0x107   :  { %v857_v24 = vmax.f32 %v602_v55, 0.0 }
 0x109   :  { %v3713_v30 = vpack.c.bf16 %v857_v24, %v855_v62  ;;  %v255_v62 = vld [vmem:[#allocation4 + $0x1d0] sm:$0xff] }
 0x10a   :  { %v515_v32 = vpop.f32.mrf.mxu0 }
 0x10b   :  { %v516_v35 = vadd.f32 %v515_v32, %v3671_v31  ;;  %v604_v37 = vpop.f32.mrf.mxu1  ;;  %v256_v32 = vld [vmem:[#allocation4 + $0x1d8] sm:$0xff] }
 0x10d   :  { %v605_v38 = vadd.f32 %v604_v37, %v516_v35  ;;  %554 = vmatmul.bf16.gmra.mxu0 %v3711_v5  ;;  %v3755_v35 = vpop.f32.mrf.mxu2  ;;  %v3757_v37 = vpack.c.bf16 %v255_v62, %v253_v23 }
 0x10e   :  { %643 = vmatmul.bf16.gmra.mxu1 %v3715_v33  ;;  %727 = vmatmul.bf16.gmra.mxu2 %v3697_v9 }
 0x10f   :  { %v859_v41 = vmax.f32 %v605_v38, 0.0  ;;  %v3759_v38 = vpop.f32.mrf.mxu3 }
 0x110   :  { %816 = vmatmul.bf16.gmra.mxu3 %v3701_v12  ;;  %v3785_v12 = vperm.slane %v3666_v4, 1 }
 0x112   :  { %v517_v20 = vpop.f32.mrf.mxu0 }
 0x113   :  { %v518_v21 = vadd.f32 %v517_v20, %v3671_v31  ;;  %v606_v39 = vpop.f32.mrf.mxu1 }
 0x115   :  { %v607_v27 = vadd.f32 %v606_v39, %v518_v21  ;;  %v3763_v39 = vpack.c.bf16 %v256_v32, %v254_v25  ;;  %v685_v53 = vpop.f32.mrf.mxu2 }
 0x117   :  { %v861_v42 = vmax.f32 %v607_v27, 0.0  ;;  %v3768_v40 = vpop.f32.mrf.mxu3 }
 0x119   :  { %v3725_v46 = vpack.c.bf16 %v861_v42, %v859_v41 }
 0x11a   :  { %v520_v47 = vpop.f32.mrf.mxu0 }
 0x11b   :  { %v521_v49 = vadd.f32 %v520_v47, %v3671_v31  ;;  %v609_v26 = vpop.f32.mrf.mxu1  ;;  %v257_v47 = vld [vmem:[#allocation4 + $0x1e0] sm:$0xff] }
 0x11d   :  { %v610_v52 = vadd.f32 %v609_v26, %v521_v49  ;;  %559 = vmatmul.bf16.gmra.mxu0 %v3723_v45  ;;  %v259_v49 = vld [vmem:[#allocation4 + $0x1f0] sm:$0xff] }
 0x11e   :  { %648 = vmatmul.bf16.gmra.mxu1 %v3727_v48  ;;  %732 = vmatmul.bf16.gmra.mxu2 %v3711_v5  ;;  %v684_v5 = vadd.f32 %v3755_v35, %v3785_v12 }
 0x11f   :  { %v863_v1 = vmax.f32 %v610_v52, 0.0 }
 0x120   :  { %821 = vmatmul.bf16.gmra.mxu3 %v3715_v33  ;;  %v686_v33 = vadd.f32 %v685_v53, %v3785_v12  ;;  %v773_v29 = vadd.f32 %v3759_v38, %v684_v5 }
 0x122   :  { %v522_v57 = vpop.f32.mrf.mxu0  ;;  %v775_v56 = vadd.f32 %v3768_v40, %v686_v33  ;;  %v852_v35 = vmax.f32 %v773_v29, 0.0 }
 0x123   :  { %v523_v59 = vadd.f32 %v522_v57, %v3671_v31  ;;  %v611_v58 = vpop.f32.mrf.mxu1  ;;  %v3773_v57 = vpop.f32.mrf.mxu2 }
 0x125   :  { %v612_v60 = vadd.f32 %v611_v58, %v523_v59  ;;  %v3775_v59 = vpack.c.bf16 %v259_v49, %v257_v47  ;;  %v3777_v58 = vpop.f32.mrf.mxu3 }
 0x127   :  { %v865_v2 = vmax.f32 %v612_v60, 0.0 }
 0x129   :  { %v3743_v13 = vpack.c.bf16 %v865_v2, %v863_v1 }
 0x12a   :  { %v525_v14 = vpop.f32.mrf.mxu0 }
 0x12b   :  { %v526_v34 = vadd.f32 %v525_v14, %v3671_v31  ;;  %v614_v16 = vpop.f32.mrf.mxu1  ;;  %v679_v14 = vadd.f32 %v3737_v7, %v3785_v12 }
 0x12d   :  { %v615_v17 = vadd.f32 %v614_v16, %v526_v34  ;;  %564 = vmatmul.bf16.gmra.mxu0 %v3739_v8  ;;  %v681_v34 = vadd.f32 %v680_v36, %v3785_v12  ;;  %v2904_v16 = vor.u32 %v3127_v6, %v2903_v3 }
 0x12e   :  { %653 = vmatmul.bf16.gmra.mxu1 %v3745_v15  ;;  %737 = vmatmul.bf16.gmra.mxu2 %v3723_v45  ;;  %v689_v45 = vadd.f32 %v3773_v57, %v3785_v12 }
 0x12f   :  { %v867_v24 = vmax.f32 %v615_v17, 0.0  ;;  %v3126_v17 = vld [vmem:[#allocation9 + $0x34] sm:$0xf]  ;;  %1696 = vmatpush.bf16.msrb.mxu2 %v2904_v16 }
 0x130   :  { %826 = vmatmul.bf16.gmra.mxu3 %v3727_v48 }
 0x132   :  { %v527_v54 = vpop.f32.mrf.mxu0 }
 0x133   :  { %v528_v19 = vadd.f32 %v527_v54, %v3671_v31  ;;  %v616_v55 = vpop.f32.mrf.mxu1  ;;  %v2905_v54 = vld [vmem:[#allocation9 + $0x38] sm:$0xf0] }
 0x135   :  { %v617_v22 = vadd.f32 %v616_v55, %v528_v19  ;;  %v690_v19 = vpop.f32.mrf.mxu2  ;;  %v2908_v55 = vor.u32 %v3126_v17, %v2905_v54 }
 0x136   :  { %v691_v48 = vadd.f32 %v690_v19, %v3785_v12 }
 0x137   :  { %v869_v63 = vmax.f32 %v617_v22, 0.0  ;;  %v779_v22 = vpop.f32.mrf.mxu3  ;;  %1785 = vmatpush.bf16.msrb.mxu3 %v2908_v55 }
 0x139   :  { %v3761_v20 = vpack.c.bf16 %v869_v63, %v867_v24  ;;  %v768_v24 = vadd.f32 %v3741_v11, %v679_v14  ;;  %v770_v63 = vadd.f32 %v3750_v18, %v681_v34 }
 0x13a   :  { %v530_v21 = vpop.f32.mrf.mxu0 }
 0x13b   :  { %v531_v51 = vadd.f32 %v530_v21, %v3671_v31  ;;  %v619_v27 = vpop.f32.mrf.mxu1  ;;  %v848_v32 = vmax.f32 %v768_v24, 0.0  ;;  %v850_v21 = vmax.f32 %v770_v63, 0.0 }
 0x13d   :  { %v620_v28 = vadd.f32 %v619_v27, %v531_v51  ;;  %569 = vmatmul.bf16.gmra.mxu0 %v3757_v37  ;;  %v693_v51 = vpop.f32.mrf.mxu2 }
 0x13e   :  { %658 = vmatmul.bf16.gmra.mxu1 %v3763_v39  ;;  %742 = vmatmul.bf16.gmra.mxu2 %v3739_v8  ;;  %v694_v8 = vadd.f32 %v693_v51, %v3785_v12 }
 0x13f   :  { %v871_v26 = vmax.f32 %v620_v28, 0.0  ;;  %v3797_v27 = vpop.f32.mrf.mxu3 }
 0x140   :  { %831 = vmatmul.bf16.gmra.mxu3 %v3745_v15  ;;  %v783_v33 = vadd.f32 %v3797_v27, %v694_v8 }
 0x142   :  { %v532_v41 = vpop.f32.mrf.mxu0  ;;  %v860_v51 = vmax.f32 %v783_v33, 0.0 }
 0x143   :  { %v533_v42 = vadd.f32 %v532_v41, %v3671_v31  ;;  %v621_v43 = vpop.f32.mrf.mxu1 }
 0x145   :  { %v622_v44 = vadd.f32 %v621_v43, %v533_v42  ;;  %v912_v43 = vpack.c.bf16 %v850_v21, %v848_v32 }
 0x147   :  { %v873_v52 = vmax.f32 %v622_v44, 0.0  ;;  %v695_v44 = vpop.f32.mrf.mxu2  ;;  %v784_v47 = vpop.f32.mrf.mxu3 }
 0x148   :  { %v696_v15 = vadd.f32 %v695_v44, %v3785_v12 }
 0x149   :  { %v3779_v60 = vpack.c.bf16 %v873_v52, %v871_v26 }
 0x14a   :  { %v535_v61 = vpop.f32.mrf.mxu0 }
 0x14b   :  { %v536_v9 = vadd.f32 %v535_v61, %v3671_v31  ;;  %v624_v1 = vpop.f32.mrf.mxu1 }
 0x14d   :  { %v625_v2 = vadd.f32 %v624_v1, %v536_v9  ;;  %574 = vmatmul.bf16.gmra.mxu0 %v3775_v59  ;;  %v854_v1 = vmax.f32 %v775_v56, 0.0 }
 0x14e   :  { %663 = vmatmul.bf16.gmra.mxu1 %v3781_v0  ;;  %747 = vmatmul.bf16.gmra.mxu2 %v3757_v37  ;;  %v2895_v37 = vld [vmem:[#allocation9 + $0x20] sm:$0xf] }
 0x14f   :  { %v875_v7 = vmax.f32 %v625_v2, 0.0  ;;  %v3811_v53 = vpop.f32.mrf.mxu2  ;;  %v3813_v2 = vpop.f32.mrf.mxu3  ;;  %v914_v40 = vpack.c.bf16 %v854_v1, %v852_v35 }
 0x150   :  { %836 = vmatmul.bf16.gmra.mxu3 %v3763_v39  ;;  %v3125_v39 = vld [vmem:[#allocation9 + $0x24] sm:$0xf0]  ;;  %v699_v1 = vadd.f32 %v3811_v53, %v3785_v12 }
 0x152   :  { %v537_v4 = vpop.f32.mrf.mxu0 }
 0x153   :  { %v538_v23 = vadd.f32 %v537_v4, %v3671_v31  ;;  %v626_v62 = vpop.f32.mrf.mxu1 }
 0x155   :  { %v627_v25 = vadd.f32 %v626_v62, %v538_v23  ;;  %v778_v23 = vadd.f32 %v3777_v58, %v689_v45  ;;  %v780_v62 = vadd.f32 %v779_v22, %v691_v48 }
 0x157   :  { %v877_v36 = vmax.f32 %v627_v25, 0.0  ;;  %v700_v16 = vpop.f32.mrf.mxu2  ;;  %v3822_v17 = vpop.f32.mrf.mxu3  ;;  %v856_v57 = vmax.f32 %v778_v23, 0.0  ;;  %v858_v25 = vmax.f32 %v780_v62, 0.0 }
 0x159   :  { %v3799_v28 = vpack.c.bf16 %v877_v36, %v875_v7  ;;  %v916_v22 = vpack.c.bf16 %v858_v25, %v856_v57 }
 0x15a   :  { %v540_v41 = vpop.f32.mrf.mxu0 }
 0x15b   :  { %v541_v42 = vadd.f32 %v540_v41, %v3671_v31  ;;  %v629_v11 = vpop.f32.mrf.mxu1 }
 0x15d   :  { %v630_v18 = vadd.f32 %v629_v11, %v541_v42  ;;  %1083 = vmatmul.bf16.vlgmr.msrb.gmra.mxu0 %v3685_v50 }
 0x15e   :  { %1172 = vmatmul.bf16.vlgmr.msrb.gmra.mxu1 %v912_v43  ;;  %752 = vmatmul.bf16.gmra.mxu2 %v3775_v59 }
 0x15f   :  { %v879_v50 = vmax.f32 %v630_v18, 0.0  ;;  %v3828_v19 = vpop.f32.mrf.mxu2  ;;  %v3830_v7 = vpop.f32.mrf.mxu3 }
 0x160   :  { %841 = vmatmul.bf16.gmra.mxu3 %v3781_v0  ;;  %v704_v59 = vadd.f32 %v3828_v19, %v3785_v12 }
 0x162   :  { %v542_v49 = vpop.f32.mrf.mxu0 }
 0x163   :  { %v543_v26 = vadd.f32 %v542_v49, %v3671_v31  ;;  %v631_v52 = vpop.f32.mrf.mxu1  ;;  %v785_v49 = vadd.f32 %v784_v47, %v696_v15 }
 0x165   :  { %v632_v61 = vadd.f32 %v631_v52, %v543_v26  ;;  %v862_v29 = vmax.f32 %v785_v49, 0.0 }
 0x167   :  { %v881_v9 = vmax.f32 %v632_v61, 0.0  ;;  %v705_v42 = vpop.f32.mrf.mxu2  ;;  %v3838_v11 = vpop.f32.mrf.mxu3  ;;  %v918_v47 = vpack.c.bf16 %v862_v29, %v860_v51 }
 0x168   :  { %v706_v0 = vadd.f32 %v705_v42, %v3785_v12 }
 0x169   :  { %v3815_v3 = vpack.c.bf16 %v881_v9, %v879_v50 }
 0x16a   :  { %v545_v6 = vpop.f32.mrf.mxu0 }
 0x16b   :  { %v546_v38 = vadd.f32 %v545_v6, %v3671_v31  ;;  %v634_v14 = vpop.f32.mrf.mxu1  ;;  %v701_v6 = vadd.f32 %v700_v16, %v3785_v12 }
 0x16d   :  { %v635_v34 = vadd.f32 %v634_v14, %v546_v38  ;;  %1088 = vmatmul.bf16.gmra.mxu0 %v3699_v10  ;;  %v2896_v38 = vor.u32 %v3125_v39, %v2895_v37  ;;  %v3124_v14 = vld [vmem:[#allocation9 + $0x24] sm:$0xf]  ;;  %v790_v23 = vadd.f32 %v3822_v17, %v701_v6 }
 0x16e   :  { %1177 = vmatmul.bf16.gmra.mxu1 %v914_v40  ;;  %v2897_v40 = vld [vmem:[#allocation9 + $0x28] sm:$0xf0] }
 0x16f   :  { %v883_v10 = vmax.f32 %v635_v34, 0.0  ;;  %v3844_v44 = vpop.f32.mrf.mxu2  ;;  %v3846_v56 = vpop.f32.mrf.mxu3  ;;  %v2900_v45 = vor.u32 %v3124_v14, %v2897_v40  ;;  %1697 = vmatpush.bf16.msrb.mxu2 %v2896_v38 }
 0x171   :  { %1786 = vmatpush.bf16.msrb.mxu3 %v2900_v45 }
 0x172   :  { %v547_v54 = vpop.f32.mrf.mxu0 }
 0x173   :  { %v548_v55 = vadd.f32 %v547_v54, %v3671_v31  ;;  %v636_v4 = vpop.f32.mrf.mxu1 }
 0x175   :  { %v637_v24 = vadd.f32 %v636_v4, %v548_v55 }
 0x177   :  { %v885_v63 = vmax.f32 %v637_v24, 0.0  ;;  %v710_v34 = vpop.f32.mrf.mxu2  ;;  %v799_v48 = vpop.f32.mrf.mxu3 }
 0x179   :  { %v3832_v36 = vpack.c.bf16 %v885_v63, %v883_v10  ;;  %v866_v10 = vmax.f32 %v790_v23, 0.0 }
 0x17a   :  { %v550_v32 = vpop.f32.mrf.mxu0 }
 0x17b   :  { %v551_v21 = vadd.f32 %v550_v32, %v3671_v31  ;;  %v639_v58 = vpop.f32.mrf.mxu1 }
 0x17d   :  { %v640_v41 = vadd.f32 %v639_v58, %v551_v21  ;;  %1093 = vmatmul.bf16.gmra.mxu0 %v3713_v30 }
 0x17e   :  { %1182 = vmatmul.bf16.gmra.mxu1 %v916_v22 }
 0x17f   :  { %v887_v30 = vmax.f32 %v640_v41, 0.0  ;;  %v713_v63 = vpop.f32.mrf.mxu2  ;;  %v802_v57 = vpop.f32.mrf.mxu3 }
 0x182   :  { %v552_v43 = vpop.f32.mrf.mxu0 }
 0x183   :  { %v553_v18 = vadd.f32 %v552_v43, %v3671_v31  ;;  %v641_v5 = vpop.f32.mrf.mxu1 }
 0x185   :  { %v642_v26 = vadd.f32 %v641_v5, %v553_v18  ;;  %v793_v18 = vadd.f32 %v3830_v7, %v704_v59  ;;  %v795_v5 = vadd.f32 %v3838_v11, %v706_v0  ;;  %v709_v7 = vadd.f32 %v3844_v44, %v3785_v12 }
 0x186   :  { %v711_v11 = vadd.f32 %v710_v34, %v3785_v12 }
 0x187   :  { %v889_v52 = vmax.f32 %v642_v26, 0.0  ;;  %v715_v17 = vpop.f32.mrf.mxu2  ;;  %v804_v41 = vpop.f32.mrf.mxu3 }
 0x188   :  { %v800_v6 = vadd.f32 %v799_v48, %v711_v11  ;;  %v714_v48 = vadd.f32 %v713_v63, %v3785_v12 }
 0x189   :  { %v3848_v61 = vpack.c.bf16 %v889_v52, %v887_v30  ;;  %v870_v30 = vmax.f32 %v795_v5, 0.0 }
 0x18a   :  { %v555_v50 = vpop.f32.mrf.mxu0 }
 0x18b   :  { %v556_v9 = vadd.f32 %v555_v50, %v3671_v31  ;;  %v644_v27 = vpop.f32.mrf.mxu1 }
 0x18d   :  { %v645_v35 = vadd.f32 %v644_v27, %v556_v9  ;;  %1098 = vmatmul.bf16.gmra.mxu0 %v3725_v46  ;;  %v788_v46 = vadd.f32 %v3813_v2, %v699_v1  ;;  %v798_v1 = vadd.f32 %v3846_v56, %v709_v7  ;;  %v2889_v7 = vld [vmem:[#allocation9 + $0x18] sm:$0xf0] }
 0x18e   :  { %1187 = vmatmul.bf16.gmra.mxu1 %v918_v47 }
 0x18f   :  { %v891_v53 = vmax.f32 %v645_v35, 0.0  ;;  %v864_v24 = vmax.f32 %v788_v46, 0.0  ;;  %v718_v52 = vpop.f32.mrf.mxu2  ;;  %v807_v50 = vpop.f32.mrf.mxu3 }
 0x191   :  { %v920_v2 = vpack.c.bf16 %v866_v10, %v864_v24 }
 0x192   :  { %v557_v54 = vpop.f32.mrf.mxu0 }
 0x193   :  { %v558_v55 = vadd.f32 %v557_v54, %v3671_v31  ;;  %v646_v4 = vpop.f32.mrf.mxu1  ;;  %v872_v54 = vmax.f32 %v798_v1, 0.0 }
 0x195   :  { %v647_v62 = vadd.f32 %v646_v4, %v558_v55 }
 0x197   :  { %v893_v16 = vmax.f32 %v647_v62, 0.0  ;;  %v720_v47 = vpop.f32.mrf.mxu2  ;;  %v809_v14 = vpop.f32.mrf.mxu3 }
 0x199   :  { %v3860_v25 = vpack.c.bf16 %v893_v16, %v891_v53  ;;  %v716_v53 = vadd.f32 %v715_v17, %v3785_v12 }
 0x19a   :  { %v560_v32 = vpop.f32.mrf.mxu0 }
 0x19b   :  { %v561_v21 = vadd.f32 %v560_v32, %v3671_v31  ;;  %v649_v58 = vpop.f32.mrf.mxu1  ;;  %v803_v32 = vadd.f32 %v802_v57, %v714_v48 }
 0x19d   :  { %v650_v22 = vadd.f32 %v649_v58, %v561_v21  ;;  %1103 = vmatmul.bf16.gmra.mxu0 %v3743_v13  ;;  %v868_v13 = vmax.f32 %v793_v18, 0.0  ;;  %v805_v21 = vadd.f32 %v804_v41, %v716_v53  ;;  %v876_v0 = vmax.f32 %v803_v32, 0.0 }
 0x19e   :  { %1192 = vmatmul.bf16.gmra.mxu1 %v920_v2  ;;  %v719_v41 = vadd.f32 %v718_v52, %v3785_v12  ;;  %v3902_v52 = vld [vmem:[%s3590_s17] ss:$0 sm:$0xff] }
 0x19f   :  { %v895_v49 = vmax.f32 %v650_v22, 0.0  ;;  %v922_v9 = vpack.c.bf16 %v870_v30, %v868_v13  ;;  %v3882_v46 = vpop.f32.mrf.mxu2  ;;  %v3885_v56 = vpop.f32.mrf.mxu3 }
 0x1a2   :  { %v562_v8 = vpop.f32.mrf.mxu0 }
 0x1a3   :  { %v563_v15 = vadd.f32 %v562_v8, %v3671_v31  ;;  %v651_v43 = vpop.f32.mrf.mxu1  ;;  %v878_v8 = vmax.f32 %v805_v21, 0.0 }
 0x1a5   :  { %v652_v33 = vadd.f32 %v651_v43, %v563_v15  ;;  %v926_v17 = vpack.c.bf16 %v878_v8, %v876_v0 }
 0x1a7   :  { %v897_v26 = vmax.f32 %v652_v33, 0.0  ;;  %v725_v2 = vpop.f32.mrf.mxu2  ;;  %v721_v33 = vadd.f32 %v720_v47, %v3785_v12 }
 0x1a9   :  { %v3870_v51 = vpack.c.bf16 %v897_v26, %v895_v49 }
 0x1aa   :  { %v565_v19 = vpop.f32.mrf.mxu0 }
 0x1ab   :  { %v566_v42 = vadd.f32 %v565_v19, %v3671_v31  ;;  %v654_v29 = vpop.f32.mrf.mxu1  ;;  %v2887_v19 = vld [vmem:[#allocation9 + $0x10] sm:$0xf] }
 0x1ad   :  { %v655_v27 = vadd.f32 %v654_v29, %v566_v42  ;;  %1108 = vmatmul.bf16.gmra.mxu0 %v3761_v20  ;;  %v874_v20 = vmax.f32 %v800_v6, 0.0  ;;  %v3123_v42 = vld [vmem:[#allocation9 + $0x14] sm:$0xf0]  ;;  %v3122_v29 = vld [vmem:[#allocation9 + $0x14] sm:$0xf] }
 0x1ae   :  { %1197 = vmatmul.bf16.gmra.mxu1 %v922_v9  ;;  %v808_v9 = vadd.f32 %v807_v50, %v719_v41 }
 0x1af   :  { %v899_v40 = vmax.f32 %v655_v27, 0.0  ;;  %v924_v23 = vpack.c.bf16 %v874_v20, %v872_v54  ;;  %v3894_v57 = vpop.f32.mrf.mxu2  ;;  %v810_v27 = vadd.f32 %v809_v14, %v721_v33 }
 0x1b2   :  { %v567_v35 = vpop.f32.mrf.mxu0 }
 0x1b3   :  { %v568_v37 = vadd.f32 %v567_v35, %v3671_v31  ;;  %v656_v39 = vpop.f32.mrf.mxu1  ;;  %v2892_v35 = vor.u32 %v3122_v29, %v2889_v7 }
 0x1b5   :  { %v657_v38 = vadd.f32 %v656_v39, %v568_v37  ;;  %1787 = vmatpush.bf16.msrb.mxu3 %v2892_v35  ;;  %v880_v39 = vmax.f32 %v808_v9, 0.0 }
 0x1b7   :  { %v901_v45 = vmax.f32 %v657_v38, 0.0  ;;  %v730_v1 = vpop.f32.mrf.mxu2 }
 0x1b9   :  { %v3879_v55 = vpack.c.bf16 %v901_v45, %v899_v40 }
 0x1ba   :  { %v570_v4 = vpop.f32.mrf.mxu0 }
 0x1bb   :  { %v571_v44 = vadd.f32 %v570_v4, %v3671_v31  ;;  %v659_v34 = vpop.f32.mrf.mxu1  ;;  %v724_v4 = vadd.f32 %v3882_v46, %v3785_v12 }
 0x1bd   :  { %v660_v62 = vadd.f32 %v659_v34, %v571_v44  ;;  %1113 = vmatmul.bf16.gmra.mxu0 %v3779_v60  ;;  %v814_v60 = vpop.f32.mrf.mxu3  ;;  %v726_v44 = vadd.f32 %v725_v2, %v3785_v12 }
 0x1be   :  { %1202 = vmatmul.bf16.gmra.mxu1 %v924_v23 }
 0x1bf   :  { %v903_v22 = vmax.f32 %v660_v62, 0.0  ;;  %v733_v53 = vpop.f32.mrf.mxu2 }
 0x1c2   :  { %v572_v16 = vpop.f32.mrf.mxu0 }
 0x1c3   :  { %v573_v24 = vadd.f32 %v572_v16, %v3671_v31  ;;  %v661_v10 = vpop.f32.mrf.mxu1  ;;  %v815_v16 = vadd.f32 %v814_v60, %v726_v44 }
 0x1c5   :  { %v662_v58 = vadd.f32 %v661_v10, %v573_v24  ;;  %v3899_v30 = vpop.f32.mrf.mxu3  ;;  %v886_v21 = vmax.f32 %v815_v16, 0.0 }
 0x1c7   :  { %v905_v59 = vmax.f32 %v662_v58, 0.0  ;;  %v735_v60 = vpop.f32.mrf.mxu2 }
 0x1c9   :  { %v3890_v15 = vpack.c.bf16 %v905_v59, %v903_v22 }
 0x1ca   :  { %v575_v43 = vpop.f32.mrf.mxu0 }
 0x1cb   :  { %v576_v63 = vadd.f32 %v575_v43, %v3671_v31  ;;  %v664_v18 = vpop.f32.mrf.mxu1 }
 0x1cd   :  { %v665_v5 = vadd.f32 %v664_v18, %v576_v63  ;;  %1118 = vmatmul.bf16.gmra.mxu0 %v3799_v28  ;;  %v2888_v28 = vor.u32 %v3123_v42, %v2887_v19  ;;  %v819_v54 = vpop.f32.mrf.mxu3  ;;  %v729_v63 = vadd.f32 %v3894_v57, %v3785_v12  ;;  %v731_v18 = vadd.f32 %v730_v1, %v3785_v12 }
 0x1ce   :  { %1207 = vmatmul.bf16.gmra.mxu1 %v926_v17  ;;  %v736_v1 = vadd.f32 %v735_v60, %v3785_v12 }
 0x1cf   :  { %1698 = vmatpush.bf16.msrb.mxu2 %v2888_v28  ;;  %v907_v37 = vmax.f32 %v665_v5, 0.0  ;;  %v738_v57 = vpop.f32.mrf.mxu2 }
 0x1d2   :  { %v577_v49 = vpop.f32.mrf.mxu0 }
 0x1d3   :  { %v578_v26 = vadd.f32 %v577_v49, %v3671_v31  ;;  %v666_v13 = vpop.f32.mrf.mxu1  ;;  %v882_v31 = vmax.f32 %v810_v27, 0.0 }
 0x1d5   :  { %v667_v11 = vadd.f32 %v666_v13, %v578_v26  ;;  %v928_v14 = vpack.c.bf16 %v882_v31, %v880_v39  ;;  %v822_v32 = vpop.f32.mrf.mxu3  ;;  %v818_v26 = vadd.f32 %v3899_v30, %v729_v63  ;;  %v820_v13 = vadd.f32 %v819_v54, %v731_v18 }
 0x1d6   :  { %v734_v31 = vadd.f32 %v733_v53, %v3785_v12 }
 0x1d7   :  { %v909_v47 = vmax.f32 %v667_v11, 0.0  ;;  %v888_v29 = vmax.f32 %v818_v26, 0.0  ;;  %v890_v9 = vmax.f32 %v820_v13, 0.0 }
 0x1d9   :  { %v3904_v6 = vpack.c.bf16 %v909_v47, %v907_v37  ;;  %v932_v37 = vpack.c.bf16 %v890_v9, %v888_v29 }
 0x1da   :  { %v1084_v38 = vpop.f32.mrf.mxu0 }
 0x1db   :  { %v1085_v40 = vadd.f32 %v3902_v52, %v1084_v38  ;;  %v1173_v50 = vpop.f32.mrf.mxu1 }
 0x1dd   :  { %v3907_v45 = vadd.f32 %v1173_v50, %v1085_v40  ;;  %1123 = vmatmul.bf16.gmra.mxu0 %v3815_v3  ;;  %v813_v3 = vadd.f32 %v3885_v56, %v724_v4  ;;  %v824_v41 = vpop.f32.mrf.mxu3  ;;  %v740_v50 = vpop.f32.mrf.mxu2 }
 0x1de   :  { %1212 = vmatmul.bf16.gmra.mxu1 %v928_v14  ;;  %v825_v4 = vadd.f32 %v824_v41, %v736_v1 }
 0x1df   :  { %v1285_v20 = vmul.f32 0.5, %v3907_v45  ;;  %2584 = vst [vmem:[#allocation16] sm:$0xff] %v3907_v45  ;;  %v884_v46 = vmax.f32 %v813_v3, 0.0 }
 0x1e1   :  { %v1317_v34 = vmul.f32 1.442695, %v1285_v20  ;;  %v930_v0 = vpack.c.bf16 %v886_v21, %v884_v46 }
 0x1e2   :  { %v1086_v23 = vpop.f32.mrf.mxu0 }
 0x1e3   :  { %3174 = vpow2.f32 %v1317_v34  ;;  %v1087_v62 = vadd.f32 %v3902_v52, %v1086_v23  ;;  %v1175_v48 = vpop.f32.mrf.mxu1 }
 0x1e5   :  { %v3917_v24 = vadd.f32 %v1175_v48, %v1087_v62  ;;  %v827_v30 = vpop.f32.mrf.mxu3  ;;  %v894_v48 = vmax.f32 %v825_v4, 0.0 }
 0x1e7   :  { %v1286_v10 = vmul.f32 0.5, %v3917_v24  ;;  %2585 = vst [vmem:[#allocation16 + $0x8] sm:$0xff] %v3917_v24 }
 0x1e9   :  { %v3175_v58 = vpop.eup %3174  ;;  %v1319_v2 = vmul.f32 1.442695, %v1286_v10 }
 0x1ea   :  { %v1089_v22 = vpop.f32.mrf.mxu0  ;;  %1413 = vrot.lane.b32.xlu0 %v3175_v58, %s3453_s0 }
 0x1eb   :  { %3176 = vpow2.f32 %v1319_v2  ;;  %v1090_v59 = vadd.f32 %v3902_v52, %v1089_v22  ;;  %v1178_v56 = vpop.f32.mrf.mxu1 }
 0x1ed   :  { %v3923_v8 = vadd.f32 %v1178_v56, %v1090_v59  ;;  %1128 = vmatmul.bf16.gmra.mxu0 %v3832_v36  ;;  %v829_v34 = vpop.f32.mrf.mxu3  ;;  %v739_v59 = vadd.f32 %v738_v57, %v3785_v12  ;;  %v741_v56 = vadd.f32 %v740_v50, %v3785_v12 }
 0x1ee   :  { %1217 = vmatmul.bf16.gmra.mxu1 %v930_v0 }
 0x1ef   :  { %v1287_v43 = vmul.f32 0.5, %v3923_v8  ;;  %2586 = vst [vmem:[#allocation16 + $0x10] sm:$0xff] %v3923_v8  ;;  %v828_v41 = vadd.f32 %v827_v30, %v739_v59 }
 0x1f1   :  { %v3177_v17 = vpop.eup %3176  ;;  %v1321_v5 = vmul.f32 1.442695, %v1287_v43  ;;  %v896_v29 = vmax.f32 %v828_v41, 0.0 }
 0x1f2   :  { %v1091_v33 = vpop.f32.mrf.mxu0  ;;  %1415 = vrot.lane.b32.xlu0 %v3177_v17, %s3453_s0  ;;  %v3121_v17 = vld [vmem:[#allocation9 + $0x4] sm:$0xf0] }
 0x1f3   :  { %3178 = vpow2.f32 %v1321_v5  ;;  %v1092_v36 = vadd.f32 %v3902_v52, %v1091_v33  ;;  %v1180_v49 = vpop.f32.mrf.mxu1  ;;  %v3120_v5 = vld [vmem:[#allocation9 + $0x4] sm:$0xf]  ;;  %v830_v33 = vadd.f32 %v829_v34, %v741_v56 }
 0x1f5   :  { %v3934_v19 = vadd.f32 %v1180_v49, %v1092_v36  ;;  %v832_v22 = vpop.f32.mrf.mxu3  ;;  %v2881_v49 = vld [vmem:[#allocation9 + $0x8] sm:$0xf0]  ;;  %v898_v9 = vmax.f32 %v830_v33, 0.0 }
 0x1f7   :  { %v1288_v42 = vmul.f32 0.5, %v3934_v19  ;;  %2587 = vst [vmem:[#allocation16 + $0x18] sm:$0xff] %v3934_v19 }
 0x1f9   :  { %v3179_v27 = vpop.eup %3178  ;;  %v1323_v28 = vmul.f32 1.442695, %v1288_v42  ;;  %v2884_v42 = vor.u32 %v3120_v5, %v2881_v49 }
 0x1fa   :  { %v1094_v7 = vpop.f32.mrf.mxu0  ;;  %1417 = vrot.lane.b32.xlu1 %v3179_v27, %s3453_s0 }
 0x1fb   :  { %3180 = vpow2.f32 %v1323_v28  ;;  %v1095_v11 = vadd.f32 %v3902_v52, %v1094_v7  ;;  %v1183_v35 = vpop.f32.mrf.mxu1  ;;  %1788 = vmatpush.bf16.msrb.mxu3 %v2884_v42 }
 0x1fd   :  { %v3940_v47 = vadd.f32 %v1183_v35, %v1095_v11  ;;  %1133 = vmatmul.bf16.gmra.mxu0 %v3848_v61  ;;  %v823_v61 = vadd.f32 %v822_v32, %v734_v31  ;;  %v743_v32 = vpop.f32.mrf.mxu2  ;;  %v834_v7 = vpop.f32.mrf.mxu3 }
 0x1fe   :  { %1222 = vmatmul.bf16.gmra.mxu1 %v932_v37  ;;  %v936_v37 = vpack.c.bf16 %v898_v9, %v896_v29 }
 0x1ff   :  { %v1289_v39 = vmul.f32 0.5, %v3940_v47  ;;  %2588 = vst [vmem:[#allocation16 + $0x20] sm:$0xff] %v3940_v47  ;;  %v892_v62 = vmax.f32 %v823_v61, 0.0 }
 0x201   :  { %v3181_v38 = vpop.eup %3180  ;;  %v1325_v40 = vmul.f32 1.442695, %v1289_v39  ;;  %v934_v21 = vpack.c.bf16 %v894_v48, %v892_v62 }
 0x202   :  { %v1096_v14 = vpop.f32.mrf.mxu0  ;;  %1419 = vrot.lane.b32.xlu1 %v3181_v38, %s3453_s0  ;;  %v744_v38 = vadd.f32 %v743_v32, %v3785_v12 }
 0x203   :  { %3182 = vpow2.f32 %v1325_v40  ;;  %v1097_v54 = vadd.f32 %v3902_v52, %v1096_v14  ;;  %v1185_v20 = vpop.f32.mrf.mxu1 }
 0x204   :  { %v833_v4 = vadd.f32 %v832_v22, %v744_v38 }
 0x205   :  { %v3949_v44 = vadd.f32 %v1185_v20, %v1097_v54  ;;  %v745_v13 = vpop.f32.mrf.mxu2 }
 0x206   :  { %v746_v40 = vadd.f32 %v745_v13, %v3785_v12  ;;  %v900_v48 = vmax.f32 %v833_v4, 0.0 }
 0x207   :  { %v1290_v23 = vmul.f32 0.5, %v3949_v44  ;;  %2589 = vst [vmem:[#allocation16 + $0x28] sm:$0xff] %v3949_v44 }
 0x208   :  { %v835_v34 = vadd.f32 %v834_v7, %v746_v40 }
 0x209   :  { %v3183_v53 = vpop.eup %3182  ;;  %v1327_v3 = vmul.f32 1.442695, %v1290_v23 }
 0x20a   :  { %v1099_v16 = vpop.f32.mrf.mxu0  ;;  %1421 = vrot.lane.b32.xlu2 %v3183_v53, %s3453_s0  ;;  %v902_v53 = vmax.f32 %v835_v34, 0.0 }
 0x20b   :  { %3184 = vpow2.f32 %v1327_v3  ;;  %v1100_v10 = vadd.f32 %v3902_v52, %v1099_v16  ;;  %v1188_v46 = vpop.f32.mrf.mxu1 }
 0x20d   :  { %v3955_v58 = vadd.f32 %v1188_v46, %v1100_v10  ;;  %1138 = vmatmul.bf16.gmra.mxu0 %v3860_v25  ;;  %v2879_v25 = vld [vmem:[#allocation9] sm:$0xf]  ;;  %v748_v1 = vpop.f32.mrf.mxu2 }
 0x20e   :  { %1227 = vmatmul.bf16.gmra.mxu1 %v934_v21  ;;  %v2880_v36 = vor.u32 %v3121_v17, %v2879_v25 }
 0x20f   :  { %v1291_v2 = vmul.f32 0.5, %v3955_v58  ;;  %2590 = vst [vmem:[#allocation16 + $0x30] sm:$0xff] %v3955_v58 }
 0x210   :  { %1699 = vmatpush.bf16.msrb.mxu2 %v2880_v36 }
 0x211   :  { %v3185_v0 = vpop.eup %3184  ;;  %v1329_v60 = vmul.f32 1.442695, %v1291_v2  ;;  %v938_v2 = vpack.c.bf16 %v902_v53, %v900_v48 }
 0x212   :  { %v1101_v43 = vpop.f32.mrf.mxu0  ;;  %1423 = vrot.lane.b32.xlu2 %v3185_v0, %s3453_s0  ;;  %v749_v0 = vadd.f32 %v748_v1, %v3785_v12 }
 0x213   :  { %3186 = vpow2.f32 %v1329_v60  ;;  %v1102_v63 = vadd.f32 %v3902_v52, %v1101_v43  ;;  %v1190_v18 = vpop.f32.mrf.mxu1 }
 0x215   :  { %v3964_v26 = vadd.f32 %v1190_v18, %v1102_v63  ;;  %v750_v10 = vpop.f32.mrf.mxu2 }
 0x216   :  { %v751_v60 = vadd.f32 %v750_v10, %v3785_v12 }
 0x217   :  { %v1292_v57 = vmul.f32 0.5, %v3964_v26  ;;  %2591 = vst [vmem:[#allocation16 + $0x38] sm:$0xff] %v3964_v26 }
 0x219   :  { %v3187_v27 = vpop.eup %3186  ;;  %v1331_v28 = vmul.f32 1.442695, %v1292_v57 }
 0x21a   :  { %v1104_v11 = vpop.f32.mrf.mxu0  ;;  %1425 = vrot.lane.b32.xlu0 %v3187_v27, %s3453_s0 }
 0x21b   :  { %3188 = vpow2.f32 %v1331_v28  ;;  %v1105_v35 = vadd.f32 %v3902_v52, %v1104_v11  ;;  %v1193_v30 = vpop.f32.mrf.mxu1 }
 0x21d   :  { %v3970_v39 = vadd.f32 %v1193_v30, %v1105_v35  ;;  %1143 = vmatmul.bf16.gmra.mxu0 %v3870_v51  ;;  %v837_v51 = vpop.f32.mrf.mxu3 }
 0x21e   :  { %1232 = vmatmul.bf16.gmra.mxu1 %v936_v37  ;;  %v838_v5 = vadd.f32 %v837_v51, %v749_v0  ;;  %v3142_v0 = vld [vmem:[#allocation12 + $0x74] sm:$0xf] }
 0x21f   :  { %v1293_v31 = vmul.f32 0.5, %v3970_v39  ;;  %2592 = vst [vmem:[#allocation16 + $0x40] sm:$0xff] %v3970_v39 }
 0x220   :  { %v904_v13 = vmax.f32 %v838_v5, 0.0 }
 0x221   :  { %v3189_v50 = vpop.eup %3188  ;;  %v1333_v14 = vmul.f32 1.442695, %v1293_v31 }
 0x222   :  { %v1106_v54 = vpop.f32.mrf.mxu0  ;;  %1427 = vrot.lane.b32.xlu1 %v3189_v50, %s3453_s0 }
 0x223   :  { %3190 = vpow2.f32 %v1333_v14  ;;  %v1107_v20 = vadd.f32 %v3902_v52, %v1106_v54  ;;  %v1195_v61 = vpop.f32.mrf.mxu1 }
 0x225   :  { %v3979_v23 = vadd.f32 %v1195_v61, %v1107_v20  ;;  %v839_v59 = vpop.f32.mrf.mxu3 }
 0x226   :  { %v840_v41 = vadd.f32 %v839_v59, %v751_v60  ;;  %v3001_v60 = vld [vmem:[#allocation12 + $0x78] sm:$0xf0] }
 0x227   :  { %v1294_v62 = vmul.f32 0.5, %v3979_v23  ;;  %2593 = vst [vmem:[#allocation16 + $0x48] sm:$0xff] %v3979_v23 }
 0x228   :  { %v906_v42 = vmax.f32 %v840_v41, 0.0 }
 0x229   :  { %v3191_v3 = vpop.eup %3190  ;;  %v1335_v16 = vmul.f32 1.442695, %v1294_v62 }
 0x22a   :  { %v1109_v46 = vpop.f32.mrf.mxu0  ;;  %1429 = vrot.lane.b32.xlu2 %v3191_v3, %s3453_s0  ;;  %v940_v7 = vpack.c.bf16 %v906_v42, %v904_v13 }
 0x22b   :  { %3192 = vpow2.f32 %v1335_v16  ;;  %v1110_v32 = vadd.f32 %v3902_v52, %v1109_v46  ;;  %v1198_v21 = vpop.f32.mrf.mxu1 }
 0x22d   :  { %v3985_v22 = vadd.f32 %v1198_v21, %v1110_v32  ;;  %1148 = vmatmul.bf16.gmra.mxu0 %v3879_v55  ;;  %v753_v55 = vpop.f32.mrf.mxu2  ;;  %v842_v49 = vpop.f32.mrf.mxu3 }
 0x22e   :  { %1237 = vmatmul.bf16.gmra.mxu1 %v938_v2  ;;  %v754_v37 = vadd.f32 %v753_v55, %v3785_v12 }
 0x22f   :  { %v1295_v56 = vmul.f32 0.5, %v3985_v22  ;;  %2594 = vst [vmem:[#allocation16 + $0x50] sm:$0xff] %v3985_v22 }
 0x230   :  { %v843_v54 = vadd.f32 %v842_v49, %v754_v37 }
 0x231   :  { %v3193_v43 = vpop.eup %3192  ;;  %v1337_v63 = vmul.f32 1.442695, %v1295_v56 }
 0x232   :  { %v1111_v18 = vpop.f32.mrf.mxu0  ;;  %1431 = vrot.lane.b32.xlu0 %v3193_v43, %s3453_s0  ;;  %v908_v4 = vmax.f32 %v843_v54, 0.0  ;;  %v3158_v43 = vld [vmem:[#allocation12 + $0xf4] sm:$0xf] }
 0x233   :  { %3194 = vpow2.f32 %v1337_v63  ;;  %v1112_v25 = vadd.f32 %v3902_v52, %v1111_v18  ;;  %v1200_v17 = vpop.f32.mrf.mxu1  ;;  %v3004_v63 = vor.u32 %v3142_v0, %v3001_v60  ;;  %v3065_v18 = vld [vmem:[#allocation12 + $0xf8] sm:$0xf0] }
 0x234   :  { %v3068_v55 = vor.u32 %v3158_v43, %v3065_v18  ;;  %v2993_v18 = vld [vmem:[#allocation12 + $0x68] sm:$0xf0] }
 0x235   :  { %v3994_v33 = vadd.f32 %v1200_v17, %v1112_v25  ;;  %v755_v35 = vpop.f32.mrf.mxu2  ;;  %v844_v40 = vpop.f32.mrf.mxu3  ;;  %v3143_v25 = vld [vmem:[#allocation12 + $0x74] sm:$0xf0]  ;;  %2342 = vmatpush.bf16.msra.mxu2 %v3004_v63  ;;  %v3140_v63 = vld [vmem:[#allocation12 + $0x64] sm:$0xf] }
 0x236   :  { %v756_v31 = vadd.f32 %v755_v35, %v3785_v12  ;;  %2431 = vmatpush.bf16.msra.mxu3 %v3068_v55 }
 0x237   :  { %v1296_v36 = vmul.f32 0.5, %v3994_v33  ;;  %2595 = vst [vmem:[#allocation16 + $0x58] sm:$0xff] %v3994_v33 }
 0x238   :  { %v845_v20 = vadd.f32 %v844_v40, %v756_v31 }
 0x239   :  { %v3195_v57 = vpop.eup %3194  ;;  %v1339_v29 = vmul.f32 1.442695, %v1296_v36 }
 0x23a   :  { %v1114_v9 = vpop.f32.mrf.mxu0  ;;  %1433 = vrot.lane.b32.xlu1 %v3195_v57, %s3453_s0  ;;  %v910_v12 = vmax.f32 %v845_v20, 0.0 }
 0x23b   :  { %3196 = vpow2.f32 %v1339_v29  ;;  %v1115_v27 = vadd.f32 %v3902_v52, %v1114_v9  ;;  %v1203_v28 = vpop.f32.mrf.mxu1  ;;  %v3063_v29 = vld [vmem:[#allocation12 + $0xf0] sm:$0xf]  ;;  %v3159_v9 = vld [vmem:[#allocation12 + $0xf4] sm:$0xf0] }
 0x23c   :  { %v942_v16 = vpack.c.bf16 %v910_v12, %v908_v4 }
 0x23d   :  { %v4000_v11 = vadd.f32 %v1203_v28, %v1115_v27  ;;  %1153 = vmatmul.bf16.gmra.mxu0 %v3890_v15  ;;  %v3064_v28 = vor.u32 %v3159_v9, %v3063_v29 }
 0x23e   :  { %1242 = vmatmul.bf16.gmra.mxu1 %v940_v7 }
 0x23f   :  { %v1297_v30 = vmul.f32 0.5, %v4000_v11  ;;  %2596 = vst [vmem:[#allocation16 + $0x60] sm:$0xff] %v4000_v11  ;;  %2253 = vmatpush.bf16.msra.mxu1 %v3064_v28 }
 0x241   :  { %v3197_v1 = vpop.eup %3196  ;;  %v1341_v38 = vmul.f32 1.442695, %v1297_v30  ;;  %v1253_v30 = vld [vmem:[%s4564_s2] sm:$0xff] }
 0x242   :  { %v1116_v50 = vpop.f32.mrf.mxu0  ;;  %1435 = vrot.lane.b32.xlu2 %v3197_v1, %s3453_s0 }
 0x243   :  { %3198 = vpow2.f32 %v1341_v38  ;;  %v1117_v14 = vadd.f32 %v3902_v52, %v1116_v50  ;;  %v1205_v15 = vpop.f32.mrf.mxu1  ;;  %v1254_v38 = vld [vmem:[%s4564_s2 + $0x8] sm:$0xff] }
 0x245   :  { %v4009_v61 = vadd.f32 %v1205_v15, %v1117_v14 }
 0x247   :  { %v1298_v51 = vmul.f32 0.5, %v4009_v61  ;;  %2597 = vst [vmem:[#allocation16 + $0x68] sm:$0xff] %v4009_v61 }
 0x249   :  { %v3199_v34 = vpop.eup %3198  ;;  %v1343_v62 = vmul.f32 1.442695, %v1298_v51 }
 0x24a   :  { %v1119_v48 = vpop.f32.mrf.mxu0  ;;  %1437 = vrot.lane.b32.xlu0 %v3199_v34, %s3453_s0 }
 0x24b   :  { %3200 = vpow2.f32 %v1343_v62  ;;  %v1120_v53 = vadd.f32 %v3902_v52, %v1119_v48  ;;  %v1208_v3 = vpop.f32.mrf.mxu1 }
 0x24d   :  { %v4015_v10 = vadd.f32 %v1208_v3, %v1120_v53  ;;  %1158 = vmatmul.bf16.gmra.mxu0 %v3904_v6  ;;  %v2999_v6 = vld [vmem:[#allocation12 + $0x70] sm:$0xf] }
 0x24e   :  { %1247 = vmatmul.bf16.gmra.mxu1 %v942_v16  ;;  %v3000_v5 = vor.u32 %v3143_v25, %v2999_v6  ;;  %v3156_v6 = vld [vmem:[#allocation12 + $0xe4] sm:$0xf] }
 0x24f   :  { %v1299_v46 = vmul.f32 0.5, %v4015_v10  ;;  %2598 = vst [vmem:[#allocation16 + $0x70] sm:$0xff] %v4015_v10 }
 0x250   :  { %2164 = vmatpush.bf16.msra.mxu0 %v3000_v5  ;;  %v2996_v5 = vor.u32 %v3140_v63, %v2993_v18 }
 0x251   :  { %v3201_v32 = vpop.eup %3200  ;;  %v1345_v21 = vmul.f32 1.442695, %v1299_v46 }
 0x252   :  { %v1121_v2 = vpop.f32.mrf.mxu0  ;;  %1439 = vrot.lane.b32.xlu1 %v3201_v32, %s3453_s0  ;;  %v1255_v32 = vld [vmem:[%s4564_s2 + $0x10] sm:$0xff]  ;;  %2343 = vmatpush.bf16.msra.mxu2 %v2996_v5 }
 0x253   :  { %3202 = vpow2.f32 %v1345_v21  ;;  %v1122_v59 = vadd.f32 %v3902_v52, %v1121_v2  ;;  %v1210_v56 = vpop.f32.mrf.mxu1 }
 0x255   :  { %v4022_v17 = vadd.f32 %v1210_v56, %v1122_v59  ;;  %v1256_v56 = vld [vmem:[%s4564_s2 + $0x18] sm:$0xff] }
 0x257   :  { %v1300_v41 = vmul.f32 0.5, %v4022_v17  ;;  %2599 = vst [vmem:[#allocation16 + $0x78] sm:$0xff] %v4022_v17 }
 0x259   :  { %v3203_v36 = vpop.eup %3202  ;;  %v1347_v49 = vmul.f32 1.442695, %v1300_v41  ;;  %v3057_v41 = vld [vmem:[#allocation12 + $0xe8] sm:$0xf0] }
 0x25a   :  { %v1124_v13 = vpop.f32.mrf.mxu0  ;;  %1441 = vrot.lane.b32.xlu2 %v3203_v36, %s3453_s0  ;;  %v2991_v36 = vld [vmem:[#allocation12 + $0x60] sm:$0xf] }
 0x25b   :  { %3204 = vpow2.f32 %v1347_v49  ;;  %v1125_v42 = vadd.f32 %v3902_v52, %v1124_v13  ;;  %v1213_v57 = vpop.f32.mrf.mxu1  ;;  %v3141_v49 = vld [vmem:[#allocation12 + $0x64] sm:$0xf0] }
 0x25c   :  { %v1414_v27 = vpop.permute.xlu0 %1413  ;;  %v2992_v29 = vor.u32 %v3141_v49, %v2991_v36  ;;  %v3138_v49 = vld [vmem:[#allocation12 + $0x54] sm:$0xf] }
 0x25d   :  { %v4028_v7 = vadd.f32 %v1213_v57, %v1125_v42  ;;  %v1509_v40 = vmul.f32 %v1414_v27, %v1253_v30  ;;  %v3060_v57 = vor.u32 %v3156_v6, %v3057_v41 }
 0x25e   :  { %2165 = vmatpush.bf16.msra.mxu0 %v2992_v29 }
 0x25f   :  { %v1301_v35 = vmul.f32 0.5, %v4028_v7  ;;  %2600 = vst [vmem:[#allocation16 + $0x80] sm:$0xff] %v4028_v7  ;;  %v1541_v51 = vadd.f32 %v1509_v40, %v3907_v45  ;;  %2432 = vmatpush.bf16.msra.mxu3 %v3060_v57  ;;  %v3157_v40 = vld [vmem:[#allocation12 + $0xe4] sm:$0xf0]  ;;  %v3154_v57 = vld [vmem:[#allocation12 + $0xd4] sm:$0xf] }
 0x261   :  { %v3205_v37 = vpop.eup %3204  ;;  %v1349_v31 = vmul.f32 1.442695, %v1301_v35 }
 0x262   :  { %v1126_v1 = vpop.f32.mrf.mxu0  ;;  %1443 = vrot.lane.b32.xlu0 %v3205_v37, %s3453_s0 }
 0x263   :  { %3206 = vpow2.f32 %v1349_v31  ;;  %v1127_v50 = vadd.f32 %v3902_v52, %v1126_v1  ;;  %v1215_v14 = vpop.f32.mrf.mxu1 }
 0x264   :  { %v1416_v15 = vpop.permute.xlu0 %1415  ;;  %v1422_v25 = vpop.permute.xlu2 %1421 }
 0x265   :  { %v4040_v54 = vadd.f32 %v1215_v14, %v1127_v50  ;;  %v1510_v20 = vmul.f32 %v1416_v15, %v1254_v38  ;;  %v1258_v14 = vld [vmem:[%s4564_s2 + $0x28] sm:$0xff] }
 0x267   :  { %v1302_v4 = vmul.f32 0.5, %v4040_v54  ;;  %2601 = vst [vmem:[#allocation16 + $0x88] sm:$0xff] %v4040_v54  ;;  %v1542_v12 = vadd.f32 %v1510_v20, %v3917_v24 }
 0x269   :  { %v3207_v34 = vpop.eup %3206  ;;  %v1351_v62 = vmul.f32 1.442695, %v1302_v4  ;;  %v1573_v48 = vpack.c.bf16 %v1542_v12, %v1541_v51  ;;  %v1257_v51 = vld [vmem:[%s4564_s2 + $0x20] sm:$0xff] }
 0x26a   :  { %v1129_v53 = vpop.f32.mrf.mxu0  ;;  %1445 = vrot.lane.b32.xlu1 %v3207_v34, %s3453_s0 }
 0x26b   :  { %3208 = vpow2.f32 %v1351_v62  ;;  %v1130_v3 = vadd.f32 %v3902_v52, %v1129_v53  ;;  %v1218_v16 = vpop.f32.mrf.mxu1  ;;  %2909 = vmatmul.msk.bf16.vlgmr.msrb.gmra.mxu2 %vm1643_vm0, %v1573_v48  ;;  %2925 = vmatmul.msk.bf16.vlgmr.msrb.gmra.mxu3 %vm1643_vm0, %v1573_v48  ;;  %v1513_v48 = vmul.f32 %v1422_v25, %v1257_v51 }
 0x26c   :  { %v1418_v45 = vpop.permute.xlu1 %1417  ;;  %v1424_v15 = vpop.permute.xlu2 %1423 }
 0x26d   :  { %v4050_v46 = vadd.f32 %v1218_v16, %v1130_v3  ;;  %v1511_v0 = vmul.f32 %v1418_v45, %v1255_v32  ;;  %v1514_v12 = vmul.f32 %v1424_v15, %v1258_v14 }
 0x26f   :  { %v1303_v24 = vmul.f32 0.5, %v4050_v46  ;;  %2602 = vst [vmem:[#allocation16 + $0x90] sm:$0xff] %v4050_v46  ;;  %v1543_v9 = vadd.f32 %v1511_v0, %v3923_v8  ;;  %v3055_v8 = vld [vmem:[#allocation12 + $0xe0] sm:$0xf]  ;;  %v1546_v16 = vadd.f32 %v1514_v12, %v3949_v44  ;;  %v3155_v12 = vld [vmem:[#allocation12 + $0xd4] sm:$0xf0] }
 0x270   :  { %v3056_v50 = vor.u32 %v3157_v40, %v3055_v8 }
 0x271   :  { %v3209_v21 = vpop.eup %3208  ;;  %v1353_v2 = vmul.f32 1.442695, %v1303_v24  ;;  %v1545_v24 = vadd.f32 %v1513_v48, %v3940_v47  ;;  %v1261_v48 = vld [vmem:[%s4564_s2 + $0x40] sm:$0xff] }
 0x272   :  { %v1131_v59 = vpop.f32.mrf.mxu0  ;;  %1447 = vrot.lane.b32.xlu2 %v3209_v21, %s3453_s0  ;;  %2254 = vmatpush.bf16.msra.mxu1 %v3056_v50 }
 0x273   :  { %3210 = vpow2.f32 %v1353_v2  ;;  %v1132_v60 = vadd.f32 %v3902_v52, %v1131_v59  ;;  %v1220_v43 = vpop.f32.mrf.mxu1  ;;  %v1575_v2 = vpack.c.bf16 %v1546_v16, %v1545_v24 }
 0x274   :  { %v1420_v55 = vpop.permute.xlu1 %1419 }
 0x275   :  { %v4062_v13 = vadd.f32 %v1220_v43, %v1132_v60  ;;  %v1512_v42 = vmul.f32 %v1420_v55, %v1256_v56  ;;  %v1259_v43 = vld [vmem:[%s4564_s2 + $0x30] sm:$0xff]  ;;  %v1260_v55 = vld [vmem:[%s4564_s2 + $0x38] sm:$0xff] }
 0x277   :  { %v1304_v27 = vmul.f32 0.5, %v4062_v13  ;;  %2603 = vst [vmem:[#allocation16 + $0x98] sm:$0xff] %v4062_v13  ;;  %v1544_v28 = vadd.f32 %v1512_v42, %v3934_v19  ;;  %v2985_v42 = vld [vmem:[#allocation12 + $0x58] sm:$0xf0] }
 0x279   :  { %v3211_v35 = vpop.eup %3210  ;;  %v1355_v30 = vmul.f32 1.442695, %v1304_v27  ;;  %v1574_v37 = vpack.c.bf16 %v1544_v28, %v1543_v9  ;;  %v2988_v9 = vor.u32 %v3138_v49, %v2985_v42  ;;  %v3049_v27 = vld [vmem:[#allocation12 + $0xd8] sm:$0xf0]  ;;  %v2983_v28 = vld [vmem:[#allocation12 + $0x50] sm:$0xf] }
 0x27a   :  { %v1134_v31 = vpop.f32.mrf.mxu0  ;;  %1449 = vrot.lane.b32.xlu0 %v3211_v35, %s3453_s0  ;;  %v3139_v35 = vld [vmem:[#allocation12 + $0x54] sm:$0xf0] }
 0x27b   :  { %3212 = vpow2.f32 %v1355_v30  ;;  %v1135_v1 = vadd.f32 %v3902_v52, %v1134_v31  ;;  %v1223_v38 = vpop.f32.mrf.mxu1  ;;  %2910 = vmatmul.msk.bf16.gmra.mxu2 %vm1643_vm0, %v1574_v37  ;;  %2926 = vmatmul.msk.bf16.gmra.mxu3 %vm1643_vm0, %v1574_v37  ;;  %v3052_v31 = vor.u32 %v3154_v57, %v3049_v27  ;;  %v1264_v42 = vld [vmem:[%s4564_s2 + $0x58] sm:$0xff] }
 0x27c   :  { %2344 = vmatpush.bf16.msra.mxu2 %v2988_v9 }
 0x27d   :  { %v4072_v19 = vadd.f32 %v1223_v38, %v1135_v1  ;;  %v2984_v1 = vor.u32 %v3139_v35, %v2983_v28  ;;  %2433 = vmatpush.bf16.msra.mxu3 %v3052_v31 }
 0x27f   :  { %v1305_v20 = vmul.f32 0.5, %v4072_v19  ;;  %2604 = vst [vmem:[#allocation16 + $0xa0] sm:$0xff] %v4072_v19  ;;  %2166 = vmatpush.bf16.msra.mxu0 %v2984_v1  ;;  %v3136_v1 = vld [vmem:[#allocation12 + $0x44] sm:$0xf] }
 0x281   :  { %v3213_v4 = vpop.eup %3212  ;;  %v1357_v34 = vmul.f32 1.442695, %v1305_v20 }
 0x282   :  { %v1136_v62 = vpop.f32.mrf.mxu0  ;;  %1451 = vrot.lane.b32.xlu1 %v3213_v4, %s3453_s0 }
 0x283   :  { %3214 = vpow2.f32 %v1357_v34  ;;  %v1137_v53 = vadd.f32 %v3902_v52, %v1136_v62  ;;  %v1225_v3 = vpop.f32.mrf.mxu1 }
 0x285   :  { %v4085_v45 = vadd.f32 %v1225_v3, %v1137_v53  ;;  %v1430_v53 = vpop.permute.xlu2 %1429 }
 0x287   :  { %v1306_v32 = vmul.f32 0.5, %v4085_v45  ;;  %2605 = vst [vmem:[#allocation16 + $0xa8] sm:$0xff] %v4085_v45 }
 0x289   :  { %v3215_v21 = vpop.eup %3214  ;;  %v1359_v59 = vmul.f32 1.442695, %v1306_v32  ;;  %v1262_v32 = vld [vmem:[%s4564_s2 + $0x48] sm:$0xff] }
 0x28a   :  { %v1139_v56 = vpop.f32.mrf.mxu0  ;;  %1453 = vrot.lane.b32.xlu2 %v3215_v21, %s3453_s0  ;;  %v1517_v21 = vmul.f32 %v1430_v53, %v1261_v48 }
 0x28b   :  { %3216 = vpow2.f32 %v1359_v59  ;;  %v1140_v0 = vadd.f32 %v3902_v52, %v1139_v56  ;;  %v1228_v60 = vpop.f32.mrf.mxu1  ;;  %2911 = vmatmul.msk.bf16.gmra.mxu2 %vm1643_vm0, %v1575_v2  ;;  %2927 = vmatmul.msk.bf16.gmra.mxu3 %vm1643_vm0, %v1575_v2 }
 0x28c   :  { %v1426_v63 = vpop.permute.xlu0 %1425 }
 0x28d   :  { %v4094_v44 = vadd.f32 %v1228_v60, %v1140_v0  ;;  %v1515_v5 = vmul.f32 %v1426_v63, %v1259_v43 }
 0x28f   :  { %v1307_v47 = vmul.f32 0.5, %v4094_v44  ;;  %2606 = vst [vmem:[#allocation16 + $0xb0] sm:$0xff] %v4094_v44  ;;  %v1547_v38 = vadd.f32 %v1515_v5, %v3955_v58  ;;  %v3047_v58 = vld [vmem:[#allocation12 + $0xd0] sm:$0xf] }
 0x290   :  { %v3048_v34 = vor.u32 %v3155_v12, %v3047_v58 }
 0x291   :  { %v3217_v18 = vpop.eup %3216  ;;  %v1361_v6 = vmul.f32 1.442695, %v1307_v47  ;;  %v1549_v47 = vadd.f32 %v1517_v21, %v3970_v39 }
 0x292   :  { %v1141_v25 = vpop.f32.mrf.mxu0  ;;  %1455 = vrot.lane.b32.xlu0 %v3217_v18, %s3453_s0  ;;  %2255 = vmatpush.bf16.msra.mxu1 %v3048_v34 }
 0x293   :  { %3218 = vpow2.f32 %v1361_v6  ;;  %v1142_v41 = vadd.f32 %v3902_v52, %v1141_v25  ;;  %v1230_v36 = vpop.f32.mrf.mxu1 }
 0x294   :  { %v1428_v29 = vpop.permute.xlu1 %1427 }
 0x295   :  { %v4106_v30 = vadd.f32 %v1230_v36, %v1142_v41  ;;  %v1516_v37 = vmul.f32 %v1428_v29, %v1260_v55 }
 0x297   :  { %v1308_v8 = vmul.f32 0.5, %v4106_v30  ;;  %2607 = vst [vmem:[#allocation16 + $0xb8] sm:$0xff] %v4106_v30  ;;  %v1548_v40 = vadd.f32 %v1516_v37, %v3964_v26 }
 0x299   :  { %v3219_v50 = vpop.eup %3218  ;;  %v1363_v14 = vmul.f32 1.442695, %v1308_v8  ;;  %v1576_v15 = vpack.c.bf16 %v1548_v40, %v1547_v38  ;;  %v2977_v38 = vld [vmem:[#allocation12 + $0x48] sm:$0xf0]  ;;  %v3152_v8 = vld [vmem:[#allocation12 + $0xc4] sm:$0xf] }
 0x29a   :  { %v1144_v20 = vpop.f32.mrf.mxu0  ;;  %1457 = vrot.lane.b32.xlu1 %v3219_v50, %s3453_s0  ;;  %v2980_v40 = vor.u32 %v3136_v1, %v2977_v38  ;;  %v3041_v50 = vld [vmem:[#allocation12 + $0xc8] sm:$0xf0]  ;;  %v3135_v1 = vld [vmem:[#allocation12 + $0x34] sm:$0xf0]  ;;  %v3031_v38 = vld [vmem:[#allocation12 + $0xb0] sm:$0xf] }
 0x29b   :  { %3220 = vpow2.f32 %v1363_v14  ;;  %v1145_v51 = vadd.f32 %v3902_v52, %v1144_v20  ;;  %v1233_v4 = vpop.f32.mrf.mxu1  ;;  %2912 = vmatmul.msk.bf16.gmra.mxu2 %vm1643_vm0, %v1576_v15  ;;  %2928 = vmatmul.msk.bf16.gmra.mxu3 %vm1643_vm0, %v1576_v15  ;;  %v2975_v14 = vld [vmem:[#allocation12 + $0x40] sm:$0xf]  ;;  %v3137_v15 = vld [vmem:[#allocation12 + $0x44] sm:$0xf0] }
 0x29c   :  { %v1436_v57 = vpop.permute.xlu2 %1435  ;;  %v2976_v58 = vor.u32 %v3137_v15, %v2975_v14  ;;  %2345 = vmatpush.bf16.msra.mxu2 %v2980_v40  ;;  %v3151_v40 = vld [vmem:[#allocation12 + $0xb4] sm:$0xf0] }
 0x29d   :  { %v4116_v26 = vadd.f32 %v1233_v4, %v1145_v51  ;;  %v1520_v35 = vmul.f32 %v1436_v57, %v1264_v42  ;;  %v3044_v4 = vor.u32 %v3152_v8, %v3041_v50  ;;  %v1267_v50 = vld [vmem:[%s4564_s2 + $0x70] sm:$0xff]  ;;  %v3032_v14 = vor.u32 %v3151_v40, %v3031_v38 }
 0x29e   :  { %2167 = vmatpush.bf16.msra.mxu0 %v2976_v58 }
 0x29f   :  { %v1309_v62 = vmul.f32 0.5, %v4116_v26  ;;  %2608 = vst [vmem:[#allocation16 + $0xc0] sm:$0xff] %v4116_v26  ;;  %v1552_v12 = vadd.f32 %v1520_v35, %v3994_v33  ;;  %2434 = vmatpush.bf16.msra.mxu3 %v3044_v4  ;;  %v3039_v33 = vld [vmem:[#allocation12 + $0xc0] sm:$0xf]  ;;  %v2969_v35 = vld [vmem:[#allocation12 + $0x38] sm:$0xf0] }
 0x2a0   :  { %v3033_v4 = vld [vmem:[#allocation12 + $0xb8] sm:$0xf0] }
 0x2a1   :  { %v3221_v3 = vpop.eup %3220  ;;  %v1365_v16 = vmul.f32 1.442695, %v1309_v62 }
 0x2a2   :  { %v1146_v24 = vpop.f32.mrf.mxu0  ;;  %1459 = vrot.lane.b32.xlu2 %v3221_v3, %s3453_s0 }
 0x2a3   :  { %3222 = vpow2.f32 %v1365_v16  ;;  %v1147_v2 = vadd.f32 %v3902_v52, %v1146_v24  ;;  %v1235_v59 = vpop.f32.mrf.mxu1  ;;  %v3153_v24 = vld [vmem:[#allocation12 + $0xc4] sm:$0xf0] }
 0x2a4   :  { %v1432_v56 = vpop.permute.xlu0 %1431 }
 0x2a5   :  { %v4128_v0 = vadd.f32 %v1235_v59, %v1147_v2  ;;  %v1518_v60 = vmul.f32 %v1432_v56, %v1262_v32  ;;  %v3040_v32 = vor.u32 %v3153_v24, %v3039_v33  ;;  %v1268_v24 = vld [vmem:[%s4564_s2 + $0x78] sm:$0xff] }
 0x2a7   :  { %v1310_v43 = vmul.f32 0.5, %v4128_v0  ;;  %2609 = vst [vmem:[#allocation16 + $0xc8] sm:$0xff] %v4128_v0  ;;  %v1550_v63 = vadd.f32 %v1518_v60, %v3979_v23  ;;  %v1263_v23 = vld [vmem:[%s4564_s2 + $0x50] sm:$0xff]  ;;  %2256 = vmatpush.bf16.msra.mxu1 %v3040_v32 }
 0x2a9   :  { %v3223_v18 = vpop.eup %3222  ;;  %v1367_v6 = vmul.f32 1.442695, %v1310_v43  ;;  %v1577_v25 = vpack.c.bf16 %v1550_v63, %v1549_v47  ;;  %v1266_v43 = vld [vmem:[%s4564_s2 + $0x68] sm:$0xff] }
 0x2aa   :  { %v1149_v55 = vpop.f32.mrf.mxu0  ;;  %1461 = vrot.lane.b32.xlu0 %v3223_v18, %s3453_s0  ;;  %v3238_v18 = vld [vmem:[%s3590_s17] ss:$0 sm:$0xff] }
 0x2ab   :  { %3224 = vpow2.f32 %v1367_v6  ;;  %v1150_v5 = vadd.f32 %v3902_v52, %v1149_v55  ;;  %v1238_v41 = vpop.f32.mrf.mxu1  ;;  %2913 = vmatmul.msk.bf16.gmra.mxu2 %vm1643_vm0, %v1577_v25  ;;  %2929 = vmatmul.msk.bf16.gmra.mxu3 %vm1643_vm0, %v1577_v25 }
 0x2ac   :  { %v1434_v36 = vpop.permute.xlu1 %1433  ;;  %2257 = vmatpush.bf16.msra.mxu1 %v3032_v14 }
 0x2ad   :  { %v4138_v39 = vadd.f32 %v1238_v41, %v1150_v5  ;;  %v1519_v27 = vmul.f32 %v1434_v36, %v1263_v23 }
 0x2af   :  { %v1311_v49 = vmul.f32 0.5, %v4138_v39  ;;  %2610 = vst [vmem:[#allocation16 + $0xd0] sm:$0xff] %v4138_v39  ;;  %v1551_v20 = vadd.f32 %v1519_v27, %v3985_v22 }
 0x2b1   :  { %v3225_v29 = vpop.eup %3224  ;;  %v1369_v9 = vmul.f32 1.442695, %v1311_v49  ;;  %v1578_v48 = vpack.c.bf16 %v1552_v12, %v1551_v20  ;;  %v3150_v20 = vld [vmem:[#allocation12 + $0xb4] sm:$0xf] }
 0x2b2   :  { %v1151_v28 = vpop.f32.mrf.mxu0  ;;  %1463 = vrot.lane.b32.xlu1 %v3225_v29, %s3453_s0  ;;  %v3036_v12 = vor.u32 %v3150_v20, %v3033_v4  ;;  %v2961_v20 = vld [vmem:[#allocation12 + $0x28] sm:$0xf0] }
 0x2b3   :  { %3226 = vpow2.f32 %v1369_v9  ;;  %v1152_v37 = vadd.f32 %v3902_v52, %v1151_v28  ;;  %v1240_v31 = vpop.f32.mrf.mxu1 }
 0x2b4   :  { %v1442_v58 = vpop.permute.xlu2 %1441  ;;  %2435 = vmatpush.bf16.msra.mxu3 %v3036_v12 }
 0x2b5   :  { %v4151_v51 = vadd.f32 %v1240_v31, %v1152_v37  ;;  %v2967_v31 = vld [vmem:[#allocation12 + $0x30] sm:$0xf] }
 0x2b6   :  { %v2968_v8 = vor.u32 %v3135_v1, %v2967_v31 }
 0x2b7   :  { %v1312_v34 = vmul.f32 0.5, %v4151_v51  ;;  %2611 = vst [vmem:[#allocation16 + $0xd8] sm:$0xff] %v4151_v51 }
 0x2b8   :  { %2168 = vmatpush.bf16.msra.mxu0 %v2968_v8 }
 0x2b9   :  { %v3227_v62 = vpop.eup %3226  ;;  %v1371_v53 = vmul.f32 1.442695, %v1312_v34  ;;  %v2959_v34 = vld [vmem:[#allocation12 + $0x20] sm:$0xf] }
 0x2ba   :  { %v1154_v3 = vpop.f32.mrf.mxu0  ;;  %1465 = vrot.lane.b32.xlu2 %v3227_v62, %s3453_s0  ;;  %v3133_v62 = vld [vmem:[#allocation12 + $0x24] sm:$0xf0] }
 0x2bb   :  { %3228 = vpow2.f32 %v1371_v53  ;;  %v1155_v22 = vadd.f32 %v3902_v52, %v1154_v3  ;;  %v1243_v16 = vpop.f32.mrf.mxu1  ;;  %2914 = vmatmul.msk.bf16.gmra.mxu2 %vm1643_vm0, %v1578_v48  ;;  %2930 = vmatmul.msk.bf16.gmra.mxu3 %vm1643_vm0, %v1578_v48  ;;  %v1265_v52 = vld [vmem:[%s4564_s2 + $0x60] sm:$0xff] }
 0x2bc   :  { %v1438_v59 = vpop.permute.xlu0 %1437  ;;  %v3023_v48 = vld [vmem:[#allocation12 + $0xa0] sm:$0xf] }
 0x2bd   :  { %v4160_v21 = vadd.f32 %v1243_v16, %v1155_v22  ;;  %v1521_v63 = vmul.f32 %v1438_v59, %v1265_v52  ;;  %v2960_v22 = vor.u32 %v3133_v62, %v2959_v34  ;;  %v3149_v16 = vld [vmem:[#allocation12 + $0xa4] sm:$0xf0]  ;;  %v1271_v62 = vld [vmem:[%s4564_s2 + $0x90] sm:$0xff] }
 0x2be   :  { %v3024_v32 = vor.u32 %v3149_v16, %v3023_v48 }
 0x2bf   :  { %v1313_v2 = vmul.f32 0.5, %v4160_v21  ;;  %2612 = vst [vmem:[#allocation16 + $0xe0] sm:$0xff] %v4160_v21  ;;  %v1553_v23 = vadd.f32 %v1521_v63, %v4000_v11  ;;  %v3134_v11 = vld [vmem:[#allocation12 + $0x34] sm:$0xf]  ;;  %2169 = vmatpush.bf16.msra.mxu0 %v2960_v22 }
 0x2c0   :  { %v2972_v37 = vor.u32 %v3134_v11, %v2969_v35  ;;  %2258 = vmatpush.bf16.msra.mxu1 %v3024_v32  ;;  %v3145_v11 = vld [vmem:[#allocation12 + $0x84] sm:$0xf0]  ;;  %v1272_v22 = vld [vmem:[%s4564_s2 + $0x98] sm:$0xff] }
 0x2c1   :  { %v3229_v56 = vpop.eup %3228  ;;  %v1373_v60 = vmul.f32 1.442695, %v1313_v2  ;;  %v1523_v2 = vmul.f32 %v1442_v58, %v1267_v50  ;;  %v1597_v58 = vld [vmem:[#allocation10] sm:$0x3] }
 0x2c2   :  { %v1156_v47 = vpop.f32.mrf.mxu0  ;;  %1467 = vrot.lane.b32.xlu0 %v3229_v56, %s3453_s0  ;;  %2346 = vmatpush.bf16.msra.mxu2 %v2972_v37  ;;  %v1270_v37 = vld [vmem:[%s4564_s2 + $0x88] sm:$0xff] }
 0x2c3   :  { %3230 = vpow2.f32 %v1373_v60  ;;  %v1157_v6 = vadd.f32 %v3238_v18, %v1156_v47  ;;  %v1245_v25 = vpop.f32.mrf.mxu1  ;;  %v2951_v60 = vld [vmem:[#allocation12 + $0x10] sm:$0xf]  ;;  %v3131_v47 = vld [vmem:[#allocation12 + $0x14] sm:$0xf0] }
 0x2c4   :  { %v1440_v55 = vpop.permute.xlu1 %1439 }
 0x2c5   :  { %v4172_v5 = vadd.f32 %v1245_v25, %v1157_v6  ;;  %v1522_v41 = vmul.f32 %v1440_v55, %v1266_v43  ;;  %v3015_v43 = vld [vmem:[#allocation12 + $0x90] sm:$0xf]  ;;  %v2952_v25 = vor.u32 %v3131_v47, %v2951_v60  ;;  %v3147_v55 = vld [vmem:[#allocation12 + $0x94] sm:$0xf0] }
 0x2c7   :  { %v1314_v36 = vmul.f32 0.5, %v4172_v5  ;;  %2613 = vst [vmem:[#allocation16 + $0xe8] sm:$0xff] %v4172_v5  ;;  %v1554_v49 = vadd.f32 %v1522_v41, %v4009_v61  ;;  %v3016_v41 = vor.u32 %v3147_v55, %v3015_v43  ;;  %2170 = vmatpush.bf16.msra.mxu0 %v2952_v25 }
 0x2c9   :  { %v3231_v42 = vpop.eup %3230  ;;  %v1375_v57 = vmul.f32 1.442695, %v1314_v36  ;;  %v1579_v29 = vpack.c.bf16 %v1554_v49, %v1553_v23  ;;  %v1555_v23 = vadd.f32 %v1523_v2, %v4015_v10  ;;  %2259 = vmatpush.bf16.msra.mxu1 %v3016_v41  ;;  %v2943_v49 = vld [vmem:[#allocation12] sm:$0xf] }
 0x2ca   :  { %v1159_v9 = vpop.f32.mrf.mxu0  ;;  %1469 = vrot.lane.b32.xlu1 %v3231_v42, %s3453_s0  ;;  %v3129_v42 = vld [vmem:[#allocation12 + $0x4] sm:$0xf0]  ;;  %v1269_v10 = vld [vmem:[%s4564_s2 + $0x80] sm:$0xff] }
 0x2cb   :  { %3232 = vpow2.f32 %v1375_v57  ;;  %v1160_v27 = vadd.f32 %v3238_v18, %v1159_v9  ;;  %v1248_v28 = vpop.f32.mrf.mxu1  ;;  %2915 = vmatmul.msk.bf16.gmra.mxu2 %vm1643_vm0, %v1579_v29  ;;  %2931 = vmatmul.msk.bf16.gmra.mxu3 %vm1643_vm0, %v1579_v29  ;;  %v3007_v57 = vld [vmem:[#allocation12 + $0x80] sm:$0xf] }
 0x2cc   :  { %v3008_v35 = vor.u32 %v3145_v11, %v3007_v57  ;;  %v1448_v31 = vpop.permute.xlu2 %1447 }
 0x2cd   :  { %v4181_v61 = vadd.f32 %v1248_v28, %v1160_v27  ;;  %v2944_v28 = vor.u32 %v3129_v42, %v2943_v49  ;;  %v1526_v8 = vmul.f32 %v1448_v31, %v1270_v37  ;;  %v1273_v42 = vld [vmem:[%s4564_s2 + $0xa0] sm:$0xff] }
 0x2ce   :  { %2260 = vmatpush.bf16.msra.mxu1 %v3008_v35 }
 0x2cf   :  { %v1315_v15 = vmul.f32 0.5, %v4181_v61  ;;  %2614 = vst [vmem:[#allocation16 + $0xf0] sm:$0xff] %v4181_v61  ;;  %2171 = vmatpush.bf16.msra.mxu0 %v2944_v28  ;;  %v1558_v50 = vadd.f32 %v1526_v8, %v4040_v54  ;;  %v4217_v54 = vperm.slane %v1597_v58, 1 }
 0x2d1   :  { %v3233_v53 = vpop.eup %3232  ;;  %v1377_v3 = vmul.f32 1.442695, %v1315_v15  ;;  %v3132_v15 = vld [vmem:[#allocation12 + $0x24] sm:$0xf] }
 0x2d2   :  { %v1161_v33 = vpop.f32.mrf.mxu0  ;;  %1471 = vrot.lane.b32.xlu2 %v3233_v53, %s3453_s0  ;;  %v2964_v4 = vor.u32 %v3132_v15, %v2961_v20  ;;  %v3148_v53 = vld [vmem:[#allocation12 + $0xa4] sm:$0xf] }
 0x2d3   :  { %3234 = vpow2.f32 %v1377_v3  ;;  %v1162_v52 = vadd.f32 %v3238_v18, %v1161_v33  ;;  %v1250_v59 = vpop.f32.mrf.mxu1  ;;  %v3025_v3 = vld [vmem:[#allocation12 + $0xa8] sm:$0xf0] }
 0x2d4   :  { %v1444_v56 = vpop.permute.xlu0 %1443  ;;  %2347 = vmatpush.bf16.msra.mxu2 %v2964_v4  ;;  %v3028_v16 = vor.u32 %v3148_v53, %v3025_v3  ;;  %v1276_v53 = vld [vmem:[%s4564_s2 + $0xb8] sm:$0xff] }
 0x2d5   :  { %v4192_v63 = vadd.f32 %v1250_v59, %v1162_v52  ;;  %v1524_v6 = vmul.f32 %v1444_v56, %v1268_v24 }
 0x2d6   :  { %2436 = vmatpush.bf16.msra.mxu3 %v3028_v16  ;;  %v3017_v16 = vld [vmem:[#allocation12 + $0x98] sm:$0xf0] }
 0x2d7   :  { %v1316_v36 = vmul.f32 0.5, %v4192_v63  ;;  %2615 = vst [vmem:[#allocation16 + $0xf8] sm:$0xff] %v4192_v63  ;;  %v1556_v18 = vadd.f32 %v1524_v6, %v4022_v17 }
 0x2d9   :  { %v3235_v29 = vpop.eup %3234  ;;  %v1379_v9 = vmul.f32 1.442695, %v1316_v36  ;;  %v1580_v27 = vpack.c.bf16 %v1556_v18, %v1555_v23 }
 0x2da   :  { %1473 = vrot.lane.b32.xlu0 %v3235_v29, %s3453_s0  ;;  %v1274_v29 = vld [vmem:[%s4564_s2 + $0xa8] sm:$0xff] }
 0x2db   :  { %3236 = vpow2.f32 %v1379_v9  ;;  %2916 = vmatmul.msk.bf16.gmra.mxu2 %vm1643_vm0, %v1580_v27  ;;  %2932 = vmatmul.msk.bf16.gmra.mxu3 %vm1643_vm0, %v1580_v27 }
 0x2dc   :  { %v1446_v17 = vpop.permute.xlu1 %1445 }
 0x2dd   :  { %v1525_v38 = vmul.f32 %v1446_v17, %v1269_v10 }
 0x2df   :  { %v1557_v40 = vadd.f32 %v1525_v38, %v4028_v7  ;;  %v4215_v7 = vperm.slane %v1597_v58, 0  ;;  %v2953_v58 = vld [vmem:[#allocation12 + $0x18] sm:$0xf0] }
 0x2e1   :  { %v3237_v1 = vpop.eup %3236  ;;  %v1581_v14 = vpack.c.bf16 %v1558_v50, %v1557_v40 }
 0x2e2   :  { %1475 = vrot.lane.b32.xlu1 %v3237_v1, %s3453_s0 }
 0x2e4   :  { %v1454_v57 = vpop.permute.xlu2 %1453 }
 0x2e5   :  { %v1529_v9 = vmul.f32 %v1454_v57, %v1273_v42  ;;  %v1277_v42 = vld [vmem:[%s4564_s2 + $0xc0] sm:$0xff] }
 0x2e7   :  { %v1561_v37 = vadd.f32 %v1529_v9, %v4072_v19  ;;  %v3130_v19 = vld [vmem:[#allocation12 + $0x14] sm:$0xf] }
 0x2eb   :  { %2917 = vmatmul.msk.bf16.gmra.mxu2 %vm1643_vm0, %v1581_v14  ;;  %2933 = vmatmul.msk.bf16.gmra.mxu3 %vm1643_vm0, %v1581_v14 }
 0x2ec   :  { %v1450_v48 = vpop.permute.xlu0 %1449 }
 0x2ed   :  { %v1527_v33 = vmul.f32 %v1450_v48, %v1271_v62 }
 0x2ee   :  { %v1701_v12 = vpop.f32.mrf.mxu2  ;;  %v1790_v34 = vpop.f32.mrf.mxu3 }
 0x2ef   :  { %v1702_v24 = vadd.f32 %v1701_v12, %v4215_v7  ;;  %v1791_v2 = vadd.f32 %v1790_v34, %v4217_v54  ;;  %v1559_v60 = vadd.f32 %v1527_v33, %v4050_v46  ;;  %v1275_v12 = vld [vmem:[%s4564_s2 + $0xb0] sm:$0xff] }
 0x2f1   :  { %v1870_v25 = vmax.f32 %v1702_v24, 0.0  ;;  %v1871_v55 = vmax.f32 %v1791_v2, 0.0 }
 0x2f4   :  { %v1452_v32 = vpop.permute.xlu1 %1451 }
 0x2f5   :  { %v1528_v52 = vmul.f32 %v1452_v32, %v1272_v22  ;;  %v3146_v22 = vld [vmem:[#allocation12 + $0x94] sm:$0xf] }
 0x2f6   :  { %v1703_v59 = vpop.f32.mrf.mxu2  ;;  %v1792_v56 = vpop.f32.mrf.mxu3  ;;  %v3020_v24 = vor.u32 %v3146_v22, %v3017_v16  ;;  %v1280_v16 = vld [vmem:[%s4564_s2 + $0xd8] sm:$0xff] }
 0x2f7   :  { %v1560_v47 = vadd.f32 %v1528_v52, %v4062_v13  ;;  %v1704_v43 = vadd.f32 %v1703_v59, %v4215_v7  ;;  %v1793_v6 = vadd.f32 %v1792_v56, %v4217_v54 }
 0x2f8   :  { %2437 = vmatpush.bf16.msra.mxu3 %v3020_v24 }
 0x2f9   :  { %v1582_v41 = vpack.c.bf16 %v1560_v47, %v1559_v60  ;;  %v1872_v23 = vmax.f32 %v1704_v43, 0.0  ;;  %v1873_v36 = vmax.f32 %v1793_v6, 0.0 }
 0x2fb   :  { %v4228_v18 = vpack.c.bf16 %v1872_v23, %v1870_v25  ;;  %v4230_v49 = vpack.c.bf16 %v1873_v36, %v1871_v55  ;;  %2918 = vmatmul.msk.bf16.gmra.mxu2 %vm1643_vm0, %v1582_v41  ;;  %2934 = vmatmul.msk.bf16.gmra.mxu3 %vm1643_vm0, %v1582_v41 }
 0x2fc   :  { %v1460_v3 = vpop.permute.xlu2 %1459 }
 0x2fd   :  { %2172 = vmatmul.bf16.vlgmr.msra.gmra.mxu0 %v4228_v18  ;;  %2261 = vmatmul.bf16.vlgmr.msra.gmra.mxu1 %v4230_v49  ;;  %v1532_v32 = vmul.f32 %v1460_v3, %v1276_v53  ;;  %v1279_v53 = vld [vmem:[%s4564_s2 + $0xd0] sm:$0xff] }
 0x2fe   :  { %v1706_v46 = vpop.f32.mrf.mxu2  ;;  %v1795_v13 = vpop.f32.mrf.mxu3 }
 0x2ff   :  { %v1707_v27 = vadd.f32 %v1706_v46, %v4215_v7  ;;  %v1796_v11 = vadd.f32 %v1795_v13, %v4217_v54  ;;  %v1564_v56 = vadd.f32 %v1532_v32, %v4106_v30 }
 0x301   :  { %v1874_v8 = vmax.f32 %v1707_v27, 0.0  ;;  %v1875_v40 = vmax.f32 %v1796_v11, 0.0 }
 0x304   :  { %v1456_v28 = vpop.permute.xlu0 %1455 }
 0x305   :  { %v1530_v35 = vmul.f32 %v1456_v28, %v1274_v29  ;;  %v1278_v29 = vld [vmem:[%s4564_s2 + $0xc8] sm:$0xff] }
 0x306   :  { %v1708_v10 = vpop.f32.mrf.mxu2  ;;  %v1797_v17 = vpop.f32.mrf.mxu3 }
 0x307   :  { %v1562_v31 = vadd.f32 %v1530_v35, %v4085_v45  ;;  %v1709_v1 = vadd.f32 %v1708_v10, %v4215_v7  ;;  %v1798_v38 = vadd.f32 %v1797_v17, %v4217_v54  ;;  %v2956_v45 = vor.u32 %v3130_v19, %v2953_v58 }
 0x309   :  { %v1583_v50 = vpack.c.bf16 %v1562_v31, %v1561_v37  ;;  %v1876_v14 = vmax.f32 %v1709_v1, 0.0  ;;  %v1877_v15 = vmax.f32 %v1798_v38, 0.0  ;;  %2348 = vmatpush.bf16.msra.mxu2 %v2956_v45  ;;  %v2945_v45 = vld [vmem:[#allocation12 + $0x8] sm:$0xf0] }
 0x30b   :  { %2919 = vmatmul.msk.bf16.gmra.mxu2 %vm1643_vm0, %v1583_v50  ;;  %2935 = vmatmul.msk.bf16.gmra.mxu3 %vm1643_vm0, %v1583_v50  ;;  %v4250_v20 = vpack.c.bf16 %v1876_v14, %v1874_v8  ;;  %v4252_v4 = vpack.c.bf16 %v1877_v15, %v1875_v40 }
 0x30c   :  { %v1458_v34 = vpop.permute.xlu1 %1457 }
 0x30d   :  { %2177 = vmatmul.bf16.gmra.mxu0 %v4250_v20  ;;  %2266 = vmatmul.bf16.gmra.mxu1 %v4252_v4  ;;  %v1531_v33 = vmul.f32 %v1458_v34, %v1275_v12 }
 0x30e   :  { %v1711_v62 = vpop.f32.mrf.mxu2  ;;  %v1800_v48 = vpop.f32.mrf.mxu3 }
 0x30f   :  { %v1563_v2 = vadd.f32 %v1531_v33, %v4094_v44  ;;  %v1712_v52 = vadd.f32 %v1711_v62, %v4215_v7  ;;  %v1801_v59 = vadd.f32 %v1800_v48, %v4217_v54  ;;  %v3144_v62 = vld [vmem:[#allocation12 + $0x84] sm:$0xf]  ;;  %v3009_v48 = vld [vmem:[#allocation12 + $0x88] sm:$0xf0] }
 0x310   :  { %v3012_v22 = vor.u32 %v3144_v62, %v3009_v48 }
 0x311   :  { %v1584_v25 = vpack.c.bf16 %v1564_v56, %v1563_v2  ;;  %v1878_v55 = vmax.f32 %v1712_v52, 0.0  ;;  %v1879_v41 = vmax.f32 %v1801_v59, 0.0 }
 0x312   :  { %2438 = vmatpush.bf16.msra.mxu3 %v3012_v22 }
 0x314   :  { %v1466_v3 = vpop.permute.xlu2 %1465 }
 0x315   :  { %v1535_v33 = vmul.f32 %v1466_v3, %v1279_v53 }
 0x316   :  { %v1713_v60 = vpop.f32.mrf.mxu2  ;;  %v1802_v47 = vpop.f32.mrf.mxu3 }
 0x317   :  { %v1714_v43 = vadd.f32 %v1713_v60, %v4215_v7  ;;  %v1803_v6 = vadd.f32 %v1802_v47, %v4217_v54  ;;  %v1567_v60 = vadd.f32 %v1535_v33, %v4138_v39  ;;  %v1281_v39 = vld [vmem:[%s4564_s2 + $0xe0] sm:$0xff] }
 0x319   :  { %v1880_v23 = vmax.f32 %v1714_v43, 0.0  ;;  %v1881_v36 = vmax.f32 %v1803_v6, 0.0 }
 0x31b   :  { %2920 = vmatmul.msk.bf16.gmra.mxu2 %vm1643_vm0, %v1584_v25  ;;  %2936 = vmatmul.msk.bf16.gmra.mxu3 %vm1643_vm0, %v1584_v25  ;;  %v4270_v44 = vpack.c.bf16 %v1880_v23, %v1878_v55  ;;  %v4272_v46 = vpack.c.bf16 %v1881_v36, %v1879_v41 }
 0x31c   :  { %v1462_v57 = vpop.permute.xlu0 %1461 }
 0x31d   :  { %2182 = vmatmul.bf16.gmra.mxu0 %v4270_v44  ;;  %2271 = vmatmul.bf16.gmra.mxu1 %v4272_v46  ;;  %v1533_v9 = vmul.f32 %v1462_v57, %v1277_v42 }
 0x31e   :  { %v1716_v30 = vpop.f32.mrf.mxu2  ;;  %v1805_v13 = vpop.f32.mrf.mxu3 }
 0x31f   :  { %v1717_v27 = vadd.f32 %v1716_v30, %v4215_v7  ;;  %v1806_v11 = vadd.f32 %v1805_v13, %v4217_v54  ;;  %v1565_v37 = vadd.f32 %v1533_v9, %v4116_v26  ;;  %v3128_v26 = vld [vmem:[#allocation12 + $0x4] sm:$0xf] }
 0x321   :  { %v1882_v8 = vmax.f32 %v1717_v27, 0.0  ;;  %v1883_v40 = vmax.f32 %v1806_v11, 0.0 }
 0x324   :  { %v1464_v28 = vpop.permute.xlu1 %1463 }
 0x325   :  { %v1534_v35 = vmul.f32 %v1464_v28, %v1278_v29  ;;  %v1282_v29 = vld [vmem:[%s4564_s2 + $0xe8] sm:$0xff] }
 0x326   :  { %v1718_v10 = vpop.f32.mrf.mxu2  ;;  %v1807_v17 = vpop.f32.mrf.mxu3 }
 0x327   :  { %v1566_v31 = vadd.f32 %v1534_v35, %v4128_v0  ;;  %v1719_v1 = vadd.f32 %v1718_v10, %v4215_v7  ;;  %v1808_v38 = vadd.f32 %v1807_v17, %v4217_v54  ;;  %v2948_v0 = vor.u32 %v3128_v26, %v2945_v45 }
 0x329   :  { %v1585_v50 = vpack.c.bf16 %v1566_v31, %v1565_v37  ;;  %v1884_v14 = vmax.f32 %v1719_v1, 0.0  ;;  %v1885_v15 = vmax.f32 %v1808_v38, 0.0  ;;  %2349 = vmatpush.bf16.msra.mxu2 %v2948_v0  ;;  %v1283_v0 = vld [vmem:[%s4564_s2 + $0xf0] sm:$0xff] }
 0x32b   :  { %2921 = vmatmul.msk.bf16.gmra.mxu2 %vm1643_vm0, %v1585_v50  ;;  %2937 = vmatmul.msk.bf16.gmra.mxu3 %vm1643_vm0, %v1585_v50  ;;  %v4290_v19 = vpack.c.bf16 %v1884_v14, %v1882_v8  ;;  %v4292_v58 = vpack.c.bf16 %v1885_v15, %v1883_v40 }
 0x32c   :  { %v1472_v9 = vpop.permute.xlu2 %1471 }
 0x32d   :  { %2187 = vmatmul.bf16.gmra.mxu0 %v4290_v19  ;;  %2276 = vmatmul.bf16.gmra.mxu1 %v4292_v58  ;;  %v1538_v28 = vmul.f32 %v1472_v9, %v1282_v29 }
 0x32e   :  { %v1721_v12 = vpop.f32.mrf.mxu2  ;;  %v1810_v34 = vpop.f32.mrf.mxu3 }
 0x32f   :  { %v1722_v24 = vadd.f32 %v1721_v12, %v4215_v7  ;;  %v1811_v2 = vadd.f32 %v1810_v34, %v4217_v54  ;;  %v1570_v17 = vadd.f32 %v1538_v28, %v4172_v5  ;;  %v1284_v34 = vld [vmem:[%s4564_s2 + $0xf8] sm:$0xff]  ;;  %s3454_s2 = smov [#allocation16]  }
 0x330   :  { %s2633_s29 = sshll.u32 %s3454_s2, 4  ;;  %s2634_s29 = int_to_ptr.vmem [resolvable:$true] %s2633_s29 }
 0x331   :  { %v1886_v25 = vmax.f32 %v1722_v24, 0.0  ;;  %v1887_v55 = vmax.f32 %v1811_v2, 0.0  ;;  %2641 = dma.vmem_to_hbm [thread:$0]  %s2634_s29, 4096, %s2636_s20, [#allocation17], %s3444_s22, %s3444_s22, %s3445_s24  }
 0x332   :  { %s2620_s22 = sshll.u32 %s3455_s12, 4  ;;  %s2621_s22 = int_to_ptr.vmem [resolvable:$true] %s2620_s22 }
 0x334   :  { %v1468_v32 = vpop.permute.xlu0 %1467 }
 0x335   :  { %v1536_v52 = vmul.f32 %v1468_v32, %v1280_v16 }
 0x336   :  { %v1723_v59 = vpop.f32.mrf.mxu2  ;;  %v1812_v56 = vpop.f32.mrf.mxu3 }
 0x337   :  { %v1568_v47 = vadd.f32 %v1536_v52, %v4151_v51  ;;  %v1724_v43 = vadd.f32 %v1723_v59, %v4215_v7  ;;  %v1813_v6 = vadd.f32 %v1812_v56, %v4217_v54 }
 0x339   :  { %v1586_v41 = vpack.c.bf16 %v1568_v47, %v1567_v60  ;;  %v1888_v23 = vmax.f32 %v1724_v43, 0.0  ;;  %v1889_v36 = vmax.f32 %v1813_v6, 0.0 }
 0x33b   :  { %2922 = vmatmul.msk.bf16.gmra.mxu2 %vm1643_vm0, %v1586_v41  ;;  %2938 = vmatmul.msk.bf16.gmra.mxu3 %vm1643_vm0, %v1586_v41  ;;  %v4310_v30 = vpack.c.bf16 %v1888_v23, %v1886_v25  ;;  %v4312_v13 = vpack.c.bf16 %v1889_v36, %v1887_v55 }
 0x33c   :  { %v1470_v51 = vpop.permute.xlu1 %1469 }
 0x33d   :  { %2192 = vmatmul.bf16.gmra.mxu0 %v4310_v30  ;;  %2281 = vmatmul.bf16.gmra.mxu1 %v4312_v13  ;;  %v1537_v27 = vmul.f32 %v1470_v51, %v1281_v39 }
 0x33e   :  { %v1726_v42 = vpop.f32.mrf.mxu2  ;;  %v1815_v57 = vpop.f32.mrf.mxu3 }
 0x33f   :  { %v1569_v11 = vadd.f32 %v1537_v27, %v4160_v21  ;;  %v1727_v35 = vadd.f32 %v1726_v42, %v4215_v7  ;;  %v1816_v10 = vadd.f32 %v1815_v57, %v4217_v54 }
 0x341   :  { %v1587_v8 = vpack.c.bf16 %v1570_v17, %v1569_v11  ;;  %v1890_v40 = vmax.f32 %v1727_v35, 0.0  ;;  %v1891_v50 = vmax.f32 %v1816_v10, 0.0  ;;  %v4368_v10 = vld [vmem:[#allocation13] sm:$0x3] }
 0x346   :  { %v1728_v37 = vpop.f32.mrf.mxu2  ;;  %v1817_v31 = vpop.f32.mrf.mxu3 }
 0x347   :  { %v1729_v1 = vadd.f32 %v1728_v37, %v4215_v7  ;;  %v1818_v38 = vadd.f32 %v1817_v31, %v4217_v54 }
 0x349   :  { %v1892_v14 = vmax.f32 %v1729_v1, 0.0  ;;  %v1893_v15 = vmax.f32 %v1818_v38, 0.0  ;;  %v4375_v38 = vperm.slane %v4368_v10, 0 }
 0x34b   :  { %2923 = vmatmul.msk.bf16.gmra.mxu2 %vm1643_vm0, %v1587_v8  ;;  %2939 = vmatmul.msk.bf16.gmra.mxu3 %vm1643_vm0, %v1587_v8  ;;  %v4330_v21 = vpack.c.bf16 %v1892_v14, %v1890_v40  ;;  %v4332_v26 = vpack.c.bf16 %v1893_v15, %v1891_v50 }
 0x34c   :  { %v1474_v12 = vpop.permute.xlu0 %1473 }
 0x34d   :  { %2197 = vmatmul.bf16.gmra.mxu0 %v4330_v21  ;;  %2286 = vmatmul.bf16.gmra.mxu1 %v4332_v26  ;;  %v1539_v62 = vmul.f32 %v1474_v12, %v1283_v0 }
 0x34e   :  { %v1731_v5 = vpop.f32.mrf.mxu2  ;;  %v1820_v45 = vpop.f32.mrf.mxu3 }
 0x34f   :  { %v1732_v48 = vadd.f32 %v1731_v5, %v4215_v7  ;;  %v1821_v3 = vadd.f32 %v1820_v45, %v4217_v54  ;;  %v1571_v24 = vadd.f32 %v1539_v62, %v4181_v61 }
 0x351   :  { %v1894_v59 = vmax.f32 %v1732_v48, 0.0  ;;  %v1895_v56 = vmax.f32 %v1821_v3, 0.0 }
 0x354   :  { %v1476_v53 = vpop.permute.xlu1 %1475 }
 0x355   :  { %v1540_v22 = vmul.f32 %v1476_v53, %v1284_v34 }
 0x356   :  { %v1733_v16 = vpop.f32.mrf.mxu2  ;;  %v1822_v33 = vpop.f32.mrf.mxu3 }
 0x357   :  { %v1572_v32 = vadd.f32 %v1540_v22, %v4192_v63  ;;  %v1734_v2 = vadd.f32 %v1733_v16, %v4215_v7  ;;  %v1823_v52 = vadd.f32 %v1822_v33, %v4217_v54 }
 0x359   :  { %v1588_v60 = vpack.c.bf16 %v1572_v32, %v1571_v24  ;;  %v1896_v47 = vmax.f32 %v1734_v2, 0.0  ;;  %v1897_v43 = vmax.f32 %v1823_v52, 0.0 }
 0x35b   :  { %2924 = vmatmul.msk.bf16.gmra.mxu2 %vm1643_vm0, %v1588_v60  ;;  %2940 = vmatmul.msk.bf16.gmra.mxu3 %vm1643_vm0, %v1588_v60  ;;  %v4350_v6 = vpack.c.bf16 %v1896_v47, %v1894_v59  ;;  %v4352_v25 = vpack.c.bf16 %v1897_v43, %v1895_v56 }
 0x35d   :  { %2202 = vmatmul.bf16.gmra.mxu0 %v4350_v6  ;;  %2291 = vmatmul.bf16.gmra.mxu1 %v4352_v25 }
 0x35e   :  { %v1736_v61 = vpop.f32.mrf.mxu2  ;;  %v1825_v63 = vpop.f32.mrf.mxu3 }
 0x35f   :  { %v1737_v55 = vadd.f32 %v1736_v61, %v4215_v7  ;;  %v1826_v41 = vadd.f32 %v1825_v63, %v4217_v54 }
 0x361   :  { %v1898_v42 = vmax.f32 %v1737_v55, 0.0  ;;  %v1899_v57 = vmax.f32 %v1826_v41, 0.0 }
 0x366   :  { %v1738_v23 = vpop.f32.mrf.mxu2  ;;  %v1827_v36 = vpop.f32.mrf.mxu3 }
 0x367   :  { %v1739_v39 = vadd.f32 %v1738_v23, %v4215_v7  ;;  %v1828_v51 = vadd.f32 %v1827_v36, %v4217_v54 }
 0x369   :  { %v1900_v29 = vmax.f32 %v1739_v39, 0.0  ;;  %v1901_v9 = vmax.f32 %v1828_v51, 0.0 }
 0x36b   :  { %2350 = vmatmul.bf16.vlgmr.msra.gmra.mxu2 %v4228_v18  ;;  %2439 = vmatmul.bf16.vlgmr.msra.gmra.mxu3 %v4230_v49  ;;  %v4362_v27 = vpack.c.bf16 %v1900_v29, %v1898_v42  ;;  %v4364_v28 = vpack.c.bf16 %v1901_v9, %v1899_v57 }
 0x36d   :  { %2207 = vmatmul.bf16.gmra.mxu0 %v4362_v27  ;;  %2296 = vmatmul.bf16.gmra.mxu1 %v4364_v28 }
 0x36e   :  { %v1741_v11 = vpop.f32.mrf.mxu2  ;;  %v1830_v35 = vpop.f32.mrf.mxu3 }
 0x36f   :  { %v1742_v17 = vadd.f32 %v1741_v11, %v4215_v7  ;;  %v1831_v37 = vadd.f32 %v1830_v35, %v4217_v54 }
 0x371   :  { %v1902_v8 = vmax.f32 %v1742_v17, 0.0  ;;  %v1903_v40 = vmax.f32 %v1831_v37, 0.0 }
 0x376   :  { %v1743_v31 = vpop.f32.mrf.mxu2  ;;  %v1832_v18 = vpop.f32.mrf.mxu3 }
 0x377   :  { %v1744_v49 = vadd.f32 %v1743_v31, %v4215_v7  ;;  %v1833_v1 = vadd.f32 %v1832_v18, %v4217_v54 }
 0x379   :  { %v1904_v50 = vmax.f32 %v1744_v49, 0.0  ;;  %v1905_v14 = vmax.f32 %v1833_v1, 0.0 }
 0x37a   :  { %v2173_v15 = vpop.f32.mrf.mxu0  ;;  %v2262_v5 = vpop.f32.mrf.mxu1 }
 0x37b   :  { %v2174_v45 = vadd.f32 %v2173_v15, %v4375_v38  ;;  %2355 = vmatmul.bf16.gmra.mxu2 %v4250_v20  ;;  %2444 = vmatmul.bf16.gmra.mxu3 %v4252_v4  ;;  %v4380_v0 = vpack.c.bf16 %v1904_v50, %v1902_v8  ;;  %v4382_v12 = vpack.c.bf16 %v1905_v14, %v1903_v40 }
 0x37d   :  { %v2263_v34 = vadd.f32 %v2262_v5, %v2174_v45  ;;  %2212 = vmatmul.bf16.gmra.mxu0 %v4380_v0  ;;  %2301 = vmatmul.bf16.gmra.mxu1 %v4382_v12 }
 0x37e   :  { %v1746_v62 = vpop.f32.mrf.mxu2  ;;  %v1835_v48 = vpop.f32.mrf.mxu3 }
 0x37f   :  { %2520 = vst [vmem:[#allocation15] sm:$0xff] %v2263_v34  ;;  %v1747_v20 = vadd.f32 %v1746_v62, %v4215_v7  ;;  %v1836_v4 = vadd.f32 %v1835_v48, %v4217_v54 }
 0x381   :  { %v1906_v52 = vmax.f32 %v1747_v20, 0.0  ;;  %v1907_v59 = vmax.f32 %v1836_v4, 0.0 }
 0x382   :  { %v2175_v53 = vpop.f32.mrf.mxu0  ;;  %v2264_v3 = vpop.f32.mrf.mxu1 }
 0x383   :  { %v2176_v22 = vadd.f32 %v2175_v53, %v4375_v38 }
 0x385   :  { %v2265_v16 = vadd.f32 %v2264_v3, %v2176_v22 }
 0x386   :  { %v1748_v33 = vpop.f32.mrf.mxu2  ;;  %v1837_v24 = vpop.f32.mrf.mxu3 }
 0x387   :  { %2522 = vst [vmem:[#allocation15 + $0x10] sm:$0xff] %v2265_v16  ;;  %v1749_v32 = vadd.f32 %v1748_v33, %v4215_v7  ;;  %v1838_v2 = vadd.f32 %v1837_v24, %v4217_v54 }
 0x389   :  { %v1908_v56 = vmax.f32 %v1749_v32, 0.0  ;;  %v1909_v60 = vmax.f32 %v1838_v2, 0.0 }
 0x38a   :  { %v2178_v47 = vpop.f32.mrf.mxu0  ;;  %v2267_v43 = vpop.f32.mrf.mxu1 }
 0x38b   :  { %v2179_v61 = vadd.f32 %v2178_v47, %v4375_v38  ;;  %2360 = vmatmul.bf16.gmra.mxu2 %v4270_v44  ;;  %2449 = vmatmul.bf16.gmra.mxu3 %v4272_v46  ;;  %v4394_v63 = vpack.c.bf16 %v1908_v56, %v1906_v52  ;;  %v4396_v55 = vpack.c.bf16 %v1909_v60, %v1907_v59 }
 0x38d   :  { %v2268_v41 = vadd.f32 %v2267_v43, %v2179_v61  ;;  %2217 = vmatmul.bf16.gmra.mxu0 %v4394_v63  ;;  %2306 = vmatmul.bf16.gmra.mxu1 %v4396_v55 }
 0x38e   :  { %v1751_v23 = vpop.f32.mrf.mxu2  ;;  %v1840_v36 = vpop.f32.mrf.mxu3 }
 0x38f   :  { %2524 = vst [vmem:[#allocation15 + $0x20] sm:$0xff] %v2268_v41  ;;  %v1752_v44 = vadd.f32 %v1751_v23, %v4215_v7  ;;  %v1841_v46 = vadd.f32 %v1840_v36, %v4217_v54 }
 0x391   :  { %v1910_v17 = vmax.f32 %v1752_v44, 0.0  ;;  %v1911_v37 = vmax.f32 %v1841_v46, 0.0 }
 0x392   :  { %v2180_v39 = vpop.f32.mrf.mxu0  ;;  %v2269_v51 = vpop.f32.mrf.mxu1 }
 0x393   :  { %v2181_v42 = vadd.f32 %v2180_v39, %v4375_v38 }
 0x395   :  { %v2270_v57 = vadd.f32 %v2269_v51, %v2181_v42 }
 0x396   :  { %v1753_v29 = vpop.f32.mrf.mxu2  ;;  %v1842_v9 = vpop.f32.mrf.mxu3 }
 0x397   :  { %2526 = vst [vmem:[#allocation15 + $0x30] sm:$0xff] %v2270_v57  ;;  %v1754_v11 = vadd.f32 %v1753_v29, %v4215_v7  ;;  %v1843_v35 = vadd.f32 %v1842_v9, %v4217_v54 }
 0x399   :  { %v1912_v31 = vmax.f32 %v1754_v11, 0.0  ;;  %v1913_v18 = vmax.f32 %v1843_v35, 0.0 }
 0x39a   :  { %v2183_v49 = vpop.f32.mrf.mxu0  ;;  %v2272_v1 = vpop.f32.mrf.mxu1 }
 0x39b   :  { %v2184_v8 = vadd.f32 %v2183_v49, %v4375_v38  ;;  %2365 = vmatmul.bf16.gmra.mxu2 %v4290_v19  ;;  %2454 = vmatmul.bf16.gmra.mxu3 %v4292_v58  ;;  %v4408_v40 = vpack.c.bf16 %v1912_v31, %v1910_v17  ;;  %v4410_v50 = vpack.c.bf16 %v1913_v18, %v1911_v37 }
 0x39d   :  { %v2273_v14 = vadd.f32 %v2272_v1, %v2184_v8  ;;  %2222 = vmatmul.bf16.gmra.mxu0 %v4408_v40  ;;  %2311 = vmatmul.bf16.gmra.mxu1 %v4410_v50 }
 0x39e   :  { %v1756_v15 = vpop.f32.mrf.mxu2  ;;  %v1845_v5 = vpop.f32.mrf.mxu3 }
 0x39f   :  { %2528 = vst [vmem:[#allocation15 + $0x40] sm:$0xff] %v2273_v14  ;;  %v1757_v19 = vadd.f32 %v1756_v15, %v4215_v7  ;;  %v1846_v58 = vadd.f32 %v1845_v5, %v4217_v54 }
 0x3a1   :  { %v1914_v4 = vmax.f32 %v1757_v19, 0.0  ;;  %v1915_v16 = vmax.f32 %v1846_v58, 0.0 }
 0x3a2   :  { %v2185_v45 = vpop.f32.mrf.mxu0  ;;  %v2274_v34 = vpop.f32.mrf.mxu1 }
 0x3a3   :  { %v2186_v62 = vadd.f32 %v2185_v45, %v4375_v38 }
 0x3a5   :  { %v2275_v48 = vadd.f32 %v2274_v34, %v2186_v62 }
 0x3a6   :  { %v1758_v53 = vpop.f32.mrf.mxu2  ;;  %v1847_v3 = vpop.f32.mrf.mxu3 }
 0x3a7   :  { %2530 = vst [vmem:[#allocation15 + $0x50] sm:$0xff] %v2275_v48  ;;  %v1759_v22 = vadd.f32 %v1758_v53, %v4215_v7  ;;  %v1848_v20 = vadd.f32 %v1847_v3, %v4217_v54 }
 0x3a9   :  { %v1916_v33 = vmax.f32 %v1759_v22, 0.0  ;;  %v1917_v24 = vmax.f32 %v1848_v20, 0.0 }
 0x3aa   :  { %v2188_v32 = vpop.f32.mrf.mxu0  ;;  %v2277_v2 = vpop.f32.mrf.mxu1 }
 0x3ab   :  { %v2189_v52 = vadd.f32 %v2188_v32, %v4375_v38  ;;  %2370 = vmatmul.bf16.gmra.mxu2 %v4310_v30  ;;  %2459 = vmatmul.bf16.gmra.mxu3 %v4312_v13  ;;  %v4422_v59 = vpack.c.bf16 %v1916_v33, %v1914_v4  ;;  %v4424_v56 = vpack.c.bf16 %v1917_v24, %v1915_v16 }
 0x3ad   :  { %v2278_v60 = vadd.f32 %v2277_v2, %v2189_v52  ;;  %2227 = vmatmul.bf16.gmra.mxu0 %v4422_v59  ;;  %2316 = vmatmul.bf16.gmra.mxu1 %v4424_v56 }
 0x3ae   :  { %v1761_v47 = vpop.f32.mrf.mxu2  ;;  %v1850_v43 = vpop.f32.mrf.mxu3 }
 0x3af   :  { %2532 = vst [vmem:[#allocation15 + $0x60] sm:$0xff] %v2278_v60  ;;  %v1762_v30 = vadd.f32 %v1761_v47, %v4215_v7  ;;  %v1851_v13 = vadd.f32 %v1850_v43, %v4217_v54 }
 0x3b1   :  { %v1918_v46 = vmax.f32 %v1762_v30, 0.0  ;;  %v1919_v57 = vmax.f32 %v1851_v13, 0.0 }
 0x3b2   :  { %v2190_v61 = vpop.f32.mrf.mxu0  ;;  %v2279_v41 = vpop.f32.mrf.mxu1 }
 0x3b3   :  { %v2191_v23 = vadd.f32 %v2190_v61, %v4375_v38 }
 0x3b5   :  { %v2280_v36 = vadd.f32 %v2279_v41, %v2191_v23 }
 0x3b6   :  { %v1763_v39 = vpop.f32.mrf.mxu2  ;;  %v1852_v51 = vpop.f32.mrf.mxu3 }
 0x3b7   :  { %2534 = vst [vmem:[#allocation15 + $0x70] sm:$0xff] %v2280_v36  ;;  %v1764_v42 = vadd.f32 %v1763_v39, %v4215_v7  ;;  %v1853_v44 = vadd.f32 %v1852_v51, %v4217_v54 }
 0x3b9   :  { %v1920_v29 = vmax.f32 %v1764_v42, 0.0  ;;  %v1921_v9 = vmax.f32 %v1853_v44, 0.0 }
 0x3ba   :  { %v2193_v11 = vpop.f32.mrf.mxu0  ;;  %v2282_v35 = vpop.f32.mrf.mxu1 }
 0x3bb   :  { %v2194_v17 = vadd.f32 %v2193_v11, %v4375_v38  ;;  %2375 = vmatmul.bf16.gmra.mxu2 %v4330_v21  ;;  %2464 = vmatmul.bf16.gmra.mxu3 %v4332_v26  ;;  %v4436_v37 = vpack.c.bf16 %v1920_v29, %v1918_v46  ;;  %v4438_v31 = vpack.c.bf16 %v1921_v9, %v1919_v57 }
 0x3bd   :  { %v2283_v18 = vadd.f32 %v2282_v35, %v2194_v17  ;;  %2232 = vmatmul.bf16.gmra.mxu0 %v4436_v37  ;;  %2321 = vmatmul.bf16.gmra.mxu1 %v4438_v31 }
 0x3be   :  { %v1766_v49 = vpop.f32.mrf.mxu2  ;;  %v1855_v1 = vpop.f32.mrf.mxu3 }
 0x3bf   :  { %2536 = vst [vmem:[#allocation15 + $0x80] sm:$0xff] %v2283_v18  ;;  %v1767_v21 = vadd.f32 %v1766_v49, %v4215_v7  ;;  %v1856_v26 = vadd.f32 %v1855_v1, %v4217_v54 }
 0x3c1   :  { %v1922_v58 = vmax.f32 %v1767_v21, 0.0  ;;  %v1923_v48 = vmax.f32 %v1856_v26, 0.0 }
 0x3c2   :  { %v2195_v8 = vpop.f32.mrf.mxu0  ;;  %v2284_v14 = vpop.f32.mrf.mxu1 }
 0x3c3   :  { %v2196_v15 = vadd.f32 %v2195_v8, %v4375_v38 }
 0x3c5   :  { %v2285_v5 = vadd.f32 %v2284_v14, %v2196_v15 }
 0x3c6   :  { %v1768_v45 = vpop.f32.mrf.mxu2  ;;  %v1857_v34 = vpop.f32.mrf.mxu3 }
 0x3c7   :  { %2538 = vst [vmem:[#allocation15 + $0x90] sm:$0xff] %v2285_v5  ;;  %v1769_v62 = vadd.f32 %v1768_v45, %v4215_v7  ;;  %v1858_v19 = vadd.f32 %v1857_v34, %v4217_v54 }
 0x3c9   :  { %v1924_v53 = vmax.f32 %v1769_v62, 0.0  ;;  %v1925_v3 = vmax.f32 %v1858_v19, 0.0 }
 0x3ca   :  { %v2198_v22 = vpop.f32.mrf.mxu0  ;;  %v2287_v20 = vpop.f32.mrf.mxu1 }
 0x3cb   :  { %v2199_v4 = vadd.f32 %v2198_v22, %v4375_v38  ;;  %2380 = vmatmul.bf16.gmra.mxu2 %v4350_v6  ;;  %2469 = vmatmul.bf16.gmra.mxu3 %v4352_v25  ;;  %v4450_v16 = vpack.c.bf16 %v1924_v53, %v1922_v58  ;;  %v4452_v33 = vpack.c.bf16 %v1925_v3, %v1923_v48 }
 0x3cd   :  { %v2288_v24 = vadd.f32 %v2287_v20, %v2199_v4  ;;  %2237 = vmatmul.bf16.gmra.mxu0 %v4450_v16  ;;  %2326 = vmatmul.bf16.gmra.mxu1 %v4452_v33 }
 0x3ce   :  { %v1771_v32 = vpop.f32.mrf.mxu2  ;;  %v1860_v2 = vpop.f32.mrf.mxu3 }
 0x3cf   :  { %2540 = vst [vmem:[#allocation15 + $0xa0] sm:$0xff] %v2288_v24  ;;  %v1772_v6 = vadd.f32 %v1771_v32, %v4215_v7  ;;  %v1861_v25 = vadd.f32 %v1860_v2, %v4217_v54 }
 0x3d1   :  { %v1926_v13 = vmax.f32 %v1772_v6, 0.0  ;;  %v1927_v36 = vmax.f32 %v1861_v25, 0.0 }
 0x3d2   :  { %v2200_v52 = vpop.f32.mrf.mxu0  ;;  %v2289_v60 = vpop.f32.mrf.mxu1 }
 0x3d3   :  { %v2201_v47 = vadd.f32 %v2200_v52, %v4375_v38 }
 0x3d5   :  { %v2290_v43 = vadd.f32 %v2289_v60, %v2201_v47 }
 0x3d6   :  { %v1773_v61 = vpop.f32.mrf.mxu2  ;;  %v1862_v41 = vpop.f32.mrf.mxu3 }
 0x3d7   :  { %2542 = vst [vmem:[#allocation15 + $0xb0] sm:$0xff] %v2290_v43  ;;  %v1774_v23 = vadd.f32 %v1773_v61, %v4215_v7  ;;  %v1863_v30 = vadd.f32 %v1862_v41, %v4217_v54 }
 0x3d9   :  { %v1928_v39 = vmax.f32 %v1774_v23, 0.0  ;;  %v1929_v51 = vmax.f32 %v1863_v30, 0.0 }
 0x3da   :  { %v2203_v42 = vpop.f32.mrf.mxu0  ;;  %v2292_v44 = vpop.f32.mrf.mxu1 }
 0x3db   :  { %v2204_v46 = vadd.f32 %v2203_v42, %v4375_v38  ;;  %2385 = vmatmul.bf16.gmra.mxu2 %v4362_v27  ;;  %2474 = vmatmul.bf16.gmra.mxu3 %v4364_v28  ;;  %v4464_v57 = vpack.c.bf16 %v1928_v39, %v1926_v13  ;;  %v4466_v29 = vpack.c.bf16 %v1929_v51, %v1927_v36 }
 0x3dd   :  { %v2293_v9 = vadd.f32 %v2292_v44, %v2204_v46  ;;  %2242 = vmatmul.bf16.gmra.mxu0 %v4464_v57  ;;  %2331 = vmatmul.bf16.gmra.mxu1 %v4466_v29 }
 0x3de   :  { %v1776_v11 = vpop.f32.mrf.mxu2  ;;  %v1865_v35 = vpop.f32.mrf.mxu3 }
 0x3df   :  { %2544 = vst [vmem:[#allocation15 + $0xc0] sm:$0xff] %v2293_v9  ;;  %v1777_v27 = vadd.f32 %v1776_v11, %v4215_v7  ;;  %v1866_v28 = vadd.f32 %v1865_v35, %v4217_v54 }
 0x3e1   :  { %v1930_v26 = vmax.f32 %v1777_v27, 0.0  ;;  %v1931_v5 = vmax.f32 %v1866_v28, 0.0 }
 0x3e2   :  { %v2205_v17 = vpop.f32.mrf.mxu0  ;;  %v2294_v18 = vpop.f32.mrf.mxu1 }
 0x3e3   :  { %v2206_v49 = vadd.f32 %v2205_v17, %v4375_v38 }
 0x3e5   :  { %v2295_v1 = vadd.f32 %v2294_v18, %v2206_v49 }
 0x3e6   :  { %v1778_v8 = vpop.f32.mrf.mxu2  ;;  %v1867_v14 = vpop.f32.mrf.mxu3 }
 0x3e7   :  { %2546 = vst [vmem:[#allocation15 + $0xd0] sm:$0xff] %v2295_v1  ;;  %v1779_v15 = vadd.f32 %v1778_v8, %v4215_v7  ;;  %v1868_v21 = vadd.f32 %v1867_v14, %v4217_v54  ;;  %v4483_v7 = vperm.slane %v4368_v10, 1 }
 0x3e9   :  { %v1932_v45 = vmax.f32 %v1779_v15, 0.0  ;;  %v1933_v34 = vmax.f32 %v1868_v21, 0.0 }
 0x3ea   :  { %v2208_v62 = vpop.f32.mrf.mxu0  ;;  %v2297_v19 = vpop.f32.mrf.mxu1 }
 0x3eb   :  { %v2209_v58 = vadd.f32 %v2208_v62, %v4375_v38  ;;  %2390 = vmatmul.bf16.gmra.mxu2 %v4380_v0  ;;  %2479 = vmatmul.bf16.gmra.mxu3 %v4382_v12  ;;  %v4478_v48 = vpack.c.bf16 %v1932_v45, %v1930_v26  ;;  %v4480_v53 = vpack.c.bf16 %v1933_v34, %v1931_v5 }
 0x3ed   :  { %v2298_v54 = vadd.f32 %v2297_v19, %v2209_v58  ;;  %2247 = vmatmul.bf16.gmra.mxu0 %v4478_v48  ;;  %2336 = vmatmul.bf16.gmra.mxu1 %v4480_v53 }
 0x3ee   :  { %v2351_v3 = vpop.f32.mrf.mxu2  ;;  %v2440_v22 = vpop.f32.mrf.mxu3 }
 0x3ef   :  { %2548 = vst [vmem:[#allocation15 + $0xe0] sm:$0xff] %v2298_v54  ;;  %v2352_v20 = vadd.f32 %v2351_v3, %v4483_v7 }
 0x3f1   :  { %v2441_v0 = vadd.f32 %v2440_v22, %v2352_v20 }
 0x3f2   :  { %v2210_v4 = vpop.f32.mrf.mxu0  ;;  %v2299_v12 = vpop.f32.mrf.mxu1 }
 0x3f3   :  { %2521 = vst [vmem:[#allocation15 + $0x8] sm:$0xff] %v2441_v0  ;;  %v2211_v24 = vadd.f32 %v2210_v4, %v4375_v38 }
 0x3f5   :  { %v2300_v32 = vadd.f32 %v2299_v12, %v2211_v24 }
 0x3f6   :  { %v2353_v2 = vpop.f32.mrf.mxu2  ;;  %v2442_v10 = vpop.f32.mrf.mxu3 }
 0x3f7   :  { %2550 = vst [vmem:[#allocation15 + $0xf0] sm:$0xff] %v2300_v32  ;;  %v2354_v52 = vadd.f32 %v2353_v2, %v4483_v7 }
 0x3f9   :  { %v2443_v60 = vadd.f32 %v2442_v10, %v2354_v52 }
 0x3fa   :  { %v2213_v47 = vpop.f32.mrf.mxu0  ;;  %v2302_v6 = vpop.f32.mrf.mxu1 }
 0x3fb   :  { %2523 = vst [vmem:[#allocation15 + $0x18] sm:$0xff] %v2443_v60  ;;  %v2214_v25 = vadd.f32 %v2213_v47, %v4375_v38  ;;  %2395 = vmatmul.bf16.gmra.mxu2 %v4394_v63  ;;  %2484 = vmatmul.bf16.gmra.mxu3 %v4396_v55 }
 0x3fd   :  { %v2303_v43 = vadd.f32 %v2302_v6, %v2214_v25 }
 0x3fe   :  { %v2356_v61 = vpop.f32.mrf.mxu2  ;;  %v2445_v41 = vpop.f32.mrf.mxu3 }
 0x3ff   :  { %2552 = vst [vmem:[#allocation15 + $0x100] sm:$0xff] %v2303_v43  ;;  %v2357_v23 = vadd.f32 %v2356_v61, %v4483_v7 }
 0x401   :  { %v2446_v30 = vadd.f32 %v2445_v41, %v2357_v23 }
 0x402   :  { %v2215_v13 = vpop.f32.mrf.mxu0  ;;  %v2304_v36 = vpop.f32.mrf.mxu1 }
 0x403   :  { %2525 = vst [vmem:[#allocation15 + $0x28] sm:$0xff] %v2446_v30  ;;  %v2216_v39 = vadd.f32 %v2215_v13, %v4375_v38 }
 0x405   :  { %v2305_v51 = vadd.f32 %v2304_v36, %v2216_v39 }
 0x406   :  { %v2358_v42 = vpop.f32.mrf.mxu2  ;;  %v2447_v44 = vpop.f32.mrf.mxu3 }
 0x407   :  { %2554 = vst [vmem:[#allocation15 + $0x110] sm:$0xff] %v2305_v51  ;;  %v2359_v63 = vadd.f32 %v2358_v42, %v4483_v7 }
 0x409   :  { %v2448_v46 = vadd.f32 %v2447_v44, %v2359_v63 }
 0x40a   :  { %v2218_v55 = vpop.f32.mrf.mxu0  ;;  %v2307_v9 = vpop.f32.mrf.mxu1 }
 0x40b   :  { %2527 = vst [vmem:[#allocation15 + $0x38] sm:$0xff] %v2448_v46  ;;  %v2219_v11 = vadd.f32 %v2218_v55, %v4375_v38  ;;  %2400 = vmatmul.bf16.gmra.mxu2 %v4408_v40  ;;  %2489 = vmatmul.bf16.gmra.mxu3 %v4410_v50 }
 0x40d   :  { %v2308_v35 = vadd.f32 %v2307_v9, %v2219_v11 }
 0x40e   :  { %v2361_v17 = vpop.f32.mrf.mxu2  ;;  %v2450_v18 = vpop.f32.mrf.mxu3 }
 0x40f   :  { %2556 = vst [vmem:[#allocation15 + $0x120] sm:$0xff] %v2308_v35  ;;  %v2362_v49 = vadd.f32 %v2361_v17, %v4483_v7 }
 0x411   :  { %v2451_v27 = vadd.f32 %v2450_v18, %v2362_v49 }
 0x412   :  { %v2220_v28 = vpop.f32.mrf.mxu0  ;;  %v2309_v1 = vpop.f32.mrf.mxu1 }
 0x413   :  { %2529 = vst [vmem:[#allocation15 + $0x48] sm:$0xff] %v2451_v27  ;;  %v2221_v8 = vadd.f32 %v2220_v28, %v4375_v38 }
 0x415   :  { %v2310_v14 = vadd.f32 %v2309_v1, %v2221_v8 }
 0x416   :  { %v2363_v15 = vpop.f32.mrf.mxu2  ;;  %v2452_v21 = vpop.f32.mrf.mxu3 }
 0x417   :  { %2558 = vst [vmem:[#allocation15 + $0x130] sm:$0xff] %v2310_v14  ;;  %v2364_v40 = vadd.f32 %v2363_v15, %v4483_v7 }
 0x419   :  { %v2453_v26 = vadd.f32 %v2452_v21, %v2364_v40 }
 0x41a   :  { %v2223_v50 = vpop.f32.mrf.mxu0  ;;  %v2312_v5 = vpop.f32.mrf.mxu1 }
 0x41b   :  { %2531 = vst [vmem:[#allocation15 + $0x58] sm:$0xff] %v2453_v26  ;;  %v2224_v45 = vadd.f32 %v2223_v50, %v4375_v38  ;;  %2405 = vmatmul.bf16.gmra.mxu2 %v4422_v59  ;;  %2494 = vmatmul.bf16.gmra.mxu3 %v4424_v56 }
 0x41d   :  { %v2313_v34 = vadd.f32 %v2312_v5, %v2224_v45 }
 0x41e   :  { %v2366_v62 = vpop.f32.mrf.mxu2  ;;  %v2455_v19 = vpop.f32.mrf.mxu3 }
 0x41f   :  { %2560 = vst [vmem:[#allocation15 + $0x140] sm:$0xff] %v2313_v34  ;;  %v2367_v58 = vadd.f32 %v2366_v62, %v4483_v7 }
 0x421   :  { %v2456_v54 = vadd.f32 %v2455_v19, %v2367_v58 }
 0x422   :  { %v2225_v3 = vpop.f32.mrf.mxu0  ;;  %v2314_v22 = vpop.f32.mrf.mxu1 }
 0x423   :  { %2533 = vst [vmem:[#allocation15 + $0x68] sm:$0xff] %v2456_v54  ;;  %v2226_v20 = vadd.f32 %v2225_v3, %v4375_v38 }
 0x425   :  { %v2315_v0 = vadd.f32 %v2314_v22, %v2226_v20 }
 0x426   :  { %v2368_v4 = vpop.f32.mrf.mxu2  ;;  %v2457_v12 = vpop.f32.mrf.mxu3 }
 0x427   :  { %2562 = vst [vmem:[#allocation15 + $0x150] sm:$0xff] %v2315_v0  ;;  %v2369_v59 = vadd.f32 %v2368_v4, %v4483_v7 }
 0x429   :  { %v2458_v24 = vadd.f32 %v2457_v12, %v2369_v59 }
 0x42a   :  { %v2228_v56 = vpop.f32.mrf.mxu0  ;;  %v2317_v32 = vpop.f32.mrf.mxu1 }
 0x42b   :  { %2535 = vst [vmem:[#allocation15 + $0x78] sm:$0xff] %v2458_v24  ;;  %v2229_v2 = vadd.f32 %v2228_v56, %v4375_v38  ;;  %2410 = vmatmul.bf16.gmra.mxu2 %v4436_v37  ;;  %2499 = vmatmul.bf16.gmra.mxu3 %v4438_v31 }
 0x42d   :  { %v2318_v10 = vadd.f32 %v2317_v32, %v2229_v2 }
 0x42e   :  { %v2371_v52 = vpop.f32.mrf.mxu2  ;;  %v2460_v60 = vpop.f32.mrf.mxu3 }
 0x42f   :  { %2564 = vst [vmem:[#allocation15 + $0x160] sm:$0xff] %v2318_v10  ;;  %v2372_v47 = vadd.f32 %v2371_v52, %v4483_v7 }
 0x431   :  { %v2461_v6 = vadd.f32 %v2460_v60, %v2372_v47 }
 0x432   :  { %v2230_v25 = vpop.f32.mrf.mxu0  ;;  %v2319_v43 = vpop.f32.mrf.mxu1 }
 0x433   :  { %2537 = vst [vmem:[#allocation15 + $0x88] sm:$0xff] %v2461_v6  ;;  %v2231_v61 = vadd.f32 %v2230_v25, %v4375_v38 }
 0x435   :  { %v2320_v41 = vadd.f32 %v2319_v43, %v2231_v61 }
 0x436   :  { %v2373_v23 = vpop.f32.mrf.mxu2  ;;  %v2462_v30 = vpop.f32.mrf.mxu3 }
 0x437   :  { %2566 = vst [vmem:[#allocation15 + $0x170] sm:$0xff] %v2320_v41  ;;  %v2374_v37 = vadd.f32 %v2373_v23, %v4483_v7 }
 0x439   :  { %v2463_v13 = vadd.f32 %v2462_v30, %v2374_v37 }
 0x43a   :  { %v2233_v31 = vpop.f32.mrf.mxu0  ;;  %v2322_v36 = vpop.f32.mrf.mxu1 }
 0x43b   :  { %2539 = vst [vmem:[#allocation15 + $0x98] sm:$0xff] %v2463_v13  ;;  %v2234_v39 = vadd.f32 %v2233_v31, %v4375_v38  ;;  %2415 = vmatmul.bf16.gmra.mxu2 %v4450_v16  ;;  %2504 = vmatmul.bf16.gmra.mxu3 %v4452_v33 }
 0x43d   :  { %v2323_v51 = vadd.f32 %v2322_v36, %v2234_v39 }
 0x43e   :  { %v2376_v42 = vpop.f32.mrf.mxu2  ;;  %v2465_v44 = vpop.f32.mrf.mxu3 }
 0x43f   :  { %2568 = vst [vmem:[#allocation15 + $0x180] sm:$0xff] %v2323_v51  ;;  %v2377_v63 = vadd.f32 %v2376_v42, %v4483_v7 }
 0x441   :  { %v2466_v46 = vadd.f32 %v2465_v44, %v2377_v63 }
 0x442   :  { %v2235_v55 = vpop.f32.mrf.mxu0  ;;  %v2324_v9 = vpop.f32.mrf.mxu1 }
 0x443   :  { %2541 = vst [vmem:[#allocation15 + $0xa8] sm:$0xff] %v2466_v46  ;;  %v2236_v11 = vadd.f32 %v2235_v55, %v4375_v38 }
 0x445   :  { %v2325_v35 = vadd.f32 %v2324_v9, %v2236_v11 }
 0x446   :  { %v2378_v17 = vpop.f32.mrf.mxu2  ;;  %v2467_v18 = vpop.f32.mrf.mxu3 }
 0x447   :  { %2570 = vst [vmem:[#allocation15 + $0x190] sm:$0xff] %v2325_v35  ;;  %v2379_v16 = vadd.f32 %v2378_v17, %v4483_v7 }
 0x449   :  { %v2468_v49 = vadd.f32 %v2467_v18, %v2379_v16 }
 0x44a   :  { %v2238_v33 = vpop.f32.mrf.mxu0  ;;  %v2327_v27 = vpop.f32.mrf.mxu1 }
 0x44b   :  { %2543 = vst [vmem:[#allocation15 + $0xb8] sm:$0xff] %v2468_v49  ;;  %v2239_v28 = vadd.f32 %v2238_v33, %v4375_v38  ;;  %2420 = vmatmul.bf16.gmra.mxu2 %v4464_v57  ;;  %2509 = vmatmul.bf16.gmra.mxu3 %v4466_v29 }
 0x44d   :  { %v2328_v1 = vadd.f32 %v2327_v27, %v2239_v28 }
 0x44e   :  { %v2381_v8 = vpop.f32.mrf.mxu2  ;;  %v2470_v14 = vpop.f32.mrf.mxu3 }
 0x44f   :  { %2572 = vst [vmem:[#allocation15 + $0x1a0] sm:$0xff] %v2328_v1  ;;  %v2382_v15 = vadd.f32 %v2381_v8, %v4483_v7 }
 0x451   :  { %v2471_v21 = vadd.f32 %v2470_v14, %v2382_v15 }
 0x452   :  { %v2240_v40 = vpop.f32.mrf.mxu0  ;;  %v2329_v26 = vpop.f32.mrf.mxu1 }
 0x453   :  { %2545 = vst [vmem:[#allocation15 + $0xc8] sm:$0xff] %v2471_v21  ;;  %v2241_v50 = vadd.f32 %v2240_v40, %v4375_v38 }
 0x455   :  { %v2330_v5 = vadd.f32 %v2329_v26, %v2241_v50 }
 0x456   :  { %v2383_v45 = vpop.f32.mrf.mxu2  ;;  %v2472_v34 = vpop.f32.mrf.mxu3 }
 0x457   :  { %2574 = vst [vmem:[#allocation15 + $0x1b0] sm:$0xff] %v2330_v5  ;;  %v2384_v57 = vadd.f32 %v2383_v45, %v4483_v7 }
 0x459   :  { %v2473_v62 = vadd.f32 %v2472_v34, %v2384_v57 }
 0x45a   :  { %v2243_v29 = vpop.f32.mrf.mxu0  ;;  %v2332_v19 = vpop.f32.mrf.mxu1 }
 0x45b   :  { %2547 = vst [vmem:[#allocation15 + $0xd8] sm:$0xff] %v2473_v62  ;;  %v2244_v58 = vadd.f32 %v2243_v29, %v4375_v38  ;;  %2425 = vmatmul.bf16.gmra.mxu2 %v4478_v48  ;;  %2514 = vmatmul.bf16.gmra.mxu3 %v4480_v53 }
 0x45d   :  { %v2333_v54 = vadd.f32 %v2332_v19, %v2244_v58 }
 0x45e   :  { %v2386_v3 = vpop.f32.mrf.mxu2  ;;  %v2475_v22 = vpop.f32.mrf.mxu3 }
 0x45f   :  { %2576 = vst [vmem:[#allocation15 + $0x1c0] sm:$0xff] %v2333_v54  ;;  %v2387_v20 = vadd.f32 %v2386_v3, %v4483_v7 }
 0x461   :  { %v2476_v0 = vadd.f32 %v2475_v22, %v2387_v20 }
 0x462   :  { %v2245_v4 = vpop.f32.mrf.mxu0  ;;  %v2334_v12 = vpop.f32.mrf.mxu1 }
 0x463   :  { %2549 = vst [vmem:[#allocation15 + $0xe8] sm:$0xff] %v2476_v0  ;;  %v2246_v59 = vadd.f32 %v2245_v4, %v4375_v38 }
 0x465   :  { %v2335_v24 = vadd.f32 %v2334_v12, %v2246_v59 }
 0x466   :  { %v2388_v56 = vpop.f32.mrf.mxu2  ;;  %v2477_v32 = vpop.f32.mrf.mxu3 }
 0x467   :  { %2578 = vst [vmem:[#allocation15 + $0x1d0] sm:$0xff] %v2335_v24  ;;  %v2389_v48 = vadd.f32 %v2388_v56, %v4483_v7 }
 0x469   :  { %v2478_v2 = vadd.f32 %v2477_v32, %v2389_v48 }
 0x46a   :  { %v2248_v53 = vpop.f32.mrf.mxu0  ;;  %v2337_v10 = vpop.f32.mrf.mxu1 }
 0x46b   :  { %2551 = vst [vmem:[#allocation15 + $0xf8] sm:$0xff] %v2478_v2  ;;  %v2249_v52 = vadd.f32 %v2248_v53, %v4375_v38 }
 0x46d   :  { %v2338_v60 = vadd.f32 %v2337_v10, %v2249_v52 }
 0x46e   :  { %v2391_v47 = vpop.f32.mrf.mxu2  ;;  %v2480_v6 = vpop.f32.mrf.mxu3 }
 0x46f   :  { %2580 = vst [vmem:[#allocation15 + $0x1e0] sm:$0xff] %v2338_v60  ;;  %v2392_v25 = vadd.f32 %v2391_v47, %v4483_v7 }
 0x471   :  { %v2481_v43 = vadd.f32 %v2480_v6, %v2392_v25 }
 0x472   :  { %v2250_v61 = vpop.f32.mrf.mxu0  ;;  %v2339_v23 = vpop.f32.mrf.mxu1 }
 0x473   :  { %2553 = vst [vmem:[#allocation15 + $0x108] sm:$0xff] %v2481_v43  ;;  %v2251_v41 = vadd.f32 %v2250_v61, %v4375_v38 }
 0x475   :  { %v2340_v30 = vadd.f32 %v2339_v23, %v2251_v41 }
 0x476   :  { %v2393_v37 = vpop.f32.mrf.mxu2  ;;  %v2482_v13 = vpop.f32.mrf.mxu3 }
 0x477   :  { %2582 = vst [vmem:[#allocation15 + $0x1f0] sm:$0xff] %v2340_v30  ;;  %v2394_v31 = vadd.f32 %v2393_v37, %v4483_v7 }
 0x479   :  { %v2483_v36 = vadd.f32 %v2482_v13, %v2394_v31 }
 0x47b   :  { %2555 = vst [vmem:[#allocation15 + $0x118] sm:$0xff] %v2483_v36 }
 0x47e   :  { %v2396_v39 = vpop.f32.mrf.mxu2  ;;  %v2485_v51 = vpop.f32.mrf.mxu3 }
 0x47f   :  { %v2397_v42 = vadd.f32 %v2396_v39, %v4483_v7 }
 0x481   :  { %v2486_v44 = vadd.f32 %v2485_v51, %v2397_v42 }
 0x483   :  { %2557 = vst [vmem:[#allocation15 + $0x128] sm:$0xff] %v2486_v44 }
 0x486   :  { %v2398_v63 = vpop.f32.mrf.mxu2  ;;  %v2487_v46 = vpop.f32.mrf.mxu3 }
 0x487   :  { %v2399_v55 = vadd.f32 %v2398_v63, %v4483_v7 }
 0x489   :  { %v2488_v38 = vadd.f32 %v2487_v46, %v2399_v55 }
 0x48b   :  { %2559 = vst [vmem:[#allocation15 + $0x138] sm:$0xff] %v2488_v38 }
 0x48e   :  { %v2401_v9 = vpop.f32.mrf.mxu2  ;;  %v2490_v11 = vpop.f32.mrf.mxu3 }
 0x48f   :  { %v2402_v35 = vadd.f32 %v2401_v9, %v4483_v7 }
 0x491   :  { %v2491_v17 = vadd.f32 %v2490_v11, %v2402_v35 }
 0x493   :  { %2561 = vst [vmem:[#allocation15 + $0x148] sm:$0xff] %v2491_v17 }
 0x496   :  { %v2403_v18 = vpop.f32.mrf.mxu2  ;;  %v2492_v16 = vpop.f32.mrf.mxu3 }
 0x497   :  { %v2404_v49 = vadd.f32 %v2403_v18, %v4483_v7 }
 0x499   :  { %v2493_v33 = vadd.f32 %v2492_v16, %v2404_v49 }
 0x49b   :  { %2563 = vst [vmem:[#allocation15 + $0x158] sm:$0xff] %v2493_v33 }
 0x49e   :  { %v2406_v27 = vpop.f32.mrf.mxu2  ;;  %v2495_v28 = vpop.f32.mrf.mxu3 }
 0x49f   :  { %v2407_v1 = vadd.f32 %v2406_v27, %v4483_v7 }
 0x4a1   :  { %v2496_v8 = vadd.f32 %v2495_v28, %v2407_v1 }
 0x4a3   :  { %2565 = vst [vmem:[#allocation15 + $0x168] sm:$0xff] %v2496_v8 }
 0x4a6   :  { %v2408_v14 = vpop.f32.mrf.mxu2  ;;  %v2497_v15 = vpop.f32.mrf.mxu3 }
 0x4a7   :  { %v2409_v21 = vadd.f32 %v2408_v14, %v4483_v7 }
 0x4a9   :  { %v2498_v40 = vadd.f32 %v2497_v15, %v2409_v21 }
 0x4ab   :  { %2567 = vst [vmem:[#allocation15 + $0x178] sm:$0xff] %v2498_v40 }
 0x4ae   :  { %v2411_v26 = vpop.f32.mrf.mxu2  ;;  %v2500_v50 = vpop.f32.mrf.mxu3 }
 0x4af   :  { %v2412_v5 = vadd.f32 %v2411_v26, %v4483_v7 }
 0x4b1   :  { %v2501_v45 = vadd.f32 %v2500_v50, %v2412_v5 }
 0x4b3   :  { %2569 = vst [vmem:[#allocation15 + $0x188] sm:$0xff] %v2501_v45 }
 0x4b6   :  { %v2413_v34 = vpop.f32.mrf.mxu2  ;;  %v2502_v57 = vpop.f32.mrf.mxu3 }
 0x4b7   :  { %v2414_v62 = vadd.f32 %v2413_v34, %v4483_v7 }
 0x4b9   :  { %v2503_v29 = vadd.f32 %v2502_v57, %v2414_v62 }
 0x4bb   :  { %2571 = vst [vmem:[#allocation15 + $0x198] sm:$0xff] %v2503_v29 }
 0x4be   :  { %v2416_v19 = vpop.f32.mrf.mxu2  ;;  %v2505_v58 = vpop.f32.mrf.mxu3 }
 0x4bf   :  { %v2417_v54 = vadd.f32 %v2416_v19, %v4483_v7 }
 0x4c1   :  { %v2506_v3 = vadd.f32 %v2505_v58, %v2417_v54 }
 0x4c3   :  { %2573 = vst [vmem:[#allocation15 + $0x1a8] sm:$0xff] %v2506_v3 }
 0x4c6   :  { %v2418_v22 = vpop.f32.mrf.mxu2  ;;  %v2507_v20 = vpop.f32.mrf.mxu3 }
 0x4c7   :  { %v2419_v0 = vadd.f32 %v2418_v22, %v4483_v7 }
 0x4c9   :  { %v2508_v4 = vadd.f32 %v2507_v20, %v2419_v0 }
 0x4cb   :  { %2575 = vst [vmem:[#allocation15 + $0x1b8] sm:$0xff] %v2508_v4 }
 0x4ce   :  { %v2421_v12 = vpop.f32.mrf.mxu2  ;;  %v2510_v59 = vpop.f32.mrf.mxu3 }
 0x4cf   :  { %v2422_v24 = vadd.f32 %v2421_v12, %v4483_v7 }
 0x4d1   :  { %v2511_v56 = vadd.f32 %v2510_v59, %v2422_v24 }
 0x4d3   :  { %2577 = vst [vmem:[#allocation15 + $0x1c8] sm:$0xff] %v2511_v56 }
 0x4d6   :  { %v2423_v32 = vpop.f32.mrf.mxu2  ;;  %v2512_v48 = vpop.f32.mrf.mxu3 }
 0x4d7   :  { %v2424_v2 = vadd.f32 %v2423_v32, %v4483_v7 }
 0x4d9   :  { %v2513_v53 = vadd.f32 %v2512_v48, %v2424_v2 }
 0x4db   :  { %2579 = vst [vmem:[#allocation15 + $0x1d8] sm:$0xff] %v2513_v53 }
 0x4de   :  { %v2426_v10 = vpop.f32.mrf.mxu2  ;;  %v2515_v52 = vpop.f32.mrf.mxu3 }
 0x4df   :  { %v2427_v60 = vadd.f32 %v2426_v10, %v4483_v7 }
 0x4e1   :  { %v2516_v47 = vadd.f32 %v2515_v52, %v2427_v60 }
 0x4e3   :  { %2581 = vst [vmem:[#allocation15 + $0x1e8] sm:$0xff] %v2516_v47 }
 0x4e6   :  { %v2428_v6 = vpop.f32.mrf.mxu2  ;;  %v2517_v43 = vpop.f32.mrf.mxu3 }
 0x4e7   :  { %v2429_v25 = vadd.f32 %v2428_v6, %v4483_v7 }
 0x4e9   :  { %v2518_v61 = vadd.f32 %v2517_v43, %v2429_v25 }
 0x4eb   :  { %2583 = vst [vmem:[#allocation15 + $0x1f8] sm:$0xff] %v2518_v61 }
 0x4ec   :  { %2628 = dma.vmem_to_hbm [thread:$0]  %s2621_s22, 8192, %s2623_s23, [#allocation6], %s3448_s18, %s3448_s18, %s3449_s28  }
 0x4ed   :  { %3439 = dma.done.wait [#allocation6], 8192  }
 0x4ee   :  { %3440 = vsyncadd [#allocation6], 4294959104 }
 0x4ef   :  { %3441 = dma.done.wait [#allocation17], 4096  }
 0x4f0   :  { %3442 = vsyncadd [#allocation17], 4294963200 }
 0x4f1   :  { %2650 = vsyncpa [#allocation5], 1 }
 0x4f2   :  { %2651 = vsyncpa [#allocation8], 1 }
 0x4f3   :  { %2652 = vsyncpa [#allocation11], 1 }
 0x4f4   :  { %2653 = vsyncpa [#allocation14], 1 }
 0x4f5   :  { %2654 = vsyncpa [#allocation6], 1 }
 0x4f6   :  { %2655 = vsyncpa [#allocation17], 1 }

</bundles_post_ra>
